<compile_context>
chip_gen: v7x
topology: tpu7x:2x2x1
jax: 0.10.0
libtpu: 0.0.40
codegen_flags: <defaults>
</compile_context>

<pallas_src>
import functools

import jax
import jax.numpy as jnp
from jax.experimental import pallas as pl
from jax.experimental.pallas import tpu as pltpu

EPS = 1e-5
# Well under the smallest physical VMEM (v7x: 64 MiB) so Mosaic keeps room for
# internal scratch and full double-buffering, while still raising the v5e/v6e
# scoped defaults enough for large row tiles.
_VMEM_LIMIT = 48 * 1024 * 1024
# Per-grid-step live-VMEM budget used by the tile pickers (double-buffered
# input/output blocks + in-kernel temporaries + the f32 accumulator).
_TILE_BUDGET = 16 * 1024 * 1024


# --------------------------------------------------------------------------
# Kernels
# --------------------------------------------------------------------------
def _conv_body(x_ref, ha_ref, hb_ref, w_ref, scale_ref, bias_ref,
               y_ref, stats_ref, *, tile_h, W):
    """One (batch, row-tile) step of a 3x3 'same' conv over an UNPADDED
    channels-last input.

      * Halo rows arrive through clamped 1-row BlockSpecs and are zeroed here
        when they fall outside the image; zero column borders are attached
        in-kernel, so no padded copy of the input ever exists in HBM.
      * Optional fused x*scale+bias -> ReLU (folded BatchNorm of the previous
        conv) is applied to the loaded rows BEFORE the padding zeros are
        attached, so padded positions stay exactly zero.
      * The conv is 9 shifted MXU matmuls accumulated in f32 (no im2col slab,
        no scratch-buffer copies).
      * Per-tile BatchNorm partials (sum, sum of squares) are taken from the
        f32 accumulator before the bf16 store.
    """
    f32 = jnp.float32
    bf16 = jnp.bfloat16
    t = pl.program_id(1)
    c_in = x_ref.shape[-1]
    c_out = w_ref.shape[-1]

    x = x_ref[0]                                    # (tile_h, W, Cin) bf16
    ha = ha_ref[0]                                  # (1, W, Cin) row above
    hb = hb_ref[0]                                  # (1, W, Cin) row below

    if scale_ref is not None:                       # fused BN + ReLU (f32)
        sc = scale_ref[...]                         # (1, Cin) f32
        bs = bias_ref[...]
        bn = lambda v: jnp.maximum(v.astype(f32) * sc + bs, 0.0).astype(bf16)
        x, ha, hb = bn(x), bn(ha), bn(hb)

    # Halo rows are clamp-loaded; zero them where they lie outside the image.
    ha = ha * (t > 0).astype(bf16)
    hb = hb * (t < pl.num_programs(1) - 1).astype(bf16)

    rows = jnp.concatenate([ha, x, hb], axis=0)          # (tile_h+2, W, C)
    zcol = jnp.zeros((tile_h + 2, 1, c_in), bf16)
    xt = jnp.concatenate([zcol, rows, zcol], axis=1)     # (tile_h+2, W+2, C)

    acc = jnp.zeros((tile_h * W, c_out), f32)
    for kh in range(3):
        for kw in range(3):
            tap = xt[kh:kh + tile_h, kw:kw + W, :].reshape(tile_h * W, c_in)
            acc = acc + jnp.dot(tap, w_ref[kh * 3 + kw],
                                preferred_element_type=f32)

    y_ref[0] = acc.reshape(tile_h, W, c_out).astype(y_ref.dtype)

    # Single-pass partial statistics for the cross-tile BatchNorm reduction.
    stats_ref[0, 0, 0:1, :] = jnp.sum(acc, axis=0, keepdims=True)
    stats_ref[0, 0, 1:2, :] = jnp.sum(acc * acc, axis=0, keepdims=True)


def _conv_kernel(x_ref, ha_ref, hb_ref, w_ref, y_ref, stats_ref,
                 *, tile_h, W):
    _conv_body(x_ref, ha_ref, hb_ref, w_ref, None, None, y_ref, stats_ref,
               tile_h=tile_h, W=W)


def _bn_relu_conv_kernel(x_ref, ha_ref, hb_ref, w_ref, scale_ref, bias_ref,
                         y_ref, stats_ref, *, tile_h, W):
    _conv_body(x_ref, ha_ref, hb_ref, w_ref, scale_ref, bias_ref,
               y_ref, stats_ref, tile_h=tile_h, W=W)


def _bn_relu_kernel(y_ref, scale_ref, bias_ref, o_ref, *, W):
    # Per-channel scale/bias expanded once per tile onto the fused (W*Cout)
    # lane axis (concatenate keeps the lowering simple), then a lane-dense
    # elementwise FMA + ReLU in f32.
    sc = jnp.concatenate([scale_ref[...]] * W, axis=1)   # (1, W*Cout)
    bs = jnp.concatenate([bias_ref[...]] * W, axis=1)
    o_ref[...] = jnp.maximum(y_ref[...].astype(jnp.float32) * sc + bs, 0.0)


# --------------------------------------------------------------------------
# pallas_call wrappers
# --------------------------------------------------------------------------
def _pick_tile_h(H, W, c_in_max, c_out_max, n_batch):
    """Largest row tile (a divisor of H) whose live VMEM fits the budget.
    When N == 1, keep >= 2 row tiles so both v7x TensorCores get grid steps."""
    def live(th):
        # dbl-buffered bf16 in block + ~3 tile-sized bf16 temporaries
        # (assembled rows / padded tile / tap) + dbl-buffered bf16 out block
        # + f32 accumulator, with margin.
        return th * W * (10 * c_in_max + 12 * c_out_max)
    divs = [d for d in range(H, 0, -1) if H % d == 0]
    fitting = [d for d in divs if live(d) <= _TILE_BUDGET]
    if not fitting:
        return divs[-1]
    if n_batch == 1 and fitting[0] == H and len(fitting) > 1:
        return fitting[1]
    return fitting[0]


def _conv3x3_call(x, w_taps, scale, bias, *, H, W, tile_h):
    """x: (N, H, W, Cin) bf16, unpadded.  w_taps: (9, Cin, Cout) bf16.
    Returns y (N, H, W, Cout) bf16 (raw conv, channels last) and per-tile BN
    partial sums (N, T, 2, Cout) f32.  If scale/bias are given,
    relu(x*scale+bias) is fused onto the loaded input rows before the conv."""
    N = x.shape[0]
    C = x.shape[-1]
    Cout = w_taps.shape[-1]
    T = H // tile_h
    grid = (N, T)

    x_main = pl.BlockSpec((1, tile_h, W, C), lambda n, t: (n, t, 0, 0))
    # 1-row halo views: block row size 1 => the block index IS the row index.
    # Clamp at the image border; the kernel zeroes the row when it is OOB.
    x_above = pl.BlockSpec(
        (1, 1, W, C), lambda n, t: (n, jnp.maximum(t * tile_h - 1, 0), 0, 0))
    x_below = pl.BlockSpec(
        (1, 1, W, C),
        lambda n, t: (n, jnp.minimum((t + 1) * tile_h, H - 1), 0, 0))
    w_spec = pl.BlockSpec((9, C, Cout), lambda n, t: (0, 0, 0))
    y_spec = pl.BlockSpec((1, tile_h, W, Cout), lambda n, t: (n, t, 0, 0))
    stats_spec = pl.BlockSpec((1, 1, 2, Cout), lambda n, t: (n, t, 0, 0))

    if scale is None:
        kernel = functools.partial(_conv_kernel, tile_h=tile_h, W=W)
        in_specs = [x_main, x_above, x_below, w_spec]
        operands = (x, x, x, w_taps)
    else:
        kernel = functools.partial(_bn_relu_conv_kernel, tile_h=tile_h, W=W)
        vec_spec = pl.BlockSpec((1, C), lambda n, t: (0, 0))
        in_specs = [x_main, x_above, x_below, w_spec, vec_spec, vec_spec]
        operands = (x, x, x, w_taps, scale, bias)

    return pl.pallas_call(
        kernel,
        grid=grid,
        in_specs=in_specs,
        out_specs=(y_spec, stats_spec),
        out_shape=(jax.ShapeDtypeStruct((N, H, W, Cout), jnp.bfloat16),
                   jax.ShapeDtypeStruct((N, T, 2, Cout), jnp.float32)),
        compiler_params=pltpu.CompilerParams(
            dimension_semantics=("parallel", "parallel"),
            vmem_limit_bytes=_VMEM_LIMIT),
    )(*operands)


def _bn_relu_call(y2d, scale, bias, *, W):
    """Lane-dense BN-apply + ReLU epilogue on the (N*H, W*Cout) slab."""
    R, L = y2d.shape
    per_row = L * (2 * 2 + 2 * 4 + 4)     # bf16 in + f32 out (dbl-buf) + temp
    valid = [d for d in range(R, 0, -1)
             if R % d == 0 and (d == R or d % 8 == 0)]
    fitting = [d for d in valid if d * per_row <= _TILE_BUDGET]
    tile_r = fitting[0] if fitting else valid[-1]
    cout = L // W
    return pl.pallas_call(
        functools.partial(_bn_relu_kernel, W=W),
        grid=(R // tile_r,),
        in_specs=[pl.BlockSpec((tile_r, L), lambda r: (r, 0)),
                  pl.BlockSpec((1, cout), lambda r: (0, 0)),
                  pl.BlockSpec((1, cout), lambda r: (0, 0))],
        out_specs=pl.BlockSpec((tile_r, L), lambda r: (r, 0)),
        out_shape=jax.ShapeDtypeStruct((R, L), jnp.float32),
        compiler_params=pltpu.CompilerParams(
            dimension_semantics=("parallel",),
            vmem_limit_bytes=_VMEM_LIMIT),
    )(y2d, scale, bias)


def _fold_bn(stats, gamma, beta, count):
    # Reduce per-tile partials and fold training-mode BN (biased variance,
    # eps=1e-5) into a per-channel scale/bias pair, all in f32.
    s = jnp.sum(stats.astype(jnp.float32), axis=(0, 1))    # (2, C)
    mean = s[0] / count
    var = jnp.maximum(s[1] / count - mean * mean, 0.0)
    scale = gamma * jax.lax.rsqrt(var + EPS)
    bias = beta - mean * scale
    return scale.reshape(1, -1), bias.reshape(1, -1)


@jax.jit
def double_conv(x_nchw, w1_hwio, g1, b1, w2_hwio, g2, b2):
    """Pallas DoubleConv: x (N, Cin, H, W) f32 -> (N, Cout, H, W) f32.
    BatchNorm uses training-mode batch statistics (fresh PyTorch module)."""
    N, Cin, H, W = x_nchw.shape
    Cmid = w1_hwio.shape[-1]
    Cout = w2_hwio.shape[-1]
    tile_h = _pick_tile_h(H, W, max(Cin, Cmid), max(Cmid, Cout), N)
    count = N * H * W

    # NCHW -> NHWC (channels on the lane axis).  These boundary transposes are
    # the only full-array XLA passes left; kept because the module contract is
    # NCHW in / NCHW out.  No jnp.pad anywhere: all zero padding is in-kernel.
    x = jnp.transpose(x_nchw, (0, 2, 3, 1)).astype(jnp.bfloat16)
    w1t = w1_hwio.reshape(9, Cin, Cmid).astype(jnp.bfloat16)
    w2t = w2_hwio.reshape(9, Cmid, Cout).astype(jnp.bfloat16)

    # conv1 (raw) + BN1 per-tile partial stats (bf16 intermediate, f32 stats).
    y1, s1 = _conv3x3_call(x, w1t, None, None, H=H, W=W, tile_h=tile_h)
    scale1, bias1 = _fold_bn(s1, g1, b1, count)

    # BN1 + ReLU fused into conv2 + BN2 per-tile partial stats.
    y2, s2 = _conv3x3_call(y1, w2t, scale1, bias1, H=H, W=W, tile_h=tile_h)
    scale2, bias2 = _fold_bn(s2, g2, b2, count)

    # Final BN2 + ReLU on the lane-dense (N*H, W*Cout) view of y2 (the reshape
    # only merges contiguous trailing dims => metadata-only in HBM).
    out2d = _bn_relu_call(y2.reshape(N * H, W * Cout), scale2, bias2, W=W)
    out = out2d.reshape(N, H, W, Cout)
    return jnp.transpose(out, (0, 3, 1, 2))                # back to NCHW


# --------------------------------------------------------------------------
# Reference + test
# --------------------------------------------------------------------------
def _reference(x_nchw, w1_hwio, g1, b1, w2_hwio, g2, b2):
    """Plain-JAX f32 reference (training-mode BatchNorm)."""
    def conv(x, w):
        return jax.lax.conv_general_dilated(
            x, w, window_strides=(1, 1), padding=((1, 1), (1, 1)),
            dimension_numbers=("NCHW", "HWIO", "NCHW"))

    def bn_relu(y, g, b):
        mean = jnp.mean(y, axis=(0, 2, 3), keepdims=True)
        var = jnp.mean((y - mean) ** 2, axis=(0, 2, 3), keepdims=True)
        yn = (y - mean) * jax.lax.rsqrt(var + EPS)
        yn = yn * g.reshape(1, -1, 1, 1) + b.reshape(1, -1, 1, 1)
        return jnp.maximum(yn, 0.0)

    h = bn_relu(conv(x_nchw, w1_hwio), g1, b1)
    return bn_relu(conv(h, w2_hwio), g2, b2)


if __name__ == "__main__":
    N, Cin, Cout, H, W = 2, 4, 8, 16, 16

    key = jax.random.PRNGKey(0)
    kx, kw1, kw2, kg1, kb1, kg2, kb2 = jax.random.split(key, 7)

    x = jax.random.normal(kx, (N, Cin, H, W), jnp.float32)
    # Conv weights in HWIO layout (kh, kw, cin, cout).
    w1 = jax.random.normal(kw1, (3, 3, Cin, Cout), jnp.float32) * 0.1
    w2 = jax.random.normal(kw2, (3, 3, Cout, Cout), jnp.float32) * 0.1
    # BN affine params (perturbed so the affine math is exercised).
    g1 = 1.0 + 0.1 * jax.random.normal(kg1, (Cout,), jnp.float32)
    b1 = 0.1 * jax.random.normal(kb1, (Cout,), jnp.float32)
    g2 = 1.0 + 0.1 * jax.random.normal(kg2, (Cout,), jnp.float32)
    b2 = 0.1 * jax.random.normal(kb2, (Cout,), jnp.float32)

    out = double_conv(x, w1, g1, b1, w2, g2, b2)
    jax.block_until_ready(out)

    ref = _reference(x, w1, g1, b1, w2, g2, b2)
    assert out.shape == (N, Cout, H, W), out.shape

    # bf16 MXU operands + bf16 intermediates => small, expected deviation from
    # the pure-f32 reference; structural errors (halo / padding / stats) would
    # be O(1).
    diff = out - ref
    rel = float(jnp.sqrt(jnp.sum(diff * diff)) /
                (jnp.sqrt(jnp.sum(ref * ref)) + 1e-12))
    mad = float(jnp.max(jnp.abs(diff)))
    assert rel < 5e-2 and mad < 2e-1, (rel, mad)

    print("KERNEL_OK")
</pallas_src>

<mosaic_0001>
module attributes {stable_mosaic.version = 11 : i64} {
  func.func @_conv_kernel(%arg0: i32, %arg1: i32, %arg2: memref<1x16x16x4xbf16, #tpu.memory_space<vmem>>, %arg3: memref<1x1x16x4xbf16, #tpu.memory_space<vmem>>, %arg4: memref<1x1x16x4xbf16, #tpu.memory_space<vmem>>, %arg5: memref<9x4x8xbf16, #tpu.memory_space<vmem>>, %arg6: memref<1x16x16x8xbf16, #tpu.memory_space<vmem>>, %arg7: memref<1x1x2x8xf32, #tpu.memory_space<vmem>>) attributes {dimension_semantics = [#tpu.dimension_semantics<parallel>, #tpu.dimension_semantics<parallel>], iteration_bounds = array<i64: 2, 1>, scalar_prefetch = 0 : i64, scratch_operands = 0 : i64, tpu.core_type = #tpu.core_type<tc>, window_params = [{transform_indices = @transform_0, window_bounds = array<i64: 1, 16, 16, 4>}, {transform_indices = @transform_1, window_bounds = array<i64: 1, 1, 16, 4>}, {transform_indices = @transform_2, window_bounds = array<i64: 1, 1, 16, 4>}, {pipeline_mode = #tpu.pipeline_mode<synchronous>, transform_indices = @transform_3, window_bounds = array<i64: 9, 4, 8>}, {transform_indices = @transform_4, window_bounds = array<i64: 1, 16, 16, 8>}, {transform_indices = @transform_5, window_bounds = array<i64: 1, 1, 2, 8>}]} {
    %c0 = arith.constant 0 : index
    %c0_0 = arith.constant 0 : index
    %c0_1 = arith.constant 0 : index
    %c0_2 = arith.constant 0 : index
    %0 = vector.load %arg2[%c0, %c0_0, %c0_1, %c0_2] : memref<1x16x16x4xbf16, #tpu.memory_space<vmem>>, vector<1x16x16x4xbf16>
    %1 = vector.shape_cast %0 : vector<1x16x16x4xbf16> to vector<16x16x4xbf16>
    %c0_3 = arith.constant 0 : index
    %c0_4 = arith.constant 0 : index
    %c0_5 = arith.constant 0 : index
    %c0_6 = arith.constant 0 : index
    %2 = vector.load %arg3[%c0_3, %c0_4, %c0_5, %c0_6] : memref<1x1x16x4xbf16, #tpu.memory_space<vmem>>, vector<1x1x16x4xbf16>
    %3 = vector.shape_cast %2 : vector<1x1x16x4xbf16> to vector<1x16x4xbf16>
    %c0_7 = arith.constant 0 : index
    %c0_8 = arith.constant 0 : index
    %c0_9 = arith.constant 0 : index
    %c0_10 = arith.constant 0 : index
    %4 = vector.load %arg4[%c0_7, %c0_8, %c0_9, %c0_10] : memref<1x1x16x4xbf16, #tpu.memory_space<vmem>>, vector<1x1x16x4xbf16>
    %5 = vector.shape_cast %4 : vector<1x1x16x4xbf16> to vector<1x16x4xbf16>
    %c0_i32 = arith.constant 0 : i32
    %6 = arith.cmpi sgt, %arg1, %c0_i32 : i32
    %7 = arith.extui %6 : i1 to i32
    %8 = arith.sitofp %7 : i32 to f32
    %9 = arith.truncf %8 : f32 to bf16
    %10 = vector.broadcast %9 : bf16 to vector<1x16x4xbf16>
    %11 = arith.mulf %3, %10 : vector<1x16x4xbf16>
    %c0_i32_11 = arith.constant 0 : i32
    %12 = arith.cmpi slt, %arg1, %c0_i32_11 : i32
    %13 = arith.extui %12 : i1 to i32
    %14 = arith.sitofp %13 : i32 to f32
    %15 = arith.truncf %14 : f32 to bf16
    %16 = vector.broadcast %15 : bf16 to vector<1x16x4xbf16>
    %17 = arith.mulf %5, %16 : vector<1x16x4xbf16>
    %18 = tpu.concatenate %11, %1, %17 in 0 : vector<1x16x4xbf16>, vector<16x16x4xbf16>, vector<1x16x4xbf16> -> vector<18x16x4xbf16>
    %cst = arith.constant 0.000000e+00 : bf16
    %19 = vector.broadcast %cst : bf16 to vector<18x1x4xbf16>
    %20 = tpu.concatenate %19, %18, %19 in 1 : vector<18x1x4xbf16>, vector<18x16x4xbf16>, vector<18x1x4xbf16> -> vector<18x18x4xbf16>
    %cst_12 = arith.constant 0.000000e+00 : f32
    %21 = vector.broadcast %cst_12 : f32 to vector<256x8xf32>
    %22 = vector.extract_strided_slice %20 {offsets = [0, 0, 0], sizes = [16, 16, 4], strides = [1, 1, 1]} : vector<18x18x4xbf16> to vector<16x16x4xbf16>
    %23 = vector.shape_cast %22 : vector<16x16x4xbf16> to vector<256x4xbf16>
    %c0_13 = arith.constant 0 : index
    %c0_14 = arith.constant 0 : index
    %c0_15 = arith.constant 0 : index
    %24 = vector.load %arg5[%c0_13, %c0_14, %c0_15] : memref<9x4x8xbf16, #tpu.memory_space<vmem>>, vector<1x4x8xbf16>
    %25 = vector.shape_cast %24 : vector<1x4x8xbf16> to vector<4x8xbf16>
    %cst_16 = arith.constant dense<0.000000e+00> : vector<256x8xf32>
    %26 = tpu.matmul %23, %25, %cst_16 {dimension_numbers = #tpu.dot_dimension_numbers<[1], [0], [0], [1], [0, 0, 1, 1], [], []>} : vector<256x4xbf16>, vector<4x8xbf16>, vector<256x8xf32> -> vector<256x8xf32>
    %27 = arith.addf %21, %26 : vector<256x8xf32>
    %28 = vector.extract_strided_slice %20 {offsets = [0, 1, 0], sizes = [16, 16, 4], strides = [1, 1, 1]} : vector<18x18x4xbf16> to vector<16x16x4xbf16>
    %29 = vector.shape_cast %28 : vector<16x16x4xbf16> to vector<256x4xbf16>
    %c1 = arith.constant 1 : index
    %c0_17 = arith.constant 0 : index
    %c0_18 = arith.constant 0 : index
    %30 = vector.load %arg5[%c1, %c0_17, %c0_18] : memref<9x4x8xbf16, #tpu.memory_space<vmem>>, vector<1x4x8xbf16>
    %31 = vector.shape_cast %30 : vector<1x4x8xbf16> to vector<4x8xbf16>
    %cst_19 = arith.constant dense<0.000000e+00> : vector<256x8xf32>
    %32 = tpu.matmul %29, %31, %cst_19 {dimension_numbers = #tpu.dot_dimension_numbers<[1], [0], [0], [1], [0, 0, 1, 1], [], []>} : vector<256x4xbf16>, vector<4x8xbf16>, vector<256x8xf32> -> vector<256x8xf32>
    %33 = arith.addf %27, %32 : vector<256x8xf32>
    %34 = vector.extract_strided_slice %20 {offsets = [0, 2, 0], sizes = [16, 16, 4], strides = [1, 1, 1]} : vector<18x18x4xbf16> to vector<16x16x4xbf16>
    %35 = vector.shape_cast %34 : vector<16x16x4xbf16> to vector<256x4xbf16>
    %c2 = arith.constant 2 : index
    %c0_20 = arith.constant 0 : index
    %c0_21 = arith.constant 0 : index
    %36 = vector.load %arg5[%c2, %c0_20, %c0_21] : memref<9x4x8xbf16, #tpu.memory_space<vmem>>, vector<1x4x8xbf16>
    %37 = vector.shape_cast %36 : vector<1x4x8xbf16> to vector<4x8xbf16>
    %cst_22 = arith.constant dense<0.000000e+00> : vector<256x8xf32>
    %38 = tpu.matmul %35, %37, %cst_22 {dimension_numbers = #tpu.dot_dimension_numbers<[1], [0], [0], [1], [0, 0, 1, 1], [], []>} : vector<256x4xbf16>, vector<4x8xbf16>, vector<256x8xf32> -> vector<256x8xf32>
    %39 = arith.addf %33, %38 : vector<256x8xf32>
    %40 = vector.extract_strided_slice %20 {offsets = [1, 0, 0], sizes = [16, 16, 4], strides = [1, 1, 1]} : vector<18x18x4xbf16> to vector<16x16x4xbf16>
    %41 = vector.shape_cast %40 : vector<16x16x4xbf16> to vector<256x4xbf16>
    %c3 = arith.constant 3 : index
    %c0_23 = arith.constant 0 : index
    %c0_24 = arith.constant 0 : index
    %42 = vector.load %arg5[%c3, %c0_23, %c0_24] : memref<9x4x8xbf16, #tpu.memory_space<vmem>>, vector<1x4x8xbf16>
    %43 = vector.shape_cast %42 : vector<1x4x8xbf16> to vector<4x8xbf16>
    %cst_25 = arith.constant dense<0.000000e+00> : vector<256x8xf32>
    %44 = tpu.matmul %41, %43, %cst_25 {dimension_numbers = #tpu.dot_dimension_numbers<[1], [0], [0], [1], [0, 0, 1, 1], [], []>} : vector<256x4xbf16>, vector<4x8xbf16>, vector<256x8xf32> -> vector<256x8xf32>
    %45 = arith.addf %39, %44 : vector<256x8xf32>
    %46 = vector.extract_strided_slice %20 {offsets = [1, 1, 0], sizes = [16, 16, 4], strides = [1, 1, 1]} : vector<18x18x4xbf16> to vector<16x16x4xbf16>
    %47 = vector.shape_cast %46 : vector<16x16x4xbf16> to vector<256x4xbf16>
    %c4 = arith.constant 4 : index
    %c0_26 = arith.constant 0 : index
    %c0_27 = arith.constant 0 : index
    %48 = vector.load %arg5[%c4, %c0_26, %c0_27] : memref<9x4x8xbf16, #tpu.memory_space<vmem>>, vector<1x4x8xbf16>
    %49 = vector.shape_cast %48 : vector<1x4x8xbf16> to vector<4x8xbf16>
    %cst_28 = arith.constant dense<0.000000e+00> : vector<256x8xf32>
    %50 = tpu.matmul %47, %49, %cst_28 {dimension_numbers = #tpu.dot_dimension_numbers<[1], [0], [0], [1], [0, 0, 1, 1], [], []>} : vector<256x4xbf16>, vector<4x8xbf16>, vector<256x8xf32> -> vector<256x8xf32>
    %51 = arith.addf %45, %50 : vector<256x8xf32>
    %52 = vector.extract_strided_slice %20 {offsets = [1, 2, 0], sizes = [16, 16, 4], strides = [1, 1, 1]} : vector<18x18x4xbf16> to vector<16x16x4xbf16>
    %53 = vector.shape_cast %52 : vector<16x16x4xbf16> to vector<256x4xbf16>
    %c5 = arith.constant 5 : index
    %c0_29 = arith.constant 0 : index
    %c0_30 = arith.constant 0 : index
    %54 = vector.load %arg5[%c5, %c0_29, %c0_30] : memref<9x4x8xbf16, #tpu.memory_space<vmem>>, vector<1x4x8xbf16>
    %55 = vector.shape_cast %54 : vector<1x4x8xbf16> to vector<4x8xbf16>
    %cst_31 = arith.constant dense<0.000000e+00> : vector<256x8xf32>
    %56 = tpu.matmul %53, %55, %cst_31 {dimension_numbers = #tpu.dot_dimension_numbers<[1], [0], [0], [1], [0, 0, 1, 1], [], []>} : vector<256x4xbf16>, vector<4x8xbf16>, vector<256x8xf32> -> vector<256x8xf32>
    %57 = arith.addf %51, %56 : vector<256x8xf32>
    %58 = vector.extract_strided_slice %20 {offsets = [2, 0, 0], sizes = [16, 16, 4], strides = [1, 1, 1]} : vector<18x18x4xbf16> to vector<16x16x4xbf16>
    %59 = vector.shape_cast %58 : vector<16x16x4xbf16> to vector<256x4xbf16>
    %c6 = arith.constant 6 : index
    %c0_32 = arith.constant 0 : index
    %c0_33 = arith.constant 0 : index
    %60 = vector.load %arg5[%c6, %c0_32, %c0_33] : memref<9x4x8xbf16, #tpu.memory_space<vmem>>, vector<1x4x8xbf16>
    %61 = vector.shape_cast %60 : vector<1x4x8xbf16> to vector<4x8xbf16>
    %cst_34 = arith.constant dense<0.000000e+00> : vector<256x8xf32>
    %62 = tpu.matmul %59, %61, %cst_34 {dimension_numbers = #tpu.dot_dimension_numbers<[1], [0], [0], [1], [0, 0, 1, 1], [], []>} : vector<256x4xbf16>, vector<4x8xbf16>, vector<256x8xf32> -> vector<256x8xf32>
    %63 = arith.addf %57, %62 : vector<256x8xf32>
    %64 = vector.extract_strided_slice %20 {offsets = [2, 1, 0], sizes = [16, 16, 4], strides = [1, 1, 1]} : vector<18x18x4xbf16> to vector<16x16x4xbf16>
    %65 = vector.shape_cast %64 : vector<16x16x4xbf16> to vector<256x4xbf16>
    %c7 = arith.constant 7 : index
    %c0_35 = arith.constant 0 : index
    %c0_36 = arith.constant 0 : index
    %66 = vector.load %arg5[%c7, %c0_35, %c0_36] : memref<9x4x8xbf16, #tpu.memory_space<vmem>>, vector<1x4x8xbf16>
    %67 = vector.shape_cast %66 : vector<1x4x8xbf16> to vector<4x8xbf16>
    %cst_37 = arith.constant dense<0.000000e+00> : vector<256x8xf32>
    %68 = tpu.matmul %65, %67, %cst_37 {dimension_numbers = #tpu.dot_dimension_numbers<[1], [0], [0], [1], [0, 0, 1, 1], [], []>} : vector<256x4xbf16>, vector<4x8xbf16>, vector<256x8xf32> -> vector<256x8xf32>
    %69 = arith.addf %63, %68 : vector<256x8xf32>
    %70 = vector.extract_strided_slice %20 {offsets = [2, 2, 0], sizes = [16, 16, 4], strides = [1, 1, 1]} : vector<18x18x4xbf16> to vector<16x16x4xbf16>
    %71 = vector.shape_cast %70 : vector<16x16x4xbf16> to vector<256x4xbf16>
    %c8 = arith.constant 8 : index
    %c0_38 = arith.constant 0 : index
    %c0_39 = arith.constant 0 : index
    %72 = vector.load %arg5[%c8, %c0_38, %c0_39] : memref<9x4x8xbf16, #tpu.memory_space<vmem>>, vector<1x4x8xbf16>
    %73 = vector.shape_cast %72 : vector<1x4x8xbf16> to vector<4x8xbf16>
    %cst_40 = arith.constant dense<0.000000e+00> : vector<256x8xf32>
    %74 = tpu.matmul %71, %73, %cst_40 {dimension_numbers = #tpu.dot_dimension_numbers<[1], [0], [0], [1], [0, 0, 1, 1], [], []>} : vector<256x4xbf16>, vector<4x8xbf16>, vector<256x8xf32> -> vector<256x8xf32>
    %75 = arith.addf %69, %74 : vector<256x8xf32>
    %76 = vector.shape_cast %75 : vector<256x8xf32> to vector<16x16x8xf32>
    %77 = arith.truncf %76 : vector<16x16x8xf32> to vector<16x16x8xbf16>
    %c0_41 = arith.constant 0 : index
    %c0_42 = arith.constant 0 : index
    %c0_43 = arith.constant 0 : index
    %c0_44 = arith.constant 0 : index
    %78 = vector.load %arg6[%c0_41, %c0_42, %c0_43, %c0_44] : memref<1x16x16x8xbf16, #tpu.memory_space<vmem>>, vector<1x16x16x8xbf16>
    %79 = vector.shape_cast %78 : vector<1x16x16x8xbf16> to vector<16x16x8xbf16>
    %80 = vector.shape_cast %77 : vector<16x16x8xbf16> to vector<1x16x16x8xbf16>
    tpu.vector_store %arg6[%c0_41, %c0_42, %c0_43, %c0_44], %80 {strides = array<i32>} : memref<1x16x16x8xbf16, #tpu.memory_space<vmem>>, vector<1x16x16x8xbf16>,
    %cst_45 = arith.constant dense<0.000000e+00> : vector<8xf32>
    %81 = vector.multi_reduction <add>, %75, %cst_45 [0] : vector<256x8xf32> to vector<8xf32>
    %82 = vector.shape_cast %81 : vector<8xf32> to vector<1x8xf32>
    %c0_46 = arith.constant 0 : index
    %c0_47 = arith.constant 0 : index
    %c0_48 = arith.constant 0 : index
    %c0_49 = arith.constant 0 : index
    %83 = vector.load %arg7[%c0_46, %c0_47, %c0_48, %c0_49] : memref<1x1x2x8xf32, #tpu.memory_space<vmem>>, vector<1x1x1x8xf32>
    %84 = vector.shape_cast %83 : vector<1x1x1x8xf32> to vector<1x8xf32>
    %85 = vector.shape_cast %82 : vector<1x8xf32> to vector<1x1x1x8xf32>
    tpu.vector_store %arg7[%c0_46, %c0_47, %c0_48, %c0_49], %85 {strides = array<i32>} : memref<1x1x2x8xf32, #tpu.memory_space<vmem>>, vector<1x1x1x8xf32>,
    %86 = arith.mulf %75, %75 : vector<256x8xf32>
    %cst_50 = arith.constant dense<0.000000e+00> : vector<8xf32>
    %87 = vector.multi_reduction <add>, %86, %cst_50 [0] : vector<256x8xf32> to vector<8xf32>
    %88 = vector.shape_cast %87 : vector<8xf32> to vector<1x8xf32>
    %c0_51 = arith.constant 0 : index
    %c0_52 = arith.constant 0 : index
    %c1_53 = arith.constant 1 : index
    %c0_54 = arith.constant 0 : index
    %89 = vector.load %arg7[%c0_51, %c0_52, %c1_53, %c0_54] : memref<1x1x2x8xf32, #tpu.memory_space<vmem>>, vector<1x1x1x8xf32>
    %90 = vector.shape_cast %89 : vector<1x1x1x8xf32> to vector<1x8xf32>
    %91 = vector.shape_cast %88 : vector<1x8xf32> to vector<1x1x1x8xf32>
    tpu.vector_store %arg7[%c0_51, %c0_52, %c1_53, %c0_54], %91 {strides = array<i32>} : memref<1x1x2x8xf32, #tpu.memory_space<vmem>>, vector<1x1x1x8xf32>,
    return
  }
  func.func @transform_0(%arg0: i32, %arg1: i32) -> (i32, i32, i32, i32) {
    %c0_i32 = arith.constant 0 : i32
    %c0_i32_0 = arith.constant 0 : i32
    %c0_i32_1 = arith.constant 0 : i32
    return %arg0, %arg1, %c0_i32, %c0_i32_0 : i32, i32, i32, i32
  }
  func.func @transform_1(%arg0: i32, %arg1: i32) -> (i32, i32, i32, i32) {
    %c16_i32 = arith.constant 16 : i32
    %0 = arith.muli %arg1, %c16_i32 : i32
    %c1_i32 = arith.constant 1 : i32
    %1 = arith.subi %0, %c1_i32 : i32
    %c0_i32 = arith.constant 0 : i32
    %2 = arith.maxsi %1, %c0_i32 : i32
    %c0_i32_0 = arith.constant 0 : i32
    %c0_i32_1 = arith.constant 0 : i32
    %c0_i32_2 = arith.constant 0 : i32
    return %arg0, %2, %c0_i32_0, %c0_i32_1 : i32, i32, i32, i32
  }
  func.func @transform_2(%arg0: i32, %arg1: i32) -> (i32, i32, i32, i32) {
    %c1_i32 = arith.constant 1 : i32
    %0 = arith.addi %arg1, %c1_i32 : i32
    %c16_i32 = arith.constant 16 : i32
    %1 = arith.muli %0, %c16_i32 : i32
    %c15_i32 = arith.constant 15 : i32
    %2 = arith.minsi %1, %c15_i32 : i32
    %c0_i32 = arith.constant 0 : i32
    %c0_i32_0 = arith.constant 0 : i32
    %c0_i32_1 = arith.constant 0 : i32
    return %arg0, %2, %c0_i32, %c0_i32_0 : i32, i32, i32, i32
  }
  func.func @transform_3(%arg0: i32, %arg1: i32) -> (i32, i32, i32) {
    %c0_i32 = arith.constant 0 : i32
    %c0_i32_0 = arith.constant 0 : i32
    %c0_i32_1 = arith.constant 0 : i32
    %c0_i32_2 = arith.constant 0 : i32
    return %c0_i32, %c0_i32_0, %c0_i32_1 : i32, i32, i32
  }
  func.func @transform_4(%arg0: i32, %arg1: i32) -> (i32, i32, i32, i32) {
    %c0_i32 = arith.constant 0 : i32
    %c0_i32_0 = arith.constant 0 : i32
    %c0_i32_1 = arith.constant 0 : i32
    return %arg0, %arg1, %c0_i32, %c0_i32_0 : i32, i32, i32, i32
  }
  func.func @transform_5(%arg0: i32, %arg1: i32) -> (i32, i32, i32, i32) {
    %c0_i32 = arith.constant 0 : i32
    %c0_i32_0 = arith.constant 0 : i32
    %c0_i32_1 = arith.constant 0 : i32
    return %arg0, %arg1, %c0_i32, %c0_i32_0 : i32, i32, i32, i32
  }
}

module attributes {stable_mosaic.version = 11 : i64} {
  func.func @_bn_relu_kernel(%arg0: i32, %arg1: memref<32x128xbf16, #tpu.memory_space<vmem>>, %arg2: memref<1x8xf32, #tpu.memory_space<vmem>>, %arg3: memref<1x8xf32, #tpu.memory_space<vmem>>, %arg4: memref<32x128xf32, #tpu.memory_space<vmem>>) attributes {dimension_semantics = [#tpu.dimension_semantics<parallel>], iteration_bounds = array<i64: 1>, scalar_prefetch = 0 : i64, scratch_operands = 0 : i64, tpu.core_type = #tpu.core_type<tc>, window_params = [{transform_indices = @transform_0, window_bounds = array<i64: 32, 128>}, {pipeline_mode = #tpu.pipeline_mode<synchronous>, transform_indices = @transform_1, window_bounds = array<i64: 1, 8>}, {pipeline_mode = #tpu.pipeline_mode<synchronous>, transform_indices = @transform_2, window_bounds = array<i64: 1, 8>}, {transform_indices = @transform_3, window_bounds = array<i64: 32, 128>}]} {
    %c0 = arith.constant 0 : index
    %c0_0 = arith.constant 0 : index
    %0 = vector.load %arg2[%c0, %c0_0] : memref<1x8xf32, #tpu.memory_space<vmem>>, vector<1x8xf32>
    %1 = tpu.concatenate %0, %0, %0, %0, %0, %0, %0, %0, %0, %0, %0, %0, %0, %0, %0, %0 in 1 : vector<1x8xf32>, vector<1x8xf32>, vector<1x8xf32>, vector<1x8xf32>, vector<1x8xf32>, vector<1x8xf32>, vector<1x8xf32>, vector<1x8xf32>, vector<1x8xf32>, vector<1x8xf32>, vector<1x8xf32>, vector<1x8xf32>, vector<1x8xf32>, vector<1x8xf32>, vector<1x8xf32>, vector<1x8xf32> -> vector<1x128xf32>
    %c0_1 = arith.constant 0 : index
    %c0_2 = arith.constant 0 : index
    %2 = vector.load %arg3[%c0_1, %c0_2] : memref<1x8xf32, #tpu.memory_space<vmem>>, vector<1x8xf32>
    %3 = tpu.concatenate %2, %2, %2, %2, %2, %2, %2, %2, %2, %2, %2, %2, %2, %2, %2, %2 in 1 : vector<1x8xf32>, vector<1x8xf32>, vector<1x8xf32>, vector<1x8xf32>, vector<1x8xf32>, vector<1x8xf32>, vector<1x8xf32>, vector<1x8xf32>, vector<1x8xf32>, vector<1x8xf32>, vector<1x8xf32>, vector<1x8xf32>, vector<1x8xf32>, vector<1x8xf32>, vector<1x8xf32>, vector<1x8xf32> -> vector<1x128xf32>
    %c0_3 = arith.constant 0 : index
    %c0_4 = arith.constant 0 : index
    %4 = vector.load %arg1[%c0_3, %c0_4] : memref<32x128xbf16, #tpu.memory_space<vmem>>, vector<32x128xbf16>
    %5 = arith.extf %4 : vector<32x128xbf16> to vector<32x128xf32>
    %6 = vector.broadcast %1 : vector<1x128xf32> to vector<32x128xf32>
    %7 = arith.mulf %5, %6 : vector<32x128xf32>
    %8 = vector.broadcast %3 : vector<1x128xf32> to vector<32x128xf32>
    %9 = arith.addf %7, %8 : vector<32x128xf32>
    %cst = arith.constant 0.000000e+00 : f32
    %10 = vector.broadcast %cst : f32 to vector<32x128xf32>
    %11 = arith.maximumf %9, %10 : vector<32x128xf32>
    %c0_5 = arith.constant 0 : index
    %c0_6 = arith.constant 0 : index
    %12 = vector.load %arg4[%c0_5, %c0_6] : memref<32x128xf32, #tpu.memory_space<vmem>>, vector<32x128xf32>
    tpu.vector_store %arg4[%c0_5, %c0_6], %11 {strides = array<i32>} : memref<32x128xf32, #tpu.memory_space<vmem>>, vector<32x128xf32>,
    return
  }
  func.func @transform_0(%arg0: i32) -> (i32, i32) {
    %c0_i32 = arith.constant 0 : i32
    %c0_i32_0 = arith.constant 0 : i32
    return %arg0, %c0_i32 : i32, i32
  }
  func.func @transform_1(%arg0: i32) -> (i32, i32) {
    %c0_i32 = arith.constant 0 : i32
    %c0_i32_0 = arith.constant 0 : i32
    %c0_i32_1 = arith.constant 0 : i32
    return %c0_i32, %c0_i32_0 : i32, i32
  }
  func.func @transform_2(%arg0: i32) -> (i32, i32) {
    %c0_i32 = arith.constant 0 : i32
    %c0_i32_0 = arith.constant 0 : i32
    %c0_i32_1 = arith.constant 0 : i32
    return %c0_i32, %c0_i32_0 : i32, i32
  }
  func.func @transform_3(%arg0: i32) -> (i32, i32) {
    %c0_i32 = arith.constant 0 : i32
    %c0_i32_0 = arith.constant 0 : i32
    return %arg0, %c0_i32 : i32, i32
  }
}

module attributes {stable_mosaic.version = 11 : i64} {
  func.func @_bn_relu_conv_kernel(%arg0: i32, %arg1: i32, %arg2: memref<1x16x16x8xbf16, #tpu.memory_space<vmem>>, %arg3: memref<1x1x16x8xbf16, #tpu.memory_space<vmem>>, %arg4: memref<1x1x16x8xbf16, #tpu.memory_space<vmem>>, %arg5: memref<9x8x8xbf16, #tpu.memory_space<vmem>>, %arg6: memref<1x8xf32, #tpu.memory_space<vmem>>, %arg7: memref<1x8xf32, #tpu.memory_space<vmem>>, %arg8: memref<1x16x16x8xbf16, #tpu.memory_space<vmem>>, %arg9: memref<1x1x2x8xf32, #tpu.memory_space<vmem>>) attributes {dimension_semantics = [#tpu.dimension_semantics<parallel>, #tpu.dimension_semantics<parallel>], iteration_bounds = array<i64: 2, 1>, scalar_prefetch = 0 : i64, scratch_operands = 0 : i64, tpu.core_type = #tpu.core_type<tc>, window_params = [{transform_indices = @transform_0, window_bounds = array<i64: 1, 16, 16, 8>}, {transform_indices = @transform_1, window_bounds = array<i64: 1, 1, 16, 8>}, {transform_indices = @transform_2, window_bounds = array<i64: 1, 1, 16, 8>}, {pipeline_mode = #tpu.pipeline_mode<synchronous>, transform_indices = @transform_3, window_bounds = array<i64: 9, 8, 8>}, {pipeline_mode = #tpu.pipeline_mode<synchronous>, transform_indices = @transform_4, window_bounds = array<i64: 1, 8>}, {pipeline_mode = #tpu.pipeline_mode<synchronous>, transform_indices = @transform_5, window_bounds = array<i64: 1, 8>}, {transform_indices = @transform_6, window_bounds = array<i64: 1, 16, 16, 8>}, {transform_indices = @transform_7, window_bounds = array<i64: 1, 1, 2, 8>}]} {
    %c0 = arith.constant 0 : index
    %c0_0 = arith.constant 0 : index
    %c0_1 = arith.constant 0 : index
    %c0_2 = arith.constant 0 : index
    %0 = vector.load %arg2[%c0, %c0_0, %c0_1, %c0_2] : memref<1x16x16x8xbf16, #tpu.memory_space<vmem>>, vector<1x16x16x8xbf16>
    %1 = vector.shape_cast %0 : vector<1x16x16x8xbf16> to vector<16x16x8xbf16>
    %c0_3 = arith.constant 0 : index
    %c0_4 = arith.constant 0 : index
    %c0_5 = arith.constant 0 : index
    %c0_6 = arith.constant 0 : index
    %2 = vector.load %arg3[%c0_3, %c0_4, %c0_5, %c0_6] : memref<1x1x16x8xbf16, #tpu.memory_space<vmem>>, vector<1x1x16x8xbf16>
    %3 = vector.shape_cast %2 : vector<1x1x16x8xbf16> to vector<1x16x8xbf16>
    %c0_7 = arith.constant 0 : index
    %c0_8 = arith.constant 0 : index
    %c0_9 = arith.constant 0 : index
    %c0_10 = arith.constant 0 : index
    %4 = vector.load %arg4[%c0_7, %c0_8, %c0_9, %c0_10] : memref<1x1x16x8xbf16, #tpu.memory_space<vmem>>, vector<1x1x16x8xbf16>
    %5 = vector.shape_cast %4 : vector<1x1x16x8xbf16> to vector<1x16x8xbf16>
    %c0_11 = arith.constant 0 : index
    %c0_12 = arith.constant 0 : index
    %6 = vector.load %arg6[%c0_11, %c0_12] : memref<1x8xf32, #tpu.memory_space<vmem>>, vector<1x8xf32>
    %c0_13 = arith.constant 0 : index
    %c0_14 = arith.constant 0 : index
    %7 = vector.load %arg7[%c0_13, %c0_14] : memref<1x8xf32, #tpu.memory_space<vmem>>, vector<1x8xf32>
    %8 = arith.extf %1 : vector<16x16x8xbf16> to vector<16x16x8xf32>
    %9 = vector.shape_cast %6 : vector<1x8xf32> to vector<1x1x8xf32>
    %10 = vector.broadcast %9 : vector<1x1x8xf32> to vector<16x16x8xf32>
    %11 = arith.mulf %8, %10 : vector<16x16x8xf32>
    %12 = vector.shape_cast %7 : vector<1x8xf32> to vector<1x1x8xf32>
    %13 = vector.broadcast %12 : vector<1x1x8xf32> to vector<16x16x8xf32>
    %14 = arith.addf %11, %13 : vector<16x16x8xf32>
    %cst = arith.constant 0.000000e+00 : f32
    %15 = vector.broadcast %cst : f32 to vector<16x16x8xf32>
    %16 = arith.maximumf %14, %15 : vector<16x16x8xf32>
    %17 = arith.truncf %16 : vector<16x16x8xf32> to vector<16x16x8xbf16>
    %18 = arith.extf %3 : vector<1x16x8xbf16> to vector<1x16x8xf32>
    %19 = vector.shape_cast %6 : vector<1x8xf32> to vector<1x1x8xf32>
    %20 = vector.broadcast %19 : vector<1x1x8xf32> to vector<1x16x8xf32>
    %21 = arith.mulf %18, %20 : vector<1x16x8xf32>
    %22 = vector.shape_cast %7 : vector<1x8xf32> to vector<1x1x8xf32>
    %23 = vector.broadcast %22 : vector<1x1x8xf32> to vector<1x16x8xf32>
    %24 = arith.addf %21, %23 : vector<1x16x8xf32>
    %cst_15 = arith.constant 0.000000e+00 : f32
    %25 = vector.broadcast %cst_15 : f32 to vector<1x16x8xf32>
    %26 = arith.maximumf %24, %25 : vector<1x16x8xf32>
    %27 = arith.truncf %26 : vector<1x16x8xf32> to vector<1x16x8xbf16>
    %28 = arith.extf %5 : vector<1x16x8xbf16> to vector<1x16x8xf32>
    %29 = vector.shape_cast %6 : vector<1x8xf32> to vector<1x1x8xf32>
    %30 = vector.broadcast %29 : vector<1x1x8xf32> to vector<1x16x8xf32>
    %31 = arith.mulf %28, %30 : vector<1x16x8xf32>
    %32 = vector.shape_cast %7 : vector<1x8xf32> to vector<1x1x8xf32>
    %33 = vector.broadcast %32 : vector<1x1x8xf32> to vector<1x16x8xf32>
    %34 = arith.addf %31, %33 : vector<1x16x8xf32>
    %cst_16 = arith.constant 0.000000e+00 : f32
    %35 = vector.broadcast %cst_16 : f32 to vector<1x16x8xf32>
    %36 = arith.maximumf %34, %35 : vector<1x16x8xf32>
    %37 = arith.truncf %36 : vector<1x16x8xf32> to vector<1x16x8xbf16>
    %c0_i32 = arith.constant 0 : i32
    %38 = arith.cmpi sgt, %arg1, %c0_i32 : i32
    %39 = arith.extui %38 : i1 to i32
    %40 = arith.sitofp %39 : i32 to f32
    %41 = arith.truncf %40 : f32 to bf16
    %42 = vector.broadcast %41 : bf16 to vector<1x16x8xbf16>
    %43 = arith.mulf %27, %42 : vector<1x16x8xbf16>
    %c0_i32_17 = arith.constant 0 : i32
    %44 = arith.cmpi slt, %arg1, %c0_i32_17 : i32
    %45 = arith.extui %44 : i1 to i32
    %46 = arith.sitofp %45 : i32 to f32
    %47 = arith.truncf %46 : f32 to bf16
    %48 = vector.broadcast %47 : bf16 to vector<1x16x8xbf16>
    %49 = arith.mulf %37, %48 : vector<1x16x8xbf16>
    %50 = tpu.concatenate %43, %17, %49 in 0 : vector<1x16x8xbf16>, vector<16x16x8xbf16>, vector<1x16x8xbf16> -> vector<18x16x8xbf16>
    %cst_18 = arith.constant 0.000000e+00 : bf16
    %51 = vector.broadcast %cst_18 : bf16 to vector<18x1x8xbf16>
    %52 = tpu.concatenate %51, %50, %51 in 1 : vector<18x1x8xbf16>, vector<18x16x8xbf16>, vector<18x1x8xbf16> -> vector<18x18x8xbf16>
    %cst_19 = arith.constant 0.000000e+00 : f32
    %53 = vector.broadcast %cst_19 : f32 to vector<256x8xf32>
    %54 = vector.extract_strided_slice %52 {offsets = [0, 0, 0], sizes = [16, 16, 8], strides = [1, 1, 1]} : vector<18x18x8xbf16> to vector<16x16x8xbf16>
    %55 = vector.shape_cast %54 : vector<16x16x8xbf16> to vector<256x8xbf16>
    %c0_20 = arith.constant 0 : index
    %c0_21 = arith.constant 0 : index
    %c0_22 = arith.constant 0 : index
    %56 = vector.load %arg5[%c0_20, %c0_21, %c0_22] : memref<9x8x8xbf16, #tpu.memory_space<vmem>>, vector<1x8x8xbf16>
    %57 = vector.shape_cast %56 : vector<1x8x8xbf16> to vector<8x8xbf16>
    %cst_23 = arith.constant dense<0.000000e+00> : vector<256x8xf32>
    %58 = tpu.matmul %55, %57, %cst_23 {dimension_numbers = #tpu.dot_dimension_numbers<[1], [0], [0], [1], [0, 0, 1, 1], [], []>} : vector<256x8xbf16>, vector<8x8xbf16>, vector<256x8xf32> -> vector<256x8xf32>
    %59 = arith.addf %53, %58 : vector<256x8xf32>
    %60 = vector.extract_strided_slice %52 {offsets = [0, 1, 0], sizes = [16, 16, 8], strides = [1, 1, 1]} : vector<18x18x8xbf16> to vector<16x16x8xbf16>
    %61 = vector.shape_cast %60 : vector<16x16x8xbf16> to vector<256x8xbf16>
    %c1 = arith.constant 1 : index
    %c0_24 = arith.constant 0 : index
    %c0_25 = arith.constant 0 : index
    %62 = vector.load %arg5[%c1, %c0_24, %c0_25] : memref<9x8x8xbf16, #tpu.memory_space<vmem>>, vector<1x8x8xbf16>
    %63 = vector.shape_cast %62 : vector<1x8x8xbf16> to vector<8x8xbf16>
    %cst_26 = arith.constant dense<0.000000e+00> : vector<256x8xf32>
    %64 = tpu.matmul %61, %63, %cst_26 {dimension_numbers = #tpu.dot_dimension_numbers<[1], [0], [0], [1], [0, 0, 1, 1], [], []>} : vector<256x8xbf16>, vector<8x8xbf16>, vector<256x8xf32> -> vector<256x8xf32>
    %65 = arith.addf %59, %64 : vector<256x8xf32>
    %66 = vector.extract_strided_slice %52 {offsets = [0, 2, 0], sizes = [16, 16, 8], strides = [1, 1, 1]} : vector<18x18x8xbf16> to vector<16x16x8xbf16>
    %67 = vector.shape_cast %66 : vector<16x16x8xbf16> to vector<256x8xbf16>
    %c2 = arith.constant 2 : index
    %c0_27 = arith.constant 0 : index
    %c0_28 = arith.constant 0 : index
    %68 = vector.load %arg5[%c2, %c0_27, %c0_28] : memref<9x8x8xbf16, #tpu.memory_space<vmem>>, vector<1x8x8xbf16>
    %69 = vector.shape_cast %68 : vector<1x8x8xbf16> to vector<8x8xbf16>
    %cst_29 = arith.constant dense<0.000000e+00> : vector<256x8xf32>
    %70 = tpu.matmul %67, %69, %cst_29 {dimension_numbers = #tpu.dot_dimension_numbers<[1], [0], [0], [1], [0, 0, 1, 1], [], []>} : vector<256x8xbf16>, vector<8x8xbf16>, vector<256x8xf32> -> vector<256x8xf32>
    %71 = arith.addf %65, %70 : vector<256x8xf32>
    %72 = vector.extract_strided_slice %52 {offsets = [1, 0, 0], sizes = [16, 16, 8], strides = [1, 1, 1]} : vector<18x18x8xbf16> to vector<16x16x8xbf16>
    %73 = vector.shape_cast %72 : vector<16x16x8xbf16> to vector<256x8xbf16>
    %c3 = arith.constant 3 : index
    %c0_30 = arith.constant 0 : index
    %c0_31 = arith.constant 0 : index
    %74 = vector.load %arg5[%c3, %c0_30, %c0_31] : memref<9x8x8xbf16, #tpu.memory_space<vmem>>, vector<1x8x8xbf16>
    %75 = vector.shape_cast %74 : vector<1x8x8xbf16> to vector<8x8xbf16>
    %cst_32 = arith.constant dense<0.000000e+00> : vector<256x8xf32>
    %76 = tpu.matmul %73, %75, %cst_32 {dimension_numbers = #tpu.dot_dimension_numbers<[1], [0], [0], [1], [0, 0, 1, 1], [], []>} : vector<256x8xbf16>, vector<8x8xbf16>, vector<256x8xf32> -> vector<256x8xf32>
    %77 = arith.addf %71, %76 : vector<256x8xf32>
    %78 = vector.extract_strided_slice %52 {offsets = [1, 1, 0], sizes = [16, 16, 8], strides = [1, 1, 1]} : vector<18x18x8xbf16> to vector<16x16x8xbf16>
    %79 = vector.shape_cast %78 : vector<16x16x8xbf16> to vector<256x8xbf16>
    %c4 = arith.constant 4 : index
    %c0_33 = arith.constant 0 : index
    %c0_34 = arith.constant 0 : index
    %80 = vector.load %arg5[%c4, %c0_33, %c0_34] : memref<9x8x8xbf16, #tpu.memory_space<vmem>>, vector<1x8x8xbf16>
    %81 = vector.shape_cast %80 : vector<1x8x8xbf16> to vector<8x8xbf16>
    %cst_35 = arith.constant dense<0.000000e+00> : vector<256x8xf32>
    %82 = tpu.matmul %79, %81, %cst_35 {dimension_numbers = #tpu.dot_dimension_numbers<[1], [0], [0], [1], [0, 0, 1, 1], [], []>} : vector<256x8xbf16>, vector<8x8xbf16>, vector<256x8xf32> -> vector<256x8xf32>
    %83 = arith.addf %77, %82 : vector<256x8xf32>
    %84 = vector.extract_strided_slice %52 {offsets = [1, 2, 0], sizes = [16, 16, 8], strides = [1, 1, 1]} : vector<18x18x8xbf16> to vector<16x16x8xbf16>
    %85 = vector.shape_cast %84 : vector<16x16x8xbf16> to vector<256x8xbf16>
    %c5 = arith.constant 5 : index
    %c0_36 = arith.constant 0 : index
    %c0_37 = arith.constant 0 : index
    %86 = vector.load %arg5[%c5, %c0_36, %c0_37] : memref<9x8x8xbf16, #tpu.memory_space<vmem>>, vector<1x8x8xbf16>
    %87 = vector.shape_cast %86 : vector<1x8x8xbf16> to vector<8x8xbf16>
    %cst_38 = arith.constant dense<0.000000e+00> : vector<256x8xf32>
    %88 = tpu.matmul %85, %87, %cst_38 {dimension_numbers = #tpu.dot_dimension_numbers<[1], [0], [0], [1], [0, 0, 1, 1], [], []>} : vector<256x8xbf16>, vector<8x8xbf16>, vector<256x8xf32> -> vector<256x8xf32>
    %89 = arith.addf %83, %88 : vector<256x8xf32>
    %90 = vector.extract_strided_slice %52 {offsets = [2, 0, 0], sizes = [16, 16, 8], strides = [1, 1, 1]} : vector<18x18x8xbf16> to vector<16x16x8xbf16>
    %91 = vector.shape_cast %90 : vector<16x16x8xbf16> to vector<256x8xbf16>
    %c6 = arith.constant 6 : index
    %c0_39 = arith.constant 0 : index
    %c0_40 = arith.constant 0 : index
    %92 = vector.load %arg5[%c6, %c0_39, %c0_40] : memref<9x8x8xbf16, #tpu.memory_space<vmem>>, vector<1x8x8xbf16>
    %93 = vector.shape_cast %92 : vector<1x8x8xbf16> to vector<8x8xbf16>
    %cst_41 = arith.constant dense<0.000000e+00> : vector<256x8xf32>
    %94 = tpu.matmul %91, %93, %cst_41 {dimension_numbers = #tpu.dot_dimension_numbers<[1], [0], [0], [1], [0, 0, 1, 1], [], []>} : vector<256x8xbf16>, vector<8x8xbf16>, vector<256x8xf32> -> vector<256x8xf32>
    %95 = arith.addf %89, %94 : vector<256x8xf32>
    %96 = vector.extract_strided_slice %52 {offsets = [2, 1, 0], sizes = [16, 16, 8], strides = [1, 1, 1]} : vector<18x18x8xbf16> to vector<16x16x8xbf16>
    %97 = vector.shape_cast %96 : vector<16x16x8xbf16> to vector<256x8xbf16>
    %c7 = arith.constant 7 : index
    %c0_42 = arith.constant 0 : index
    %c0_43 = arith.constant 0 : index
    %98 = vector.load %arg5[%c7, %c0_42, %c0_43] : memref<9x8x8xbf16, #tpu.memory_space<vmem>>, vector<1x8x8xbf16>
    %99 = vector.shape_cast %98 : vector<1x8x8xbf16> to vector<8x8xbf16>
    %cst_44 = arith.constant dense<0.000000e+00> : vector<256x8xf32>
    %100 = tpu.matmul %97, %99, %cst_44 {dimension_numbers = #tpu.dot_dimension_numbers<[1], [0], [0], [1], [0, 0, 1, 1], [], []>} : vector<256x8xbf16>, vector<8x8xbf16>, vector<256x8xf32> -> vector<256x8xf32>
    %101 = arith.addf %95, %100 : vector<256x8xf32>
    %102 = vector.extract_strided_slice %52 {offsets = [2, 2, 0], sizes = [16, 16, 8], strides = [1, 1, 1]} : vector<18x18x8xbf16> to vector<16x16x8xbf16>
    %103 = vector.shape_cast %102 : vector<16x16x8xbf16> to vector<256x8xbf16>
    %c8 = arith.constant 8 : index
    %c0_45 = arith.constant 0 : index
    %c0_46 = arith.constant 0 : index
    %104 = vector.load %arg5[%c8, %c0_45, %c0_46] : memref<9x8x8xbf16, #tpu.memory_space<vmem>>, vector<1x8x8xbf16>
    %105 = vector.shape_cast %104 : vector<1x8x8xbf16> to vector<8x8xbf16>
    %cst_47 = arith.constant dense<0.000000e+00> : vector<256x8xf32>
    %106 = tpu.matmul %103, %105, %cst_47 {dimension_numbers = #tpu.dot_dimension_numbers<[1], [0], [0], [1], [0, 0, 1, 1], [], []>} : vector<256x8xbf16>, vector<8x8xbf16>, vector<256x8xf32> -> vector<256x8xf32>
    %107 = arith.addf %101, %106 : vector<256x8xf32>
    %108 = vector.shape_cast %107 : vector<256x8xf32> to vector<16x16x8xf32>
    %109 = arith.truncf %108 : vector<16x16x8xf32> to vector<16x16x8xbf16>
    %c0_48 = arith.constant 0 : index
    %c0_49 = arith.constant 0 : index
    %c0_50 = arith.constant 0 : index
    %c0_51 = arith.constant 0 : index
    %110 = vector.load %arg8[%c0_48, %c0_49, %c0_50, %c0_51] : memref<1x16x16x8xbf16, #tpu.memory_space<vmem>>, vector<1x16x16x8xbf16>
    %111 = vector.shape_cast %110 : vector<1x16x16x8xbf16> to vector<16x16x8xbf16>
    %112 = vector.shape_cast %109 : vector<16x16x8xbf16> to vector<1x16x16x8xbf16>
    tpu.vector_store %arg8[%c0_48, %c0_49, %c0_50, %c0_51], %112 {strides = array<i32>} : memref<1x16x16x8xbf16, #tpu.memory_space<vmem>>, vector<1x16x16x8xbf16>,
    %cst_52 = arith.constant dense<0.000000e+00> : vector<8xf32>
    %113 = vector.multi_reduction <add>, %107, %cst_52 [0] : vector<256x8xf32> to vector<8xf32>
    %114 = vector.shape_cast %113 : vector<8xf32> to vector<1x8xf32>
    %c0_53 = arith.constant 0 : index
    %c0_54 = arith.constant 0 : index
    %c0_55 = arith.constant 0 : index
    %c0_56 = arith.constant 0 : index
    %115 = vector.load %arg9[%c0_53, %c0_54, %c0_55, %c0_56] : memref<1x1x2x8xf32, #tpu.memory_space<vmem>>, vector<1x1x1x8xf32>
    %116 = vector.shape_cast %115 : vector<1x1x1x8xf32> to vector<1x8xf32>
    %117 = vector.shape_cast %114 : vector<1x8xf32> to vector<1x1x1x8xf32>
    tpu.vector_store %arg9[%c0_53, %c0_54, %c0_55, %c0_56], %117 {strides = array<i32>} : memref<1x1x2x8xf32, #tpu.memory_space<vmem>>, vector<1x1x1x8xf32>,
    %118 = arith.mulf %107, %107 : vector<256x8xf32>
    %cst_57 = arith.constant dense<0.000000e+00> : vector<8xf32>
    %119 = vector.multi_reduction <add>, %118, %cst_57 [0] : vector<256x8xf32> to vector<8xf32>
    %120 = vector.shape_cast %119 : vector<8xf32> to vector<1x8xf32>
    %c0_58 = arith.constant 0 : index
    %c0_59 = arith.constant 0 : index
    %c1_60 = arith.constant 1 : index
    %c0_61 = arith.constant 0 : index
    %121 = vector.load %arg9[%c0_58, %c0_59, %c1_60, %c0_61] : memref<1x1x2x8xf32, #tpu.memory_space<vmem>>, vector<1x1x1x8xf32>
    %122 = vector.shape_cast %121 : vector<1x1x1x8xf32> to vector<1x8xf32>
    %123 = vector.shape_cast %120 : vector<1x8xf32> to vector<1x1x1x8xf32>
    tpu.vector_store %arg9[%c0_58, %c0_59, %c1_60, %c0_61], %123 {strides = array<i32>} : memref<1x1x2x8xf32, #tpu.memory_space<vmem>>, vector<1x1x1x8xf32>,
    return
  }
  func.func @transform_0(%arg0: i32, %arg1: i32) -> (i32, i32, i32, i32) {
    %c0_i32 = arith.constant 0 : i32
    %c0_i32_0 = arith.constant 0 : i32
    %c0_i32_1 = arith.constant 0 : i32
    return %arg0, %arg1, %c0_i32, %c0_i32_0 : i32, i32, i32, i32
  }
  func.func @transform_1(%arg0: i32, %arg1: i32) -> (i32, i32, i32, i32) {
    %c16_i32 = arith.constant 16 : i32
    %0 = arith.muli %arg1, %c16_i32 : i32
    %c1_i32 = arith.constant 1 : i32
    %1 = arith.subi %0, %c1_i32 : i32
    %c0_i32 = arith.constant 0 : i32
    %2 = arith.maxsi %1, %c0_i32 : i32
    %c0_i32_0 = arith.constant 0 : i32
    %c0_i32_1 = arith.constant 0 : i32
    %c0_i32_2 = arith.constant 0 : i32
    return %arg0, %2, %c0_i32_0, %c0_i32_1 : i32, i32, i32, i32
  }
  func.func @transform_2(%arg0: i32, %arg1: i32) -> (i32, i32, i32, i32) {
    %c1_i32 = arith.constant 1 : i32
    %0 = arith.addi %arg1, %c1_i32 : i32
    %c16_i32 = arith.constant 16 : i32
    %1 = arith.muli %0, %c16_i32 : i32
    %c15_i32 = arith.constant 15 : i32
    %2 = arith.minsi %1, %c15_i32 : i32
    %c0_i32 = arith.constant 0 : i32
    %c0_i32_0 = arith.constant 0 : i32
    %c0_i32_1 = arith.constant 0 : i32
    return %arg0, %2, %c0_i32, %c0_i32_0 : i32, i32, i32, i32
  }
  func.func @transform_3(%arg0: i32, %arg1: i32) -> (i32, i32, i32) {
    %c0_i32 = arith.constant 0 : i32
    %c0_i32_0 = arith.constant 0 : i32
    %c0_i32_1 = arith.constant 0 : i32
    %c0_i32_2 = arith.constant 0 : i32
    return %c0_i32, %c0_i32_0, %c0_i32_1 : i32, i32, i32
  }
  func.func @transform_4(%arg0: i32, %arg1: i32) -> (i32, i32) {
    %c0_i32 = arith.constant 0 : i32
    %c0_i32_0 = arith.constant 0 : i32
    %c0_i32_1 = arith.constant 0 : i32
    return %c0_i32, %c0_i32_0 : i32, i32
  }
  func.func @transform_5(%arg0: i32, %arg1: i32) -> (i32, i32) {
    %c0_i32 = arith.constant 0 : i32
    %c0_i32_0 = arith.constant 0 : i32
    %c0_i32_1 = arith.constant 0 : i32
    return %c0_i32, %c0_i32_0 : i32, i32
  }
  func.func @transform_6(%arg0: i32, %arg1: i32) -> (i32, i32, i32, i32) {
    %c0_i32 = arith.constant 0 : i32
    %c0_i32_0 = arith.constant 0 : i32
    %c0_i32_1 = arith.constant 0 : i32
    return %arg0, %arg1, %c0_i32, %c0_i32_0 : i32, i32, i32, i32
  }
  func.func @transform_7(%arg0: i32, %arg1: i32) -> (i32, i32, i32, i32) {
    %c0_i32 = arith.constant 0 : i32
    %c0_i32_0 = arith.constant 0 : i32
    %c0_i32_1 = arith.constant 0 : i32
    return %arg0, %arg1, %c0_i32, %c0_i32_0 : i32, i32, i32, i32
  }
}

</mosaic_0001>

<bundles_post_ra>
// kernel: double_conv.5
= control target key start
LH: loop header
LB: loop body
LE: loop exit
PB: predicated region body
PF: predicated region fallthrough
CT: control target
= control target key end

     0   :  { %v16_v0 = vlaneseq  ;;  %s221_s16 = smov 24   ;;  %s222_s17 = smov 8   ;;  %vm65_vm0 = vcmask 64512   ;;  %vm67_vm1 = vcmask 130048   ;;  %vm69_vm2 = vcmask 195584   ;;  %s324_s1 = inlined_call_operand.vmem [shape: f32[1,8], index: 1, kind: input, shape index: {}]   ;;  %s325_s2 = inlined_call_operand.vmem [shape: f32[1,8], index: 2, kind: input, shape index: {}]   ;;  %s326_s0 = inlined_call_operand.vmem [shape: bf16[32,128], index: 0, kind: input, shape index: {}]   ;;  %s327_s3 = inlined_call_operand.vmem [shape: f32[32,128], index: 3, kind: output, shape index: {}]  }
   0x1   :  { %v259_v2 = vld [vmem:[%s324_s1] sm:$0x1]  ;;  %s223_s1 = smov 16   ;;  %s224_s18 = smov 32   ;;  %vm71_vm3 = vcmask 261120   ;;  %vm73_vm4 = vcmask 326656  }
   0x2   :  { %v17_v1 = vshrl.u32 %v16_v0, 7  ;;  %v266_v4 = vld [vmem:[%s325_s2] sm:$0x1]  ;;  %s225_s19 = smov 40   ;;  %s226_s2 = smov 48   ;;  %vm75_vm5 = vcmask 392192  }
   0x3   :  { %s227_s20 = smov 56   ;;  %s228_s21 = smov 64   ;;  %vm77_vm6 = vcmask 457728   ;;  %vm79_vm7 = vcmask 523264   ;;  %vm81_vm8 = vcmask 588800   ;;  %vm83_vm9 = vcmask 654336  }
   0x4   :  { %v261_v3 = vsub.s32 0, %v17_v1  ;;  %s229_s22 = smov 72   ;;  %s230_s23 = smov 80   ;;  %vm85_vm10 = vcmask 719872   ;;  %vm87_vm11 = vcmask 785408   ;;  %vm89_vm12 = vcmask 850944  }
   0x5   :  { %s231_s24 = smov 88   ;;  %s232_s25 = smov 96   ;;  %vm91_vm13 = vcmask 916480   ;;  %vm93_vm14 = vcmask 982016   ;;  %v198_v54 = vld [vmem:[%s326_s0] sm:$0xff]   ;;  %v205_v59 = vld [vmem:[%s326_s0 + $0x8] sm:$0xff]  }
   0x6   :  { %v19_v5 = vrot.slane %v259_v2, %v261_v3  ;;  %v100_v6 = vrot.slane %v266_v4, %v261_v3  ;;  %s233_s26 = smov 104   ;;  %s234_s27 = smov 112   ;;  %v199_v63 = vunpack.c.l.bf16 %v198_v54 }
   0x7   :  { %s235_s28 = smov 120  }
   0x8   :  { %26 = vrot.lane.b32.xlu1 %v19_v5, %s221_s16  ;;  %20 = vrot.lane.b32.xlu0 %v19_v5, %s222_s17 }
   0xc   :  { %101 = vrot.lane.b32.xlu1 %v100_v6, %s222_s17  ;;  %23 = vrot.lane.b32.xlu0 %v19_v5, %s223_s1 }
  0x10   :  { %104 = vrot.lane.b32.xlu1 %v100_v6, %s223_s1  ;;  %29 = vrot.lane.b32.xlu0 %v19_v5, %s224_s18 }
  0x14   :  { %107 = vrot.lane.b32.xlu1 %v100_v6, %s221_s16  ;;  %32 = vrot.lane.b32.xlu0 %v19_v5, %s225_s19 }
  0x18   :  { %110 = vrot.lane.b32.xlu1 %v100_v6, %s224_s18  ;;  %35 = vrot.lane.b32.xlu0 %v19_v5, %s226_s2 }
  0x1c   :  { %113 = vrot.lane.b32.xlu1 %v100_v6, %s225_s19  ;;  %38 = vrot.lane.b32.xlu0 %v19_v5, %s227_s20 }
  0x20   :  { %116 = vrot.lane.b32.xlu1 %v100_v6, %s226_s2  ;;  %41 = vrot.lane.b32.xlu0 %v19_v5, %s228_s21 }
  0x24   :  { %119 = vrot.lane.b32.xlu1 %v100_v6, %s227_s20  ;;  %44 = vrot.lane.b32.xlu0 %v19_v5, %s229_s22 }
  0x28   :  { %122 = vrot.lane.b32.xlu1 %v100_v6, %s228_s21  ;;  %47 = vrot.lane.b32.xlu0 %v19_v5, %s230_s23 }
  0x2c   :  { %125 = vrot.lane.b32.xlu1 %v100_v6, %s229_s22  ;;  %50 = vrot.lane.b32.xlu0 %v19_v5, %s231_s24 }
  0x30   :  { %128 = vrot.lane.b32.xlu1 %v100_v6, %s230_s23  ;;  %53 = vrot.lane.b32.xlu0 %v19_v5, %s232_s25 }
  0x34   :  { %131 = vrot.lane.b32.xlu1 %v100_v6, %s231_s24  ;;  %56 = vrot.lane.b32.xlu0 %v19_v5, %s233_s26 }
  0x38   :  { %134 = vrot.lane.b32.xlu1 %v100_v6, %s232_s25  ;;  %59 = vrot.lane.b32.xlu0 %v19_v5, %s234_s27 }
  0x3c   :  { %137 = vrot.lane.b32.xlu1 %v100_v6, %s233_s26  ;;  %62 = vrot.lane.b32.xlu0 %v19_v5, %s235_s28  ;;  %v204_v5 = vunpack.c.h.bf16 %v205_v59 }
  0x40   :  { %140 = vrot.lane.b32.xlu0 %v100_v6, %s234_s27  ;;  %143 = vrot.lane.b32.xlu1 %v100_v6, %s235_s28 }
  0x7a   :  { %v27_v7 = vpop.permute.xlu1 %26  ;;  %v21_v8 = vpop.permute.xlu0 %20 }
  0x7b   :  { %v66_v27 = vsel %vm65_vm0, %v259_v2, %v21_v8  ;;  %v200_v2 = vunpack.c.h.bf16 %v198_v54 }
  0x7e   :  { %v102_v9 = vpop.permute.xlu1 %101  ;;  %v24_v10 = vpop.permute.xlu0 %23 }
  0x7f   :  { %v68_v28 = vsel %vm67_vm1, %v66_v27, %v24_v10  ;;  %v146_v34 = vsel %vm65_vm0, %v266_v4, %v102_v9  ;;  %v203_v4 = vunpack.c.l.bf16 %v205_v59 }
  0x80   :  { %v70_v31 = vsel %vm69_vm2, %v68_v28, %v27_v7 }
  0x82   :  { %v105_v11 = vpop.permute.xlu1 %104  ;;  %v30_v12 = vpop.permute.xlu0 %29 }
  0x83   :  { %v72_v32 = vsel %vm71_vm3, %v70_v31, %v30_v12  ;;  %v147_v38 = vsel %vm67_vm1, %v146_v34, %v105_v11 }
  0x86   :  { %v108_v13 = vpop.permute.xlu1 %107  ;;  %v33_v14 = vpop.permute.xlu0 %32 }
  0x87   :  { %v74_v33 = vsel %vm73_vm4, %v72_v32, %v33_v14  ;;  %v148_v40 = vsel %vm69_vm2, %v147_v38, %v108_v13 }
  0x8a   :  { %v111_v15 = vpop.permute.xlu1 %110  ;;  %v36_v16 = vpop.permute.xlu0 %35 }
  0x8b   :  { %v76_v35 = vsel %vm75_vm5, %v74_v33, %v36_v16  ;;  %v149_v42 = vsel %vm71_vm3, %v148_v40, %v111_v15 }
  0x8e   :  { %v114_v17 = vpop.permute.xlu1 %113  ;;  %v39_v18 = vpop.permute.xlu0 %38 }
  0x8f   :  { %v78_v39 = vsel %vm77_vm6, %v76_v35, %v39_v18  ;;  %v150_v44 = vsel %vm73_vm4, %v149_v42, %v114_v17 }
  0x92   :  { %v117_v19 = vpop.permute.xlu1 %116  ;;  %v42_v20 = vpop.permute.xlu0 %41 }
  0x93   :  { %v80_v41 = vsel %vm79_vm7, %v78_v39, %v42_v20  ;;  %v151_v48 = vsel %vm75_vm5, %v150_v44, %v117_v19 }
  0x96   :  { %v120_v21 = vpop.permute.xlu1 %119  ;;  %v45_v22 = vpop.permute.xlu0 %44 }
  0x97   :  { %v82_v43 = vsel %vm81_vm8, %v80_v41, %v45_v22  ;;  %v152_v50 = vsel %vm77_vm6, %v151_v48, %v120_v21 }
  0x9a   :  { %v123_v23 = vpop.permute.xlu1 %122  ;;  %v48_v24 = vpop.permute.xlu0 %47 }
  0x9b   :  { %v84_v45 = vsel %vm83_vm9, %v82_v43, %v48_v24  ;;  %v153_v52 = vsel %vm79_vm7, %v152_v50, %v123_v23 }
  0x9e   :  { %v126_v25 = vpop.permute.xlu1 %125  ;;  %v51_v26 = vpop.permute.xlu0 %50 }
  0x9f   :  { %v86_v49 = vsel %vm85_vm10, %v84_v45, %v51_v26  ;;  %v154_v55 = vsel %vm81_vm8, %v153_v52, %v126_v25 }
  0xa2   :  { %v129_v29 = vpop.permute.xlu1 %128  ;;  %v54_v30 = vpop.permute.xlu0 %53 }
  0xa3   :  { %v88_v51 = vsel %vm87_vm11, %v86_v49, %v54_v30  ;;  %v155_v60 = vsel %vm83_vm9, %v154_v55, %v129_v29 }
  0xa6   :  { %v132_v36 = vpop.permute.xlu1 %131  ;;  %v57_v37 = vpop.permute.xlu0 %56 }
  0xa7   :  { %v90_v53 = vsel %vm89_vm12, %v88_v51, %v57_v37  ;;  %v156_v62 = vsel %vm85_vm10, %v155_v60, %v132_v36 }
  0xaa   :  { %v135_v46 = vpop.permute.xlu1 %134  ;;  %v60_v47 = vpop.permute.xlu0 %59 }
  0xab   :  { %v92_v56 = vsel %vm91_vm13, %v90_v53, %v60_v47  ;;  %v157_v1 = vsel %vm87_vm11, %v156_v62, %v135_v46 }
  0xae   :  { %v138_v57 = vpop.permute.xlu1 %137  ;;  %v63_v58 = vpop.permute.xlu0 %62 }
  0xaf   :  { %v94_v61 = vsel %vm93_vm14, %v92_v56, %v63_v58  ;;  %v158_v6 = vsel %vm89_vm12, %v157_v1, %v138_v57 }
  0xb0   :  { %v172_v0 = vrot.slane %v94_v61, %v261_v3 }
  0xb2   :  { %v141_v7 = vpop.permute.xlu0 %140  ;;  %v144_v8 = vpop.permute.xlu1 %143  ;;  %v173_v10 = vmul.f32 %v199_v63, %v172_v0  ;;  %v174_v12 = vmul.f32 %v200_v2, %v172_v0  ;;  %v175_v13 = vmul.f32 %v203_v4, %v172_v0  ;;  %v176_v14 = vmul.f32 %v204_v5, %v172_v0 }
  0xb3   :  { %v159_v9 = vsel %vm91_vm13, %v158_v6, %v141_v7 }
  0xb4   :  { %v160_v11 = vsel %vm93_vm14, %v159_v9, %v144_v8 }
  0xb5   :  { %v180_v15 = vrot.slane %v160_v11, %v261_v3 }
  0xb7   :  { %v181_v16 = vadd.f32 %v180_v15, %v173_v10  ;;  %v182_v17 = vadd.f32 %v180_v15, %v174_v12  ;;  %v183_v18 = vadd.f32 %v180_v15, %v175_v13  ;;  %v184_v19 = vadd.f32 %v180_v15, %v176_v14 }
  0xb9   :  { %v185_v20 = vmax.f32 %v181_v16, 0.0  ;;  %v186_v21 = vmax.f32 %v182_v17, 0.0  ;;  %v187_v22 = vmax.f32 %v183_v18, 0.0  ;;  %v188_v23 = vmax.f32 %v184_v19, 0.0 }
  0xbb   :  { %189 = vst [vmem:[%s327_s3] sm:$0xff] %v185_v20  ;;  %190 = vst [vmem:[%s327_s3 + $0x8] sm:$0xff] %v186_v21 }
  0xbc   :  { %191 = vst [vmem:[%s327_s3 + $0x10] sm:$0xff] %v187_v22  ;;  %192 = vst [vmem:[%s327_s3 + $0x18] sm:$0xff] %v188_v23 }

// kernel: double_conv.3
= control target key start
LH: loop header
LB: loop body
LE: loop exit
PB: predicated region body
PF: predicated region fallthrough
CT: control target
= control target key end

     0   :  { %s4540_s18 = smov 0   ;;  %s4542_s19 = smov 0   ;;  %s5445_s0 = inlined_call_operand.vmem [shape: bf16[2,16,16,4], index: 0, kind: input, shape index: {}, may-alias: {0,1,2}]   ;;  %s5446_s1 = inlined_call_operand.vmem [shape: bf16[2,16,16,4], index: 1, kind: input, shape index: {}, may-alias: {0,1,2}]   ;;  %s5447_s2 = inlined_call_operand.vmem [shape: bf16[2,16,16,4], index: 2, kind: input, shape index: {}, may-alias: {0,1,2}]   ;;  %s5448_s3 = inlined_call_operand.vmem [shape: bf16[9,4,8], index: 3, kind: input, shape index: {}]   ;;  %s5449_s4 = inlined_call_operand.vmem [shape: bf16[2,16,16,8], index: 4, kind: output, shape index: {0}]   ;;  %s5450_s5 = inlined_call_operand.vmem [shape: f32[2,1,2,8], index: 5, kind: output, shape index: {1}]  }
   0x1   :  { %s4544_s20 = smov 0  }
   0x2 LB: > { %s28_s21 = sadd.s32 1, %s4504_s19  ;;  %p3467_p0 = scmp.ge.s32.totalorder %s4508_s20, 1  ;;  %s4508_s20 = sphi %s4544_s20, %s16_s20   ;;  %s4504_s19 = sphi %s4542_s19, %s5454_s19   ;;  %s4500_s18 = sphi %s4540_s18, %s5453_s18  }
   0x3   : > { %p30_p1 = scmp.ge.s32.totalorder %s28_s21, 2  ;;  %p278_p2 = scmp.lt.s32.totalorder %s4508_s20, 3 }
   0x5   : > { %s5456_s21 = smov (%p30_p1, %s28_s21), 0  ;;  %p279_p3 = pnand %p3467_p0, %p278_p2 }
   0x6   : > { %vm1023_vm0 = vcmask (!%p279_p3), 1041408   ;;  %v4561_v0 = vld [vmem:[%s5448_s3 + $0x8] sm:$0x3] (!%p279_p3)  ;;  %v3495_v1 = vld [vmem:[%s5448_s3 + $0x2] sm:$0x3] (!%p279_p3)  ;;  %p350_p4 = scmp.lt.s32.totalorder (!%p279_p3), %s4500_s18, 1 }
   0x7   : > { %282 = sbr.rel (%p279_p3) target bundleno = 558 (0x22e), region = 36  ;;  %4440 = vmatprep.subr.msk.bf16.mxu0 (!%p279_p3), %vm1023_vm0, %v4561_v0  ;;  %4436 = vmatprep.subr.msk.bf16.mxu1 (!%p279_p3), %vm1023_vm0, %v3495_v1  ;;  %v4571_v2 = vsel (!%p279_p3), %vm1023_vm0, %v4561_v0, 0  ;;  %v1025_v3 = vsel (!%p279_p3), %vm1023_vm0, %v3495_v1, 0  ;;  %v778_v4 = vld [vmem:[%s5448_s3] sm:$0x3] (!%p279_p3)  ;;  %vm739_vm2 = vcmask (!%p279_p3), 1040384  }
   0x8   : > { %4009 = vmatpush3.bf16.msra.mxu0 (!%p279_p3), %v4571_v2  ;;  %3873 = vmatpush3.bf16.msra.mxu1 (!%p279_p3), %v1025_v3  ;;  %v3579_v5 = vld [vmem:[%s5448_s3 + $0xa] sm:$0x3] (!%p279_p3)  ;;  %vm740_vm1 = vsmask.f32 (!%p279_p3), 256  ;;  %vm779_vm3 = vsmask.f32 (!%p279_p3), 7424 }
   0x9   : > { %4437 = vmatprep.subr.msk.bf16.mxu1 (!%p279_p3), %vm1023_vm0, %v778_v4  ;;  %4442 = vmatprep.subr.msk.bf16.mxu0 (!%p279_p3), %vm1023_vm0, %v3579_v5  ;;  %vm4602_vm4 = vmand (!%p279_p3), %vm739_vm2, %vm740_vm1  ;;  %vm974_vm5 = vcmask (!%p279_p3), 31744   ;;  %v4611_v23 = vsel (!%p279_p3), %vm1023_vm0, %v778_v4, 0  ;;  %v2135_v24 = vsel (!%p279_p3), %vm1023_vm0, %v3579_v5, 0  ;;  %v4646_v58 = vld [vmem:[%s5448_s3 + $0xc] sm:$0x3] (!%p279_p3)  ;;  %vm1416_vm6 = vcmask (!%p279_p3), 1046528  }
   0xa   : > { %vm3077_vm7 = vcmask (!%p279_p3), 60416   ;;  %vm3110_vm8 = vcmask (!%p279_p3), 64512   ;;  %vm3180_vm9 = vcmask (!%p279_p3), 57344  }
   0xe   : > { %s5458_s18 = smov (!%p350_p4, %s4500_s18), 1 }
   0xf   : > { %s4585_s30 = sshll.u32 %s5458_s18, 7 }
  0x10   : > { %s4592_s8 = scalar_lea.vmem %s5445_s0, %s4585_s30  ;;  %s372_s11 = scalar_lea.vmem %s5446_s1, %s4585_s30 }
  0x11   : > { %v4470_v6 = vld [vmem:[%s4592_s8] sm:$0xff]   ;;  %v4471_v7 = vld [vmem:[%s4592_s8 + $0x8] sm:$0xff]   ;;  %v4472_v17 = vld [vmem:[%s4592_s8 + $0x10] sm:$0xff]   ;;  %s3684_s26 = sadd.s32 120, %s4585_s30 }
  0x12   : > { %v585_v8 = vshrl.u32 %v4470_v6, 16  ;;  %v588_v9 = vshll.u32 %v4470_v6, 16  ;;  %v445_v10 = vld [vmem:[%s372_s11] sm:$0xf]  ;;  %v446_v11 = vld [vmem:[%s372_s11 + $0x4] sm:$0xf]  ;;  %s389_s29 = scalar_lea.vmem %s5447_s2, %s3684_s26 }
  0x13   : > { %v592_v12 = vshrl.u32 %v4471_v7, 16  ;;  %v595_v13 = vshll.u32 %v4471_v7, 16  ;;  %v466_v14 = vmul.bf16 0.0, %v445_v10  ;;  %v467_v15 = vmul.bf16 0.0, %v446_v11  ;;  %v4473_v29 = vld [vmem:[%s4592_s8 + $0x18] sm:$0xff]   ;;  %v4474_v37 = vld [vmem:[%s4592_s8 + $0x20] sm:$0xff]  }
  0x14   : > { %v587_v16 = vrot.slane %v585_v8, 7  ;;  %v599_v28 = vshrl.u32 %v4472_v17, 16  ;;  %v602_v33 = vshll.u32 %v4472_v17, 16  ;;  %v606_v45 = vshrl.u32 %v4473_v29, 16  ;;  %v4475_v63 = vld [vmem:[%s4592_s8 + $0x28] sm:$0xff]  }
  0x15   : > { %v594_v19 = vrot.slane %v592_v12, 7  ;;  %v3477_v20 = vcombine.low %v466_v14, %v467_v15  ;;  %v609_v49 = vshll.u32 %v4473_v29, 16  ;;  %v613_v53 = vshrl.u32 %v4474_v37, 16  ;;  %v4476_v14 = vld [vmem:[%s4592_s8 + $0x30] sm:$0xff]  }
  0x16   : > { %v590_v21 = vor.u32 %v588_v9, %v587_v16  ;;  %v4608_v22 = vsel %vm4602_vm4, %v587_v16, 0  ;;  %v601_v44 = vrot.slane %v599_v28, 7  ;;  %v608_v57 = vrot.slane %v606_v45, 7 }
  0x17   : > { %v800_v25 = vshll.u32 %v4608_v22, 16  ;;  %v597_v26 = vor.u32 %v595_v13, %v594_v19  ;;  %v4617_v27 = vsel %vm4602_vm4, %v594_v19, 0  ;;  %v578_v32 = vshrl.u32 %v3477_v20, 16 }
  0x18   : > { %v4622_v30 = vsel %vm4602_vm4, 0, %v590_v21  ;;  %v812_v31 = vshll.u32 %v4617_v27, 16  ;;  %v581_v43 = vshll.u32 %v3477_v20, 16  ;;  %v604_v55 = vor.u32 %v602_v33, %v601_v44 }
  0x19   : > { %v793_v34 = vshrl.u32 %v4622_v30, 16  ;;  %v795_v35 = vshll.u32 %v4622_v30, 16  ;;  %v4629_v36 = vsel %vm4602_vm4, 0, %v597_v26  ;;  %v802_v38 = vrot.slane %v800_v25, 1 }
  0x1a   : > { %v805_v39 = vshrl.u32 %v4629_v36, 16  ;;  %v807_v40 = vshll.u32 %v4629_v36, 16  ;;  %v580_v41 = vrot.slane %v578_v32, 7  ;;  %v814_v47 = vrot.slane %v812_v31, 1  ;;  %v4690_v32 = vld [vmem:[%s5448_s3 + $0x4] sm:$0x3] }
  0x1b   : > { %v797_v42 = vrot.slane %v795_v35, 1  ;;  %v4641_v56 = vsel %vm4602_vm4, %v601_v44, 0  ;;  %v4663_v5 = vsel %vm4602_vm4, 0, %v604_v55  ;;  %v611_v9 = vor.u32 %v609_v49, %v608_v57  ;;  %v4478_v55 = vld [vmem:[%s4592_s8 + $0x40] sm:$0xff]  }
  0x1c   : > { %v809_v46 = vrot.slane %v807_v40, 1  ;;  %v4636_v48 = vsel %vm4602_vm4, %v580_v41, 0  ;;  %v583_v51 = vor.u32 %v581_v43, %v580_v41  ;;  %v824_v62 = vshll.u32 %v4641_v56, 16 }
  0x1d   : > { %v798_v50 = vor.u32 %v797_v42, %v793_v34  ;;  %v788_v52 = vshll.u32 %v4636_v48, 16  ;;  %v817_v6 = vshrl.u32 %v4663_v5, 16  ;;  %v819_v7 = vshll.u32 %v4663_v5, 16 }
  0x1e   : > { %v810_v54 = vor.u32 %v809_v46, %v805_v39  ;;  %v4651_v60 = vsel %vm4602_vm4, 0, %v583_v51  ;;  %v826_v8 = vrot.slane %v824_v62, 1  ;;  %v4671_v11 = vsel %vm4602_vm4, %v608_v57, 0 }
  0x1f   : > { %v803_v59 = vsel %vm779_vm3, %v798_v50, %v802_v38  ;;  %v790_v61 = vrot.slane %v788_v52, 1  ;;  %v781_v3 = vshrl.u32 %v4651_v60, 16  ;;  %v783_v4 = vshll.u32 %v4651_v60, 16  ;;  %v4477_v38 = vld [vmem:[%s4592_s8 + $0x38] sm:$0xff]  }
  0x20   : > { %4010 = vmatprep.mubr.msk.bf16.mxu0 %vm974_vm5, %v803_v59  ;;  %v4657_v1 = vsel %vm779_vm3, %v810_v54, %v814_v47  ;;  %v615_v12 = vrot.slane %v613_v53, 7  ;;  %v616_v13 = vshll.u32 %v4474_v37, 16  ;;  %v821_v15 = vrot.slane %v819_v7, 1 }
  0x21   : > { %4011 = vmatmul.mubr.msk.bf16.vlgmr.msra.gmra.mrb[0].mxu0 %vm974_vm5, %v4657_v1  ;;  %v785_v10 = vrot.slane %v783_v4, 1  ;;  %v4676_v16 = vsel %vm4602_vm4, 0, %v611_v9  ;;  %v836_v17 = vshll.u32 %v4671_v11, 16  ;;  %v620_v19 = vshrl.u32 %v4475_v63, 16 }
  0x22   : > { %4043 = vmatpush3.bf16.msra.mxu0 %v2135_v24  ;;  %v829_v21 = vshrl.u32 %v4676_v16, 16  ;;  %v831_v24 = vshll.u32 %v4676_v16, 16  ;;  %v618_v25 = vor.u32 %v616_v13, %v615_v12  ;;  %v822_v26 = vor.u32 %v821_v15, %v817_v6 }
  0x23   : > { %4443 = vmatprep.subr.msk.bf16.mxu0 %vm1023_vm0, %v4646_v58  ;;  %v786_v20 = vor.u32 %v785_v10, %v781_v3  ;;  %v838_v28 = vrot.slane %v836_v17, 1  ;;  %v4685_v29 = vsel %vm4602_vm4, %v615_v12, 0  ;;  %v622_v31 = vrot.slane %v620_v19, 7 }
  0x24   : > { %v833_v34 = vrot.slane %v831_v24, 1  ;;  %v4695_v35 = vsel %vm4602_vm4, 0, %v618_v25  ;;  %v848_v37 = vshll.u32 %v4685_v29, 16  ;;  %v4701_v39 = vsel %vm779_vm3, %v822_v26, %v826_v8 }
  0x25   : > { %v791_v33 = vsel %vm779_vm3, %v786_v20, %v790_v61  ;;  %v841_v40 = vshrl.u32 %v4695_v35, 16  ;;  %v843_v41 = vshll.u32 %v4695_v35, 16  ;;  %v623_v42 = vshll.u32 %v4475_v63, 16  ;;  %4014 = vmatprep.mubr.msk.bf16.mxu0 %vm974_vm5, %v4701_v39 }
  0x26   : > { %3874 = vmatprep.mubr.msk.bf16.mxu1 %vm974_vm5, %v791_v33  ;;  %v834_v43 = vor.u32 %v833_v34, %v829_v21  ;;  %v4710_v44 = vsel %vm4602_vm4, %v622_v31, 0  ;;  %v627_v45 = vshrl.u32 %v4476_v14, 16  ;;  %v850_v47 = vrot.slane %v848_v37, 1 }
  0x27   : > { %3875 = vmatmul.mubr.msk.bf16.vlgmr.msra.gmra.mrb[0].mxu1 %vm974_vm5, %v803_v59  ;;  %v845_v46 = vrot.slane %v843_v41, 1  ;;  %v625_v49 = vor.u32 %v623_v42, %v622_v31  ;;  %v630_v50 = vshll.u32 %v4476_v14, 16  ;;  %v860_v52 = vshll.u32 %v4710_v44, 16  ;;  %v4480_v41 = vld [vmem:[%s4592_s8 + $0x50] sm:$0xff]  }
  0x28   : > { %3907 = vmatpush3.bf16.msra.mxu1 %v4611_v23  ;;  %3878 = vmatprep.mubr.msk.bf16.mxu1 %vm974_vm5, %v4657_v1  ;;  %v4716_v51 = vsel %vm779_vm3, %v834_v43, %v838_v28  ;;  %v629_v53 = vrot.slane %v627_v45, 7  ;;  %v634_v54 = vshrl.u32 %v4477_v38, 16  ;;  %v637_v59 = vshll.u32 %v4477_v38, 16 }
  0x29   : > { %4438 = vmatprep.subr.msk.bf16.mxu1 %vm1023_vm0, %v4690_v32  ;;  %4015 = vmatmul.mubr.msk.bf16.gmra.mrb[4].mxu0 %vm974_vm5, %v4716_v51  ;;  %v846_v23 = vor.u32 %v845_v46, %v841_v40  ;;  %v4726_v57 = vsel %vm4602_vm4, 0, %v625_v49  ;;  %v862_v9 = vrot.slane %v860_v52, 1  ;;  %v641_v12 = vshrl.u32 %v4478_v55, 16  ;;  %v4479_v40 = vld [vmem:[%s4592_s8 + $0x48] sm:$0xff]  }
  0x2a   : > { %v853_v61 = vshrl.u32 %v4726_v57, 16  ;;  %v855_v62 = vshll.u32 %v4726_v57, 16  ;;  %v632_v63 = vor.u32 %v630_v50, %v629_v53  ;;  %v4732_v3 = vsel %vm4602_vm4, %v629_v53, 0  ;;  %v4481_v53 = vld [vmem:[%s4592_s8 + $0x58] sm:$0xff]  }
  0x2b   : > { %v4735_v4 = vsel %vm779_vm3, %v846_v23, %v850_v47  ;;  %v872_v6 = vshll.u32 %v4732_v3, 16  ;;  %v636_v7 = vrot.slane %v634_v54, 7  ;;  %v643_v21 = vrot.slane %v641_v12, 7 }
  0x2c   : > { %4018 = vmatprep.mubr.msk.bf16.mxu0 %vm974_vm5, %v4735_v4  ;;  %v857_v8 = vrot.slane %v855_v62, 1  ;;  %v4742_v10 = vsel %vm4602_vm4, 0, %v632_v63  ;;  %v644_v28 = vshll.u32 %v4478_v55, 16  ;;  %v1421_v45 = vrot.slane %v4608_v22, 1 }
  0x2d   : > { %v865_v13 = vshrl.u32 %v4742_v10, 16  ;;  %v867_v14 = vshll.u32 %v4742_v10, 16  ;;  %v639_v15 = vor.u32 %v637_v59, %v636_v7  ;;  %v874_v19 = vrot.slane %v872_v6, 1 }
  0x2e   : > { %v858_v17 = vor.u32 %v857_v8, %v853_v61  ;;  %v4750_v20 = vsel %vm4602_vm4, %v636_v7, 0  ;;  %v646_v38 = vor.u32 %v644_v28, %v643_v21  ;;  %v1420_v47 = vrot.slane %v4622_v30, 1  ;;  %v4482_v28 = vld [vmem:[%s4592_s8 + $0x60] sm:$0xff]  }
  0x2f   : > { %3879 = vmatmul.mubr.msk.bf16.gmra.mrb[4].mxu1 %vm974_vm5, %v4701_v39  ;;  %v869_v24 = vrot.slane %v867_v14, 1  ;;  %v4756_v25 = vsel %vm4602_vm4, 0, %v639_v15  ;;  %v884_v26 = vshll.u32 %v4750_v20, 16  ;;  %v4783_v22 = vsel %vm4602_vm4, %v643_v21, 0 }
  0x30   : > { %3882 = vmatprep.mubr.msk.bf16.mxu1 %vm974_vm5, %v4716_v51  ;;  %v4760_v31 = vsel %vm779_vm3, %v858_v17, %v862_v9  ;;  %v877_v33 = vshrl.u32 %v4756_v25, 16  ;;  %v879_v34 = vshll.u32 %v4756_v25, 16  ;;  %v4775_v49 = vsel %vm4602_vm4, 0, %v646_v38 }
  0x31   : > { %4019 = vmatmul.mubr.msk.bf16.gmra.mrb[8].mxu0 %vm974_vm5, %v4760_v31  ;;  %v870_v37 = vor.u32 %v869_v24, %v865_v13  ;;  %v886_v43 = vrot.slane %v884_v26, 1  ;;  %v891_v52 = vshll.u32 %v4775_v49, 16  ;;  %v648_v54 = vshrl.u32 %v4479_v40, 16 }
  0x32   : > { %v881_v42 = vrot.slane %v879_v34, 1  ;;  %v651_v55 = vshll.u32 %v4479_v40, 16  ;;  %v655_v23 = vshrl.u32 %v4480_v41, 16  ;;  %v1424_v59 = vrot.slane %v4617_v27, 1 }
  0x33   : > { %v4770_v46 = vsel %vm779_vm3, %v870_v37, %v874_v19  ;;  %v1423_v62 = vrot.slane %v4629_v36, 1  ;;  %v658_v63 = vshll.u32 %v4480_v41, 16  ;;  %v4795_v6 = vsel %vm1416_vm6, %v1420_v47, %v1421_v45 }
  0x34   : > { %4022 = vmatprep.mubr.msk.bf16.mxu0 %vm974_vm5, %v4770_v46  ;;  %v882_v50 = vor.u32 %v881_v42, %v877_v33  ;;  %v650_v7 = vrot.slane %v648_v54, 7  ;;  %v657_v8 = vrot.slane %v655_v23, 7  ;;  %v889_v27 = vshrl.u32 %v4775_v49, 16 }
  0x35   : > { %v893_v9 = vrot.slane %v891_v52, 1  ;;  %v896_v12 = vshll.u32 %v4783_v22, 16  ;;  %v662_v13 = vshrl.u32 %v4481_v53, 16  ;;  %v665_v19 = vshll.u32 %v4481_v53, 16 }
  0x36   : > { %v4789_v61 = vsel %vm779_vm3, %v882_v50, %v886_v43  ;;  %v653_v14 = vor.u32 %v651_v55, %v650_v7  ;;  %v4803_v15 = vsel %vm4602_vm4, %v650_v7, 0  ;;  %v660_v17 = vor.u32 %v658_v63, %v657_v8  ;;  %v4483_v55 = vld [vmem:[%s4592_s8 + $0x68] sm:$0xff]  }
  0x37   : > { %3883 = vmatmul.mubr.msk.bf16.gmra.mrb[8].mxu1 %vm974_vm5, %v4735_v4  ;;  %v4808_v21 = vsel %vm1416_vm6, %v1423_v62, %v1424_v59  ;;  %v2336_v24 = vsel %vm1023_vm0, %v4646_v58, 0  ;;  %v1426_v26 = vrot.slane %v4663_v5, 1  ;;  %v1427_v33 = vrot.slane %v4641_v56, 1 }
  0x38   : > { %3886 = vmatprep.mubr.msk.bf16.mxu1 %vm974_vm5, %v4760_v31  ;;  %v4817_v34 = vsel %vm4602_vm4, 0, %v653_v14  ;;  %v4821_v37 = vsel %vm4602_vm4, 0, %v660_v17  ;;  %v664_v38 = vrot.slane %v662_v13, 7  ;;  %v1429_v40 = vrot.slane %v4676_v16, 1 }
  0x39   : > { %4023 = vmatmul.mubr.msk.bf16.gmra.mrb[12].mxu0 %vm974_vm5, %v4789_v61  ;;  %v901_v41 = vshrl.u32 %v4817_v34, 16  ;;  %v903_v58 = vshll.u32 %v4817_v34, 16  ;;  %v908_v42 = vshll.u32 %v4803_v15, 16  ;;  %v894_v43 = vor.u32 %v893_v9, %v889_v27  ;;  %v4854_v9 = vld [vmem:[%s5448_s3 + $0xe] sm:$0x3] }
  0x3a   : > { %4044 = vmatprep.mubr.msk.bf16.mxu0 %vm974_vm5, %v4795_v6  ;;  %v898_v56 = vrot.slane %v896_v12, 1  ;;  %v1430_v45 = vrot.slane %v4671_v11, 1  ;;  %v667_v47 = vor.u32 %v665_v19, %v664_v38  ;;  %v4832_v52 = vsel %vm4602_vm4, %v657_v8, 0  ;;  %v4484_v19 = vld [vmem:[%s4592_s8 + $0x70] sm:$0xff]  }
  0x3b   : > { %v905_v50 = vrot.slane %v903_v58, 1  ;;  %v915_v53 = vshll.u32 %v4821_v37, 16  ;;  %v669_v54 = vshrl.u32 %v4482_v28, 16  ;;  %v4839_v23 = vsel %vm1416_vm6, %v1426_v26, %v1427_v33 }
  0x3c   : > { %v4843_v11 = vsel %vm4602_vm4, 0, %v667_v47  ;;  %v4847_v59 = vsel %vm4602_vm4, %v664_v38, 0  ;;  %v672_v62 = vshll.u32 %v4482_v28, 16  ;;  %v910_v7 = vrot.slane %v908_v42, 1 }
  0x3d   : > { %v906_v63 = vor.u32 %v905_v50, %v901_v41  ;;  %v1432_v8 = vrot.slane %v4695_v35, 1  ;;  %v927_v27 = vshll.u32 %v4843_v11, 16  ;;  %v4859_v12 = vsel %vm779_vm3, %v894_v43, %v898_v56 }
  0x3e   : > { %v920_v13 = vshll.u32 %v4832_v52, 16  ;;  %v1433_v14 = vrot.slane %v4685_v29, 1  ;;  %v671_v17 = vrot.slane %v669_v54, 7  ;;  %v913_v26 = vshrl.u32 %v4821_v37, 16 }
  0x3f   : > { %3887 = vmatmul.mubr.msk.bf16.gmra.mrb[12].mxu1 %vm974_vm5, %v4770_v46  ;;  %v917_v28 = vrot.slane %v915_v53, 1  ;;  %v932_v33 = vshll.u32 %v4847_v59, 16  ;;  %v676_v38 = vshrl.u32 %v4483_v55, 16  ;;  %v925_v41 = vshrl.u32 %v4843_v11, 16 }
  0x40   : > { %3890 = vmatprep.mubr.msk.bf16.mxu1 %vm974_vm5, %v4789_v61  ;;  %v929_v58 = vrot.slane %v927_v27, 1  ;;  %v674_v42 = vor.u32 %v672_v62, %v671_v17  ;;  %v679_v43 = vshll.u32 %v4483_v55, 16  ;;  %v4872_v29 = vsel %vm779_vm3, %v906_v63, %v910_v7 }
  0x41   : > { %4045 = vmatmul.mubr.msk.bf16.vlgmr.msra.gmra.mrb[0].mxu0 %vm974_vm5, %v4808_v21  ;;  %v4875_v56 = vsel %vm1416_vm6, %v1429_v40, %v1430_v45  ;;  %v683_v50 = vshrl.u32 %v4484_v19, 16  ;;  %v686_v53 = vshll.u32 %v4484_v19, 16  ;;  %v918_v54 = vor.u32 %v917_v28, %v913_v26 }
  0x42   : > { %4077 = vmatpush3.bf16.msra.mxu0 %v2336_v24  ;;  %4048 = vmatprep.mubr.msk.bf16.mxu0 %vm974_vm5, %v4839_v23  ;;  %v678_v24 = vrot.slane %v676_v38, 7  ;;  %v4879_v47 = vsel %vm4602_vm4, 0, %v674_v42  ;;  %v922_v55 = vrot.slane %v920_v13, 1  ;;  %v4884_v62 = vsel %vm1416_vm6, %v1432_v8, %v1433_v14 }
  0x43   : > { %4444 = vmatprep.subr.msk.bf16.mxu0 %vm1023_vm0, %v4854_v9  ;;  %v934_v63 = vrot.slane %v932_v33, 1  ;;  %v930_v40 = vor.u32 %v929_v58, %v925_v41  ;;  %v939_v45 = vshll.u32 %v4879_v47, 16  ;;  %v685_v27 = vrot.slane %v683_v50, 7 }
  0x44   : > { %v681_v7 = vor.u32 %v679_v43, %v678_v24  ;;  %v1435_v38 = vrot.slane %v4726_v57, 1  ;;  %v4892_v19 = vsel %vm4602_vm4, %v671_v17, 0  ;;  %v1436_v8 = vrot.slane %v4710_v44, 1 }
  0x45   : > { %v4903_v14 = vsel %vm4602_vm4, %v678_v24, 0  ;;  %v688_v26 = vor.u32 %v686_v53, %v685_v27  ;;  %v4906_v28 = vsel %vm779_vm3, %v918_v54, %v922_v55  ;;  %v1438_v17 = vrot.slane %v4742_v10, 1 }
  0x46   : > { %v4899_v13 = vsel %vm4602_vm4, 0, %v681_v7  ;;  %v1439_v33 = vrot.slane %v4732_v3, 1  ;;  %v4914_v41 = vsel %vm779_vm3, %v930_v40, %v934_v63  ;;  %v937_v58 = vshrl.u32 %v4879_v47, 16 }
  0x47   : > { %3891 = vmatmul.mubr.msk.bf16.gmra.mrb[16].mxu1 %vm974_vm5, %v4859_v12  ;;  %v951_v44 = vshll.u32 %v4899_v13, 16  ;;  %v941_v42 = vrot.slane %v939_v45, 1  ;;  %v944_v43 = vshll.u32 %v4892_v19, 16  ;;  %v949_v24 = vshrl.u32 %v4899_v13, 16 }
  0x48   : > { %3894 = vmatprep.mubr.msk.bf16.mxu1 %vm974_vm5, %v4872_v29  ;;  %v956_v53 = vshll.u32 %v4903_v14, 16  ;;  %v4922_v54 = vsel %vm4602_vm4, 0, %v688_v26  ;;  %v4927_v3 = vsel %vm1416_vm6, %v1435_v38, %v1436_v8  ;;  %v4932_v40 = vsel %vm1416_vm6, %v1438_v17, %v1439_v33 }
  0x49   : > { %4049 = vmatmul.mubr.msk.bf16.gmra.mrb[4].mxu0 %vm974_vm5, %v4875_v56  ;;  %v953_v50 = vrot.slane %v951_v44, 1  ;;  %v942_v55 = vor.u32 %v941_v42, %v937_v58  ;;  %v946_v63 = vrot.slane %v944_v43, 1  ;;  %v963_v45 = vshll.u32 %v4922_v54, 16 }
  0x4a   : > { %4052 = vmatprep.mubr.msk.bf16.mxu0 %vm974_vm5, %v4884_v62  ;;  %v958_v44 = vrot.slane %v956_v53, 1  ;;  %v775_v26 = vsel %vm4602_vm4, %v685_v27, 0  ;;  %v1441_v38 = vrot.slane %v4756_v25, 1  ;;  %v1442_v8 = vrot.slane %v4750_v20, 1 }
  0x4b   : > { %v954_v7 = vor.u32 %v953_v50, %v949_v24  ;;  %v1444_v17 = vrot.slane %v4775_v49, 1  ;;  %v1445_v33 = vrot.slane %v4783_v22, 1  ;;  %v4946_v58 = vsel %vm779_vm3, %v942_v55, %v946_v63 }
  0x4c   : > { %v961_v42 = vshrl.u32 %v4922_v54, 16  ;;  %v965_v27 = vrot.slane %v963_v45, 1  ;;  %v968_v43 = vshll.u32 %v775_v26, 16  ;;  %v4955_v50 = vsel %vm1416_vm6, %v1441_v38, %v1442_v8 }
  0x4d   : > { %v4950_v24 = vsel %vm779_vm3, %v954_v7, %v958_v44  ;;  %v4960_v53 = vsel %vm1416_vm6, %v1444_v17, %v1445_v33  ;;  %v1447_v55 = vrot.slane %v4817_v34, 1  ;;  %v1448_v63 = vrot.slane %v4803_v15, 1  ;;  %v4485_v15 = vld [vmem:[%s4592_s8 + $0x78] sm:$0xff]   ;;  %s5294_s8 = scalar_lea.vmem %s5449_s4, %s4585_s30  ;;  %s3476_s30 = sshll.u32 %s5458_s18, 1 }
  0x4e   : > { %v966_v20 = vor.u32 %v965_v27, %v961_v42  ;;  %v970_v22 = vrot.slane %v968_v43, 1  ;;  %v1450_v7 = vrot.slane %v4821_v37, 1  ;;  %v1451_v44 = vrot.slane %v4832_v52, 1  ;;  %s411_s11 = scalar_lea.vmem %s5450_s5, %s3476_s30 }
  0x4f   : > { %3895 = vmatmul.mubr.msk.bf16.gmra.mrb[20].mxu1 %vm974_vm5, %v4906_v28  ;;  %v4976_v38 = vsel %vm1416_vm6, %v1447_v55, %v1448_v63  ;;  %v1453_v52 = vrot.slane %v4843_v11, 1  ;;  %v1454_v17 = vrot.slane %v4847_v59, 1  ;;  %v1456_v33 = vrot.slane %v4879_v47, 1 }
  0x50   : > { %3898 = vmatprep.mubr.msk.bf16.mxu1 %vm974_vm5, %v4914_v41  ;;  %v4969_v45 = vsel %vm779_vm3, %v966_v20, %v970_v22  ;;  %v4981_v8 = vsel %vm1416_vm6, %v1450_v7, %v1451_v44  ;;  %v1457_v42 = vrot.slane %v4892_v19, 1  ;;  %v690_v27 = vshrl.u32 %v4485_v15, 16  ;;  %v4997_v20 = vld [vmem:[%s5448_s3 + $0x6] sm:$0x3] }
  0x51   : > { %4053 = vmatmul.mubr.msk.bf16.gmra.mrb[8].mxu0 %vm974_vm5, %v4927_v3  ;;  %v1516_v43 = vsel %vm1023_vm0, %v4690_v32, 0  ;;  %v5002_v22 = vsel %vm1416_vm6, %v1453_v52, %v1454_v17  ;;  %v693_v32 = vshll.u32 %v4485_v15, 16  ;;  %v1459_v55 = vrot.slane %v4899_v13, 1 }
  0x52   : > { %4056 = vmatprep.mubr.msk.bf16.mxu0 %vm974_vm5, %v4932_v40  ;;  %v5007_v59 = vsel %vm1416_vm6, %v1456_v33, %v1457_v42  ;;  %v692_v19 = vrot.slane %v690_v27, 7  ;;  %v1460_v63 = vrot.slane %v4903_v14, 1  ;;  %v1462_v7 = vrot.slane %v4922_v54, 1 }
  0x53   : > { %v1463_v44 = vrot.slane %v775_v26, 1 }
  0x54   : > { %v695_v52 = vor.u32 %v693_v32, %v692_v19  ;;  %v5021_v15 = vsel %vm1416_vm6, %v1459_v55, %v1460_v63  ;;  %v5034_v14 = vsel %vm4602_vm4, %v692_v19, 0  ;;  %v3630_v19 = vld [vmem:[%s5448_s3 + $0x10] sm:$0x3]  ;;  %v1417_v32 = vrot.slane %v4651_v60, 1 }
  0x55   : > { %v5026_v17 = vsel %vm1416_vm6, %v1462_v7, %v1463_v44  ;;  %v2127_v42 = vrot.slane %v5034_v14, 1  ;;  %v1717_v44 = vsel %vm1023_vm0, %v4997_v20, 0 }
  0x56   : > { %v5030_v33 = vsel %vm4602_vm4, 0, %v695_v52 }
  0x57   : > { %3899 = vmatmul.mubr.msk.bf16.gmra.mrb[24].mxu1 %vm974_vm5, %v4946_v58  ;;  %v2126_v26 = vrot.slane %v5030_v33, 1 }
  0x58   : > { %3902 = vmatprep.mubr.msk.bf16.mxu1 %vm974_vm5, %v4950_v24 }
  0x59   : > { %4057 = vmatmul.mubr.msk.bf16.gmra.mrb[12].mxu0 %vm974_vm5, %v4955_v50  ;;  %v5045_v27 = vsel %vm1416_vm6, %v2126_v26, %v2127_v42 }
  0x5a   : > { %4060 = vmatprep.mubr.msk.bf16.mxu0 %vm974_vm5, %v4960_v53 }
  0x5f   : > { %3903 = vmatmul.mubr.msk.bf16.gmra.mrb[28].mxu1 %vm974_vm5, %v4969_v45 }
  0x60   : > { %3908 = vmatprep.mubr.msk.bf16.mxu1 %vm974_vm5, %v4651_v60  ;;  %v448_v60 = vld [vmem:[%s389_s29 + $0x4] sm:$0xf] }
  0x61   : > { %4061 = vmatmul.mubr.msk.bf16.gmra.mrb[16].mxu0 %vm974_vm5, %v4976_v38  ;;  %v486_v7 = vmul.bf16 0.0, %v448_v60 }
  0x62   : > { %4064 = vmatprep.mubr.msk.bf16.mxu0 %vm974_vm5, %v4981_v8 }
  0x67   : > { %3909 = vmatmul.mubr.msk.bf16.vlgmr.msra.gmra.mrb[0].mxu1 %vm974_vm5, %v4622_v30 }
  0x68   : > { %3941 = vmatpush3.bf16.msra.mxu1 %v1516_v43  ;;  %3912 = vmatprep.mubr.msk.bf16.mxu1 %vm974_vm5, %v4629_v36  ;;  %v2548_v43 = vsel %vm1023_vm0, %v4854_v9, 0  ;;  %v1418_v9 = vrot.slane %v4636_v48, 1  ;;  %v447_v48 = vld [vmem:[%s389_s29] sm:$0xf] }
  0x69   : > { %4439 = vmatprep.subr.msk.bf16.mxu1 %vm1023_vm0, %v4997_v20  ;;  %4065 = vmatmul.mubr.msk.bf16.gmra.mrb[20].mxu0 %vm974_vm5, %v5002_v22  ;;  %v485_v63 = vmul.bf16 0.0, %v447_v48 }
  0x6a   : > { %4068 = vmatprep.mubr.msk.bf16.mxu0 %vm974_vm5, %v5007_v59  ;;  %v1419_v55 = vsel %vm1416_vm6, %v1417_v32, %v1418_v9 }
  0x6b   : > { %v3494_v52 = vcombine.low %v485_v63, %v486_v7 }
  0x6d   : > { %v697_v26 = vshrl.u32 %v3494_v52, 16 }
  0x6f   : > { %3913 = vmatmul.mubr.msk.bf16.gmra.mrb[4].mxu1 %vm974_vm5, %v4663_v5  ;;  %v699_v20 = vrot.slane %v697_v26, 7 }
  0x70   : > { %3916 = vmatprep.mubr.msk.bf16.mxu1 %vm974_vm5, %v4676_v16 }
  0x71   : > { %4069 = vmatmul.mubr.msk.bf16.gmra.mrb[24].mxu0 %vm974_vm5, %v5021_v15 }
  0x72   : > { %4072 = vmatprep.mubr.msk.bf16.mxu0 %vm974_vm5, %v5026_v17 }
  0x77   : > { %3917 = vmatmul.mubr.msk.bf16.gmra.mrb[8].mxu1 %vm974_vm5, %v4695_v35 }
  0x78   : > { %3920 = vmatprep.mubr.msk.bf16.mxu1 %vm974_vm5, %v4726_v57 }
  0x79   : > { %4073 = vmatmul.mubr.msk.bf16.gmra.mrb[28].mxu0 %vm974_vm5, %v5045_v27 }
  0x7a   : > { %4078 = vmatprep.mubr.msk.bf16.mxu0 %vm974_vm5, %v4629_v36 }
  0x7f   : > { %3921 = vmatmul.mubr.msk.bf16.gmra.mrb[12].mxu1 %vm974_vm5, %v4742_v10 }
  0x80   : > { %3924 = vmatprep.mubr.msk.bf16.mxu1 %vm974_vm5, %v4756_v25 }
  0x81   : > { %4079 = vmatmul.mubr.msk.bf16.vlgmr.msra.gmra.mrb[0].mxu0 %vm974_vm5, %v4663_v5 }
  0x82   : > { %4111 = vmatpush3.bf16.msra.mxu0 %v2548_v43  ;;  %4082 = vmatprep.mubr.msk.bf16.mxu0 %vm974_vm5, %v4676_v16  ;;  %v2754_v43 = vsel %vm1023_vm0, %v3630_v19, 0 }
  0x83   : > { %4445 = vmatprep.subr.msk.bf16.mxu0 %vm1023_vm0, %v3630_v19 }
  0x87   : > { %3925 = vmatmul.mubr.msk.bf16.gmra.mrb[16].mxu1 %vm974_vm5, %v4775_v49 }
  0x88   : > { %3928 = vmatprep.mubr.msk.bf16.mxu1 %vm974_vm5, %v4817_v34 }
  0x89   : > { %4083 = vmatmul.mubr.msk.bf16.gmra.mrb[4].mxu0 %vm974_vm5, %v4695_v35 }
  0x8a   : > { %4086 = vmatprep.mubr.msk.bf16.mxu0 %vm974_vm5, %v4726_v57 }
  0x8f   : > { %3929 = vmatmul.mubr.msk.bf16.gmra.mrb[20].mxu1 %vm974_vm5, %v4821_v37 }
  0x90   : > { %3932 = vmatprep.mubr.msk.bf16.mxu1 %vm974_vm5, %v4843_v11 }
  0x91   : > { %4087 = vmatmul.mubr.msk.bf16.gmra.mrb[8].mxu0 %vm974_vm5, %v4742_v10 }
  0x92   : > { %4090 = vmatprep.mubr.msk.bf16.mxu0 %vm974_vm5, %v4756_v25 }
  0x97   : > { %3933 = vmatmul.mubr.msk.bf16.gmra.mrb[24].mxu1 %vm974_vm5, %v4879_v47 }
  0x98   : > { %3936 = vmatprep.mubr.msk.bf16.mxu1 %vm974_vm5, %v4899_v13 }
  0x99   : > { %4091 = vmatmul.mubr.msk.bf16.gmra.mrb[12].mxu0 %vm974_vm5, %v4775_v49 }
  0x9a   : > { %4094 = vmatprep.mubr.msk.bf16.mxu0 %vm974_vm5, %v4817_v34 }
  0x9f   : > { %3937 = vmatmul.mubr.msk.bf16.gmra.mrb[28].mxu1 %vm974_vm5, %v4922_v54 }
  0xa0   : > { %3942 = vmatprep.mubr.msk.bf16.mxu1 %vm974_vm5, %v1419_v55 }
  0xa1   : > { %4095 = vmatmul.mubr.msk.bf16.gmra.mrb[16].mxu0 %vm974_vm5, %v4821_v37 }
  0xa2   : > { %4098 = vmatprep.mubr.msk.bf16.mxu0 %vm974_vm5, %v4843_v11 }
  0xa7   : > { %3943 = vmatmul.mubr.msk.bf16.vlgmr.msra.gmra.mrb[0].mxu1 %vm974_vm5, %v4795_v6  ;;  %v700_v6 = vshll.u32 %v3494_v52, 16 }
  0xa8   : > { %3975 = vmatpush3.bf16.msra.mxu1 %v1717_v44  ;;  %3946 = vmatprep.mubr.msk.bf16.mxu1 %vm974_vm5, %v4808_v21 }
  0xa9   : > { %4441 = vmatprep.subr.msk.bf16.mxu1 %vm1023_vm0, %v4561_v0  ;;  %4099 = vmatmul.mubr.msk.bf16.gmra.mrb[20].mxu0 %vm974_vm5, %v4879_v47  ;;  %v702_v0 = vor.u32 %v700_v6, %v699_v20 }
  0xaa   : > { %4102 = vmatprep.mubr.msk.bf16.mxu0 %vm974_vm5, %v4899_v13 }
  0xab   : > { %v5129_v42 = vsel %vm4602_vm4, 0, %v702_v0 }
  0xaf   : > { %3947 = vmatmul.mubr.msk.bf16.gmra.mrb[4].mxu1 %vm974_vm5, %v4839_v23 }
  0xb0   : > { %3950 = vmatprep.mubr.msk.bf16.mxu1 %vm974_vm5, %v4875_v56 }
  0xb1   : > { %4103 = vmatmul.mubr.msk.bf16.gmra.mrb[24].mxu0 %vm974_vm5, %v4922_v54 }
  0xb2   : > { %4106 = vmatprep.mubr.msk.bf16.mxu0 %vm974_vm5, %v5030_v33 }
  0xb7   : > { %3951 = vmatmul.mubr.msk.bf16.gmra.mrb[8].mxu1 %vm974_vm5, %v4884_v62 }
  0xb8   : > { %3954 = vmatprep.mubr.msk.bf16.mxu1 %vm974_vm5, %v4927_v3 }
  0xb9   : > { %4107 = vmatmul.mubr.msk.bf16.gmra.mrb[28].mxu0 %vm974_vm5, %v5129_v42 }
  0xba   : > { %4112 = vmatprep.mubr.msk.bf16.mxu0 %vm974_vm5, %v4657_v1  ;;  %v1914_v1 = vshll.u32 %v5030_v33, 16 }
  0xbf   : > { %3955 = vmatmul.mubr.msk.bf16.gmra.mrb[12].mxu1 %vm974_vm5, %v4932_v40 }
  0xc0   : > { %3958 = vmatprep.mubr.msk.bf16.mxu1 %vm974_vm5, %v4955_v50 }
  0xc1   : > { %4113 = vmatmul.mubr.msk.bf16.vlgmr.msra.gmra.mrb[0].mxu0 %vm974_vm5, %v4701_v39  ;;  %v1912_v39 = vshrl.u32 %v5030_v33, 16 }
  0xc2   : > { %4145 = vmatpush3.bf16.msra.mxu0 %v2754_v43  ;;  %4116 = vmatprep.mubr.msk.bf16.mxu0 %vm974_vm5, %v4716_v51  ;;  %v1916_v51 = vrot.slane %v1914_v1, 1 }
  0xc7   : > { %3959 = vmatmul.mubr.msk.bf16.gmra.mrb[16].mxu1 %vm974_vm5, %v4960_v53 }
  0xc8   : > { %3962 = vmatprep.mubr.msk.bf16.mxu1 %vm974_vm5, %v4976_v38 }
  0xc9   : > { %4117 = vmatmul.mubr.msk.bf16.gmra.mrb[4].mxu0 %vm974_vm5, %v4735_v4  ;;  %v2533_v4 = vshll.u32 %v5129_v42, 16 }
  0xca   : > { %4120 = vmatprep.mubr.msk.bf16.mxu0 %vm974_vm5, %v4760_v31  ;;  %v1917_v31 = vor.u32 %v1916_v51, %v1912_v39 }
  0xcf   : > { %3963 = vmatmul.mubr.msk.bf16.gmra.mrb[20].mxu1 %vm974_vm5, %v4981_v8 }
  0xd0   : > { %3966 = vmatprep.mubr.msk.bf16.mxu1 %vm974_vm5, %v5002_v22 }
  0xd1   : > { %4121 = vmatmul.mubr.msk.bf16.gmra.mrb[8].mxu0 %vm974_vm5, %v4770_v46  ;;  %v2535_v46 = vrot.slane %v2533_v4, 1 }
  0xd2   : > { %4124 = vmatprep.mubr.msk.bf16.mxu0 %vm974_vm5, %v4789_v61 }
  0xd7   : > { %3967 = vmatmul.mubr.msk.bf16.gmra.mrb[24].mxu1 %vm974_vm5, %v5007_v59 }
  0xd8   : > { %3970 = vmatprep.mubr.msk.bf16.mxu1 %vm974_vm5, %v5021_v15 }
  0xd9   : > { %4125 = vmatmul.mubr.msk.bf16.gmra.mrb[12].mxu0 %vm974_vm5, %v4859_v12 }
  0xda   : > { %4128 = vmatprep.mubr.msk.bf16.mxu0 %vm974_vm5, %v4872_v29 }
  0xdf   : > { %3971 = vmatmul.mubr.msk.bf16.gmra.mrb[28].mxu1 %vm974_vm5, %v5026_v17 }
  0xe0   : > { %3976 = vmatprep.mubr.msk.bf16.mxu1 %vm974_vm5, %v4622_v30  ;;  %v1919_v30 = vshll.u32 %v5034_v14, 16 }
  0xe1   : > { %4129 = vmatmul.mubr.msk.bf16.gmra.mrb[16].mxu0 %vm974_vm5, %v4906_v28 }
  0xe2   : > { %4132 = vmatprep.mubr.msk.bf16.mxu0 %vm974_vm5, %v4914_v41 }
  0xe7   : > { %3977 = vmatmul.mubr.msk.bf16.vlgmr.msra.gmra.mrb[0].mxu1 %vm974_vm5, %v4629_v36  ;;  %v1921_v36 = vrot.slane %v1919_v30, 1 }
  0xe8   : > { %4179 = vmatpush3.bf16.msra.mxu1 %v4571_v2  ;;  %3980 = vmatprep.mubr.msk.bf16.mxu1 %vm974_vm5, %v4663_v5  ;;  %v777_v2 = vsel %vm4602_vm4, %v699_v20, 0  ;;  %v2531_v5 = vshrl.u32 %v5129_v42, 16 }
  0xe9   : > { %4133 = vmatmul.mubr.msk.bf16.gmra.mrb[20].mxu0 %vm974_vm5, %v4946_v58  ;;  %v2538_v61 = vshll.u32 %v777_v2, 16  ;;  %v1922_v14 = vsel %vm779_vm3, %v1917_v31, %v1921_v36 }
  0xea   : > { %4136 = vmatprep.mubr.msk.bf16.mxu0 %vm974_vm5, %v4950_v24  ;;  %v2536_v19 = vor.u32 %v2535_v46, %v2531_v5 }
  0xeb   : > { %v2540_v18 = vrot.slane %v2538_v61, 1 }
  0xed   : > { %v2541_v9 = vsel %vm779_vm3, %v2536_v19, %v2540_v18 }
  0xef   : > { %3981 = vmatmul.mubr.msk.bf16.gmra.mrb[4].mxu1 %vm974_vm5, %v4676_v16  ;;  %v2745_v16 = vrot.slane %v5129_v42, 1 }
  0xf0   : > { %3984 = vmatprep.mubr.msk.bf16.mxu1 %vm974_vm5, %v4695_v35  ;;  %v2746_v35 = vrot.slane %v777_v2, 1 }
  0xf1   : > { %4137 = vmatmul.mubr.msk.bf16.gmra.mrb[24].mxu0 %vm974_vm5, %v4969_v45 }
  0xf2   : > { %4140 = vmatprep.mubr.msk.bf16.mxu0 %vm974_vm5, %v1922_v14 }
  0xf7   : > { %3985 = vmatmul.mubr.msk.bf16.gmra.mrb[8].mxu1 %vm974_vm5, %v4726_v57  ;;  %v2747_v57 = vsel %vm1416_vm6, %v2745_v16, %v2746_v35 }
  0xf8   : > { %3988 = vmatprep.mubr.msk.bf16.mxu1 %vm974_vm5, %v4742_v10 }
  0xf9   : > { %4141 = vmatmul.mubr.msk.bf16.gmra.mrb[28].mxu0 %vm974_vm5, %v2541_v9 }
  0xfa   : > { %4146 = vmatprep.mubr.msk.bf16.mxu0 %vm974_vm5, %v4808_v21 }
  0xff   : > { %3989 = vmatmul.mubr.msk.bf16.gmra.mrb[12].mxu1 %vm974_vm5, %v4756_v25 }
 0x100   : > { %3992 = vmatprep.mubr.msk.bf16.mxu1 %vm974_vm5, %v4775_v49 }
 0x101   : > { %4147 = vmatmul.mubr.msk.bf16.vlgmr.msra.gmra.mrb[0].mxu0 %vm974_vm5, %v4839_v23 }
 0x102   : > { %4150 = vmatprep.mubr.msk.bf16.mxu0 %vm974_vm5, %v4875_v56 }
 0x107   : > { %3993 = vmatmul.mubr.msk.bf16.gmra.mrb[16].mxu1 %vm974_vm5, %v4817_v34 }
 0x108   : > { %3996 = vmatprep.mubr.msk.bf16.mxu1 %vm974_vm5, %v4821_v37 }
 0x109   : > { %4151 = vmatmul.mubr.msk.bf16.gmra.mrb[4].mxu0 %vm974_vm5, %v4884_v62 }
 0x10a   : > { %4154 = vmatprep.mubr.msk.bf16.mxu0 %vm974_vm5, %v4927_v3 }
 0x10f   : > { %3997 = vmatmul.mubr.msk.bf16.gmra.mrb[20].mxu1 %vm974_vm5, %v4843_v11 }
 0x110   : > { %4000 = vmatprep.mubr.msk.bf16.mxu1 %vm974_vm5, %v4879_v47 }
 0x111   : > { %4155 = vmatmul.mubr.msk.bf16.gmra.mrb[8].mxu0 %vm974_vm5, %v4932_v40 }
 0x112   : > { %4158 = vmatprep.mubr.msk.bf16.mxu0 %vm974_vm5, %v4955_v50 }
 0x117   : > { %4001 = vmatmul.mubr.msk.bf16.gmra.mrb[24].mxu1 %vm974_vm5, %v4899_v13 }
 0x118   : > { %4004 = vmatprep.mubr.msk.bf16.mxu1 %vm974_vm5, %v4922_v54 }
 0x119   : > { %4159 = vmatmul.mubr.msk.bf16.gmra.mrb[12].mxu0 %vm974_vm5, %v4960_v53 }
 0x11a   : > { %4162 = vmatprep.mubr.msk.bf16.mxu0 %vm974_vm5, %v4976_v38 }
 0x11f   : > { %4005 = vmatmul.mubr.msk.bf16.gmra.mrb[28].mxu1 %vm974_vm5, %v5030_v33 }
 0x120   : > { %4026 = vmatprep.mubr.msk.bf16.mxu1 %vm974_vm5, %v4859_v12 }
 0x121   : > { %4163 = vmatmul.mubr.msk.bf16.gmra.mrb[16].mxu0 %vm974_vm5, %v4981_v8 }
 0x122   : > { %4166 = vmatprep.mubr.msk.bf16.mxu0 %vm974_vm5, %v5002_v22 }
 0x127   : > { %4027 = vmatmul.mubr.msk.bf16.vlgmr.msra.gmra.mrb[16].mxu1 %vm974_vm5, %v4872_v29 }
 0x128   : > { %4030 = vmatprep.mubr.msk.bf16.mxu1 %vm974_vm5, %v4906_v28 }
 0x129   : > { %4167 = vmatmul.mubr.msk.bf16.gmra.mrb[20].mxu0 %vm974_vm5, %v5007_v59 }
 0x12a   : > { %4170 = vmatprep.mubr.msk.bf16.mxu0 %vm974_vm5, %v5021_v15 }
 0x12f   : > { %4031 = vmatmul.mubr.msk.bf16.gmra.mrb[20].mxu1 %vm974_vm5, %v4914_v41 }
 0x130   : > { %4034 = vmatprep.mubr.msk.bf16.mxu1 %vm974_vm5, %v4946_v58 }
 0x131   : > { %4171 = vmatmul.mubr.msk.bf16.gmra.mrb[24].mxu0 %vm974_vm5, %v5026_v17 }
 0x132   : > { %4174 = vmatprep.mubr.msk.bf16.mxu0 %vm974_vm5, %v5045_v27 }
 0x137   : > { %4035 = vmatmul.mubr.msk.bf16.gmra.mrb[24].mxu1 %vm974_vm5, %v4950_v24 }
 0x138   : > { %4038 = vmatprep.mubr.msk.bf16.mxu1 %vm974_vm5, %v4969_v45 }
 0x139   : > { %4175 = vmatmul.mubr.msk.bf16.gmra.mrb[28].mxu0 %vm974_vm5, %v2747_v57 }
 0x13f   : > { %4039 = vmatmul.mubr.msk.bf16.gmra.mrb[28].mxu1 %vm974_vm5, %v1922_v14 }
 0x1ba   : > { %v3978_v10 = vpop.f32.mrb[0].mxu1 }
 0x1bb   : > { %v1753_v25 = vpop.f32.mrb[1].mxu1 }
 0x1bc   : > { %v3979_v49 = vpop.f32.mrb[2].mxu1 }
 0x1bd   : > { %v1756_v21 = vpop.f32.mrb[3].mxu1 }
 0x1c2   : > { %v3982_v34 = vpop.f32.mrb[4].mxu1 }
 0x1c3   : > { %v1769_v37 = vpop.f32.mrb[5].mxu1 }
 0x1c4   : > { %v3983_v23 = vpop.f32.mrb[6].mxu1 }
 0x1c5   : > { %v1772_v11 = vpop.f32.mrb[7].mxu1 }
 0x1ca   : > { %v5274_v12 = vpop.f32.mrb[8].mxu1 }
 0x1cb   : > { %v5276_v29 = vpop.f32.mrb[9].mxu1 }
 0x1cc   : > { %v5278_v56 = vpop.f32.mrb[10].mxu1 }
 0x1cd   : > { %v5280_v47 = vpop.f32.mrb[11].mxu1 }
 0x1d2   : > { %v5282_v62 = vpop.f32.mrb[12].mxu1 }
 0x1d3   : > { %v5284_v13 = vpop.f32.mrb[13].mxu1 }
 0x1d4   : > { %v5286_v28 = vpop.f32.mrb[14].mxu1  ;;  %v4148_v54 = vpop.f32.mrb[0].mxu0 }
 0x1d5   : > { %v5288_v41 = vpop.f32.mrb[15].mxu1  ;;  %v4180_v3 = vadd.f32 %v4148_v54, %v3978_v10  ;;  %v2790_v40 = vpop.f32.mrb[1].mxu0 }
 0x1d6   : > { %v4181_v58 = vadd.f32 %v2790_v40, %v1753_v25  ;;  %v4149_v24 = vpop.f32.mrb[2].mxu0 }
 0x1d7   : > { %v3688_v50 = vpack.c.bf16 %v4180_v3, %v4180_v3  ;;  %v4182_v53 = vadd.f32 %v4149_v24, %v3979_v49  ;;  %v2793_v45 = vpop.f32.mrb[3].mxu0  ;;  %v3184_v59 = vmul.f32 %v4180_v3, %v4180_v3  ;;  %v3114_v60 = vsel %vm3110_vm8, %v4180_v3, 0.0 }
 0x1d8   : > { %v3686_v38 = vpack.c.bf16 %v4181_v58, %v4181_v58  ;;  %v3182_v8 = vmul.f32 %v4181_v58, %v4181_v58  ;;  %v4183_v22 = vadd.f32 %v2793_v45, %v1756_v21  ;;  %v3111_v17 = vsel %vm3110_vm8, %v4181_v58, 0.0 }
 0x1d9   : > { %3080 = vst.msk [vmem:[%s5294_s8 + $0x8] sm:$0xf] %vm3077_vm7, %v3688_v50  ;;  %v3689_v15 = vpack.c.bf16 %v4182_v53, %v4182_v53  ;;  %v3185_v55 = vmul.f32 %v4182_v53, %v4182_v53  ;;  %v3217_v0 = vsel %vm3110_vm8, %v3184_v59, 0.0  ;;  %v3116_v1 = vsel %vm3110_vm8, %v4182_v53, 0.0 }
 0x1da   : > { %3078 = vst.msk [vmem:[%s5294_s8] sm:$0xf] %vm3077_vm7, %v3686_v38  ;;  %v3687_v33 = vpack.c.bf16 %v4183_v22, %v4183_v22  ;;  %v3112_v27 = vsel %vm3110_vm8, %v4183_v22, 0.0  ;;  %v3183_v32 = vmul.f32 %v4183_v22, %v4183_v22  ;;  %v3214_v63 = vsel %vm3110_vm8, %v3182_v8, 0.0 }
 0x1db   : > { %3081 = vst.msk [vmem:[%s5294_s8 + $0xc] sm:$0xf] %vm3077_vm7, %v3689_v15  ;;  %v3113_v48 = vadd.f32 %v3112_v27, %v3111_v17  ;;  %v3219_v39 = vsel %vm3110_vm8, %v3185_v55, 0.0 }
 0x1dc   : > { %3079 = vst.msk [vmem:[%s5294_s8 + $0x4] sm:$0xf] %vm3077_vm7, %v3687_v33  ;;  %v3215_v7 = vsel %vm3110_vm8, %v3183_v32, 0.0  ;;  %v4152_v44 = vpop.f32.mrb[4].mxu0 }
 0x1dd   : > { %v3115_v52 = vadd.f32 %v3114_v60, %v3113_v48  ;;  %v3216_v26 = vadd.f32 %v3215_v7, %v3214_v63  ;;  %v4184_v20 = vadd.f32 %v4152_v44, %v3982_v34  ;;  %v2806_v6 = vpop.f32.mrb[5].mxu0 }
 0x1de   : > { %v4185_v42 = vadd.f32 %v2806_v6, %v1769_v37  ;;  %v4153_v43 = vpop.f32.mrb[6].mxu0 }
 0x1df   : > { %v3218_v51 = vadd.f32 %v3217_v0, %v3216_v26  ;;  %v3692_v30 = vpack.c.bf16 %v4184_v20, %v4184_v20  ;;  %v2809_v4 = vpop.f32.mrb[7].mxu0  ;;  %v3117_v36 = vadd.f32 %v3116_v1, %v3115_v52  ;;  %v4186_v61 = vadd.f32 %v4153_v43, %v3983_v23 }
 0x1e0   : > { %v3690_v31 = vpack.c.bf16 %v4185_v42, %v4185_v42  ;;  %v3118_v2 = vsel %vm3110_vm8, %v4185_v42, 0.0  ;;  %v3186_v5 = vmul.f32 %v4185_v42, %v4185_v42  ;;  %v4187_v14 = vadd.f32 %v2809_v4, %v1772_v11 }
 0x1e1   : > { %3084 = vst.msk [vmem:[%s5294_s8 + $0x18] sm:$0xf] %vm3077_vm7, %v3692_v30  ;;  %v3220_v46 = vadd.f32 %v3219_v39, %v3218_v51  ;;  %v3119_v19 = vadd.f32 %v3118_v2, %v3117_v36  ;;  %v3188_v9 = vmul.f32 %v4184_v20, %v4184_v20  ;;  %v3693_v35 = vpack.c.bf16 %v4186_v61, %v4186_v61 }
 0x1e2   : > { %3082 = vst.msk [vmem:[%s5294_s8 + $0x10] sm:$0xf] %vm3077_vm7, %v3690_v31  ;;  %v3221_v18 = vsel %vm3110_vm8, %v3186_v5, 0.0  ;;  %v3691_v57 = vpack.c.bf16 %v4187_v14, %v4187_v14  ;;  %v3120_v10 = vsel %vm3110_vm8, %v4187_v14, 0.0  ;;  %v3187_v25 = vmul.f32 %v4187_v14, %v4187_v14 }
 0x1e3   : > { %v3222_v16 = vadd.f32 %v3221_v18, %v3220_v46  ;;  %3085 = vst.msk [vmem:[%s5294_s8 + $0x1c] sm:$0xf] %vm3077_vm7, %v3693_v35  ;;  %v3121_v21 = vadd.f32 %v3120_v10, %v3119_v19  ;;  %v3122_v23 = vsel %vm3110_vm8, %v4184_v20, 0.0  ;;  %v3189_v11 = vmul.f32 %v4186_v61, %v4186_v61 }
 0x1e4   : > { %v4156_v49 = vpop.f32.mrb[8].mxu0  ;;  %3083 = vst.msk [vmem:[%s5294_s8 + $0x14] sm:$0xf] %vm3077_vm7, %v3691_v57  ;;  %v3223_v54 = vsel %vm3110_vm8, %v3187_v25, 0.0  ;;  %v3225_v58 = vsel %vm3110_vm8, %v3188_v9, 0.0 }
 0x1e5   : > { %v4188_v34 = vadd.f32 %v4156_v49, %v5274_v12  ;;  %v2822_v37 = vpop.f32.mrb[9].mxu0  ;;  %v3123_v24 = vadd.f32 %v3122_v23, %v3121_v21  ;;  %v3224_v50 = vadd.f32 %v3223_v54, %v3222_v16  ;;  %v3124_v12 = vsel %vm3110_vm8, %v4186_v61, 0.0 }
 0x1e6   : > { %v4189_v3 = vadd.f32 %v2822_v37, %v5276_v29  ;;  %v4157_v40 = vpop.f32.mrb[10].mxu0  ;;  %v3227_v33 = vsel %vm3110_vm8, %v3189_v11, 0.0 }
 0x1e7   : > { %v3696_v53 = vpack.c.bf16 %v4188_v34, %v4188_v34  ;;  %v2825_v45 = vpop.f32.mrb[11].mxu0  ;;  %v3226_v59 = vadd.f32 %v3225_v58, %v3224_v50  ;;  %v3125_v15 = vadd.f32 %v3124_v12, %v3123_v24  ;;  %v4190_v29 = vadd.f32 %v4157_v40, %v5278_v56 }
 0x1e8   : > { %v3694_v38 = vpack.c.bf16 %v4189_v3, %v4189_v3  ;;  %v3126_v8 = vsel %vm3110_vm8, %v4189_v3, 0.0  ;;  %v3190_v22 = vmul.f32 %v4189_v3, %v4189_v3  ;;  %v4191_v17 = vadd.f32 %v2825_v45, %v5280_v47 }
 0x1e9   : > { %3088 = vst.msk [vmem:[%s5294_s8 + $0x28] sm:$0xf] %vm3077_vm7, %v3696_v53  ;;  %v3192_v32 = vmul.f32 %v4188_v34, %v4188_v34  ;;  %v3127_v55 = vadd.f32 %v3126_v8, %v3125_v15  ;;  %v3228_v48 = vadd.f32 %v3227_v33, %v3226_v59  ;;  %v3697_v60 = vpack.c.bf16 %v4190_v29, %v4190_v29 }
 0x1ea   : > { %3086 = vst.msk [vmem:[%s5294_s8 + $0x20] sm:$0xf] %vm3077_vm7, %v3694_v38  ;;  %v3229_v27 = vsel %vm3110_vm8, %v3190_v22, 0.0  ;;  %v3695_v63 = vpack.c.bf16 %v4191_v17, %v4191_v17  ;;  %v3128_v7 = vsel %vm3110_vm8, %v4191_v17, 0.0  ;;  %v3191_v44 = vmul.f32 %v4191_v17, %v4191_v17 }
 0x1eb   : > { %v3230_v26 = vadd.f32 %v3229_v27, %v3228_v48  ;;  %3089 = vst.msk [vmem:[%s5294_s8 + $0x2c] sm:$0xf] %vm3077_vm7, %v3697_v60  ;;  %v3129_v56 = vadd.f32 %v3128_v7, %v3127_v55  ;;  %v3130_v6 = vsel %vm3110_vm8, %v4188_v34, 0.0  ;;  %v3193_v0 = vmul.f32 %v4190_v29, %v4190_v29 }
 0x1ec   : > { %v4160_v52 = vpop.f32.mrb[12].mxu0  ;;  %3087 = vst.msk [vmem:[%s5294_s8 + $0x24] sm:$0xf] %vm3077_vm7, %v3695_v63  ;;  %v3231_v42 = vsel %vm3110_vm8, %v3191_v44, 0.0  ;;  %v3233_v39 = vsel %vm3110_vm8, %v3192_v32, 0.0 }
 0x1ed   : > { %v4192_v47 = vadd.f32 %v4160_v52, %v5282_v62  ;;  %v2838_v20 = vpop.f32.mrb[13].mxu0  ;;  %v3131_v51 = vadd.f32 %v3130_v6, %v3129_v56  ;;  %v3232_v30 = vadd.f32 %v3231_v42, %v3230_v26  ;;  %v3132_v62 = vsel %vm3110_vm8, %v4190_v29, 0.0 }
 0x1ee   : > { %v4193_v43 = vadd.f32 %v2838_v20, %v5284_v13  ;;  %v4161_v1 = vpop.f32.mrb[14].mxu0  ;;  %v3235_v19 = vsel %vm3110_vm8, %v3193_v0, 0.0 }
 0x1ef   : > { %v3700_v4 = vpack.c.bf16 %v4192_v47, %v4192_v47  ;;  %v2841_v31 = vpop.f32.mrb[15].mxu0  ;;  %v3234_v46 = vadd.f32 %v3233_v39, %v3232_v30  ;;  %v3133_v61 = vadd.f32 %v3132_v62, %v3131_v51  ;;  %v4194_v13 = vadd.f32 %v4161_v1, %v5286_v28 }
 0x1f0   : > { %v3698_v36 = vpack.c.bf16 %v4193_v43, %v4193_v43  ;;  %v3134_v2 = vsel %vm3110_vm8, %v4193_v43, 0.0  ;;  %v3194_v5 = vmul.f32 %v4193_v43, %v4193_v43  ;;  %v4195_v14 = vadd.f32 %v2841_v31, %v5288_v41 }
 0x1f1   : > { %3092 = vst.msk [vmem:[%s5294_s8 + $0x38] sm:$0xf] %vm3077_vm7, %v3700_v4  ;;  %v3135_v9 = vadd.f32 %v3134_v2, %v3133_v61  ;;  %v3236_v16 = vadd.f32 %v3235_v19, %v3234_v46  ;;  %v3701_v35 = vpack.c.bf16 %v4194_v13, %v4194_v13  ;;  %v3196_v57 = vmul.f32 %v4192_v47, %v4192_v47 }
 0x1f2   : > { %3090 = vst.msk [vmem:[%s5294_s8 + $0x30] sm:$0xf] %vm3077_vm7, %v3698_v36  ;;  %v3237_v18 = vsel %vm3110_vm8, %v3194_v5, 0.0  ;;  %v3699_v10 = vpack.c.bf16 %v4195_v14, %v4195_v14  ;;  %v3136_v25 = vsel %vm3110_vm8, %v4195_v14, 0.0  ;;  %v3195_v49 = vmul.f32 %v4195_v14, %v4195_v14 }
 0x1f3   : > { %v3238_v34 = vadd.f32 %v3237_v18, %v3236_v16  ;;  %3093 = vst.msk [vmem:[%s5294_s8 + $0x3c] sm:$0xf] %vm3077_vm7, %v3701_v35  ;;  %v3137_v28 = vadd.f32 %v3136_v25, %v3135_v9  ;;  %v3138_v37 = vsel %vm3110_vm8, %v4192_v47, 0.0  ;;  %v3197_v23 = vmul.f32 %v4194_v13, %v4194_v13 }
 0x1f4   : > { %v4164_v21 = vpop.f32.mrb[16].mxu0  ;;  %3091 = vst.msk [vmem:[%s5294_s8 + $0x34] sm:$0xf] %vm3077_vm7, %v3699_v10  ;;  %v3239_v11 = vsel %vm3110_vm8, %v3195_v49, 0.0  ;;  %v3241_v24 = vsel %vm3110_vm8, %v3196_v57, 0.0  ;;  %v3140_v50 = vsel %vm3110_vm8, %v4194_v13, 0.0 }
 0x1f5   : > { %v2854_v41 = vpop.f32.mrb[17].mxu0  ;;  %v3139_v3 = vadd.f32 %v3138_v37, %v3137_v28  ;;  %v3240_v40 = vadd.f32 %v3239_v11, %v3238_v34  ;;  %v3243_v38 = vsel %vm3110_vm8, %v3197_v23, 0.0 }
 0x1f6   : > { %v4165_v54 = vpop.f32.mrb[18].mxu0 }
 0x1f7   : > { %v2857_v58 = vpop.f32.mrb[19].mxu0  ;;  %v3242_v53 = vadd.f32 %v3241_v24, %v3240_v40  ;;  %v3141_v12 = vadd.f32 %v3140_v50, %v3139_v3 }
 0x1f9   : > { %v3244_v15 = vadd.f32 %v3243_v38, %v3242_v53 }
 0x1fa   : > { %v4028_v45 = vpop.f32.mrb[16].mxu1 }
 0x1fb   : > { %v4196_v8 = vadd.f32 %v4164_v21, %v4028_v45  ;;  %v2029_v22 = vpop.f32.mrb[17].mxu1 }
 0x1fc   : > { %v4197_v59 = vadd.f32 %v2854_v41, %v2029_v22  ;;  %v4029_v29 = vpop.f32.mrb[18].mxu1  ;;  %v4168_v32 = vpop.f32.mrb[20].mxu0 }
 0x1fd   : > { %v3704_v17 = vpack.c.bf16 %v4196_v8, %v4196_v8  ;;  %v4198_v33 = vadd.f32 %v4165_v54, %v4029_v29  ;;  %v2032_v27 = vpop.f32.mrb[19].mxu1  ;;  %v2870_v7 = vpop.f32.mrb[21].mxu0  ;;  %v3200_v0 = vmul.f32 %v4196_v8, %v4196_v8  ;;  %v3146_v39 = vsel %vm3110_vm8, %v4196_v8, 0.0 }
 0x1fe   : > { %v3702_v55 = vpack.c.bf16 %v4197_v59, %v4197_v59  ;;  %v3142_v48 = vsel %vm3110_vm8, %v4197_v59, 0.0  ;;  %v3198_v60 = vmul.f32 %v4197_v59, %v4197_v59  ;;  %v4199_v63 = vadd.f32 %v2857_v58, %v2032_v27  ;;  %v4169_v26 = vpop.f32.mrb[22].mxu0 }
 0x1ff   : > { %3096 = vst.msk [vmem:[%s5294_s8 + $0x48] sm:$0xf] %vm3077_vm7, %v3704_v17  ;;  %v3143_v44 = vadd.f32 %v3142_v48, %v3141_v12  ;;  %v3705_v52 = vpack.c.bf16 %v4198_v33, %v4198_v33  ;;  %v2873_v6 = vpop.f32.mrb[23].mxu0  ;;  %v3201_v30 = vmul.f32 %v4198_v33, %v4198_v33  ;;  %v3148_v2 = vsel %vm3110_vm8, %v4198_v33, 0.0 }
 0x200   : > { %3094 = vst.msk [vmem:[%s5294_s8 + $0x40] sm:$0xf] %vm3077_vm7, %v3702_v55  ;;  %v3245_v56 = vsel %vm3110_vm8, %v3198_v60, 0.0  ;;  %v3703_v47 = vpack.c.bf16 %v4199_v63, %v4199_v63  ;;  %v3144_v20 = vsel %vm3110_vm8, %v4199_v63, 0.0  ;;  %v3199_v1 = vmul.f32 %v4199_v63, %v4199_v63 }
 0x201   : > { %v3246_v42 = vadd.f32 %v3245_v56, %v3244_v15  ;;  %3097 = vst.msk [vmem:[%s5294_s8 + $0x4c] sm:$0xf] %vm3077_vm7, %v3705_v52  ;;  %v3145_v43 = vadd.f32 %v3144_v20, %v3143_v44  ;;  %v3249_v13 = vsel %vm3110_vm8, %v3200_v0, 0.0  ;;  %v3251_v49 = vsel %vm3110_vm8, %v3201_v30, 0.0 }
 0x202   : > { %3095 = vst.msk [vmem:[%s5294_s8 + $0x44] sm:$0xf] %vm3077_vm7, %v3703_v47  ;;  %v4032_v51 = vpop.f32.mrb[20].mxu1  ;;  %v3247_v31 = vsel %vm3110_vm8, %v3199_v1, 0.0 }
 0x203   : > { %v3147_v4 = vadd.f32 %v3146_v39, %v3145_v43  ;;  %v4200_v62 = vadd.f32 %v4168_v32, %v4032_v51  ;;  %v2045_v36 = vpop.f32.mrb[21].mxu1  ;;  %v3248_v5 = vadd.f32 %v3247_v31, %v3246_v42 }
 0x204   : > { %v4201_v46 = vadd.f32 %v2870_v7, %v2045_v36  ;;  %v4033_v61 = vpop.f32.mrb[22].mxu1  ;;  %v4172_v9 = vpop.f32.mrb[24].mxu0 }
 0x205   : > { %v3708_v14 = vpack.c.bf16 %v4200_v62, %v4200_v62  ;;  %v3149_v19 = vadd.f32 %v3148_v2, %v3147_v4  ;;  %v2048_v18 = vpop.f32.mrb[23].mxu1  ;;  %v3250_v16 = vadd.f32 %v3249_v13, %v3248_v5  ;;  %v2886_v25 = vpop.f32.mrb[25].mxu0  ;;  %v4202_v34 = vadd.f32 %v4169_v26, %v4033_v61 }
 0x206   : > { %v3706_v35 = vpack.c.bf16 %v4201_v46, %v4201_v46  ;;  %v3150_v57 = vsel %vm3110_vm8, %v4201_v46, 0.0  ;;  %v3202_v10 = vmul.f32 %v4201_v46, %v4201_v46  ;;  %v4203_v28 = vadd.f32 %v2873_v6, %v2048_v18  ;;  %v4173_v41 = vpop.f32.mrb[26].mxu0 }
 0x207   : > { %3100 = vst.msk [vmem:[%s5294_s8 + $0x58] sm:$0xf] %vm3077_vm7, %v3708_v14  ;;  %v3151_v21 = vadd.f32 %v3150_v57, %v3149_v19  ;;  %v3252_v37 = vadd.f32 %v3251_v49, %v3250_v16  ;;  %v2889_v11 = vpop.f32.mrb[27].mxu0  ;;  %v3204_v54 = vmul.f32 %v4200_v62, %v4200_v62  ;;  %v3709_v3 = vpack.c.bf16 %v4202_v34, %v4202_v34 }
 0x208   : > { %3098 = vst.msk [vmem:[%s5294_s8 + $0x50] sm:$0xf] %vm3077_vm7, %v3706_v35  ;;  %v3253_v23 = vsel %vm3110_vm8, %v3202_v10, 0.0  ;;  %v3707_v40 = vpack.c.bf16 %v4203_v28, %v4203_v28  ;;  %v3152_v24 = vsel %vm3110_vm8, %v4203_v28, 0.0  ;;  %v3203_v50 = vmul.f32 %v4203_v28, %v4203_v28 }
 0x209   : > { %v3254_v58 = vadd.f32 %v3253_v23, %v3252_v37  ;;  %3101 = vst.msk [vmem:[%s5294_s8 + $0x5c] sm:$0xf] %vm3077_vm7, %v3709_v3  ;;  %v3153_v45 = vadd.f32 %v3152_v24, %v3151_v21  ;;  %v3154_v8 = vsel %vm3110_vm8, %v4200_v62, 0.0  ;;  %v3205_v22 = vmul.f32 %v4202_v34, %v4202_v34 }
 0x20a   : > { %v4036_v53 = vpop.f32.mrb[24].mxu1  ;;  %3099 = vst.msk [vmem:[%s5294_s8 + $0x54] sm:$0xf] %vm3077_vm7, %v3707_v40  ;;  %v3255_v59 = vsel %vm3110_vm8, %v3203_v50, 0.0  ;;  %v3257_v17 = vsel %vm3110_vm8, %v3204_v54, 0.0  ;;  %v3156_v60 = vsel %vm3110_vm8, %v4202_v34, 0.0 }
 0x20b   : > { %v4204_v12 = vadd.f32 %v4172_v9, %v4036_v53  ;;  %v2061_v38 = vpop.f32.mrb[25].mxu1  ;;  %v3155_v33 = vadd.f32 %v3154_v8, %v3153_v45  ;;  %v3256_v27 = vadd.f32 %v3255_v59, %v3254_v58  ;;  %v3259_v0 = vsel %vm3110_vm8, %v3205_v22, 0.0 }
 0x20c   : > { %v4205_v15 = vadd.f32 %v2886_v25, %v2061_v38  ;;  %v4037_v29 = vpop.f32.mrb[26].mxu1  ;;  %v4176_v48 = vpop.f32.mrb[28].mxu0 }
 0x20d   : > { %v3712_v32 = vpack.c.bf16 %v4204_v12, %v4204_v12  ;;  %v2064_v55 = vpop.f32.mrb[27].mxu1  ;;  %v2902_v52 = vpop.f32.mrb[29].mxu0  ;;  %v3258_v26 = vadd.f32 %v3257_v17, %v3256_v27  ;;  %v3157_v56 = vadd.f32 %v3156_v60, %v3155_v33  ;;  %v4206_v47 = vadd.f32 %v4173_v41, %v4037_v29 }
 0x20e   : > { %v3710_v63 = vpack.c.bf16 %v4205_v15, %v4205_v15  ;;  %v3158_v7 = vsel %vm3110_vm8, %v4205_v15, 0.0  ;;  %v3206_v44 = vmul.f32 %v4205_v15, %v4205_v15  ;;  %v4207_v20 = vadd.f32 %v2889_v11, %v2064_v55  ;;  %v4177_v6 = vpop.f32.mrb[30].mxu0 }
 0x20f   : > { %3104 = vst.msk [vmem:[%s5294_s8 + $0x68] sm:$0xf] %vm3077_vm7, %v3712_v32  ;;  %v2905_v43 = vpop.f32.mrb[31].mxu0  ;;  %v3208_v1 = vmul.f32 %v4204_v12, %v4204_v12  ;;  %v3159_v39 = vadd.f32 %v3158_v7, %v3157_v56  ;;  %v3260_v51 = vadd.f32 %v3259_v0, %v3258_v26  ;;  %v3713_v30 = vpack.c.bf16 %v4206_v47, %v4206_v47 }
 0x210   : > { %3102 = vst.msk [vmem:[%s5294_s8 + $0x60] sm:$0xf] %vm3077_vm7, %v3710_v63  ;;  %v3261_v42 = vsel %vm3110_vm8, %v3206_v44, 0.0  ;;  %v3711_v4 = vpack.c.bf16 %v4207_v20, %v4207_v20  ;;  %v3160_v31 = vsel %vm3110_vm8, %v4207_v20, 0.0  ;;  %v3207_v62 = vmul.f32 %v4207_v20, %v4207_v20 }
 0x211   : > { %v3262_v2 = vadd.f32 %v3261_v42, %v3260_v51  ;;  %3105 = vst.msk [vmem:[%s5294_s8 + $0x6c] sm:$0xf] %vm3077_vm7, %v3713_v30  ;;  %v3161_v5 = vadd.f32 %v3160_v31, %v3159_v39  ;;  %v3162_v13 = vsel %vm3110_vm8, %v4204_v12, 0.0  ;;  %v3209_v14 = vmul.f32 %v4206_v47, %v4206_v47 }
 0x212   : > { %v4040_v36 = vpop.f32.mrb[28].mxu1  ;;  %3103 = vst.msk [vmem:[%s5294_s8 + $0x64] sm:$0xf] %vm3077_vm7, %v3711_v4  ;;  %v3263_v19 = vsel %vm3110_vm8, %v3207_v62, 0.0  ;;  %v3265_v16 = vsel %vm3110_vm8, %v3208_v1, 0.0  ;;  %v3164_v49 = vsel %vm3110_vm8, %v4206_v47, 0.0 }
 0x213   : > { %v4208_v46 = vadd.f32 %v4176_v48, %v4040_v36  ;;  %v2077_v61 = vpop.f32.mrb[29].mxu1  ;;  %v3163_v35 = vadd.f32 %v3162_v13, %v3161_v5  ;;  %v3264_v57 = vadd.f32 %v3263_v19, %v3262_v2  ;;  %v3267_v54 = vsel %vm3110_vm8, %v3209_v14, 0.0 }
 0x214   : > { %v4209_v18 = vadd.f32 %v2902_v52, %v2077_v61  ;;  %v4041_v9 = vpop.f32.mrb[30].mxu1 }
 0x215   : > { %v3716_v10 = vpack.c.bf16 %v4208_v46, %v4208_v46  ;;  %v2080_v25 = vpop.f32.mrb[31].mxu1  ;;  %v3266_v41 = vadd.f32 %v3265_v16, %v3264_v57  ;;  %v3165_v37 = vadd.f32 %v3164_v49, %v3163_v35  ;;  %v4210_v23 = vadd.f32 %v4177_v6, %v4041_v9 }
 0x216   : > { %v3714_v21 = vpack.c.bf16 %v4209_v18, %v4209_v18  ;;  %v3166_v34 = vsel %vm3110_vm8, %v4209_v18, 0.0  ;;  %v3210_v28 = vmul.f32 %v4209_v18, %v4209_v18  ;;  %v4211_v11 = vadd.f32 %v2905_v43, %v2080_v25 }
 0x217   : > { %3108 = vst.msk [vmem:[%s5294_s8 + $0x78] sm:$0xf] %vm3077_vm7, %v3716_v10  ;;  %v3167_v40 = vadd.f32 %v3166_v34, %v3165_v37  ;;  %v3268_v58 = vadd.f32 %v3267_v54, %v3266_v41  ;;  %v3717_v24 = vpack.c.bf16 %v4210_v23, %v4210_v23  ;;  %v3212_v50 = vmul.f32 %v4208_v46, %v4208_v46 }
 0x218   : > { %3106 = vst.msk [vmem:[%s5294_s8 + $0x70] sm:$0xf] %vm3077_vm7, %v3714_v21  ;;  %v3269_v3 = vsel %vm3110_vm8, %v3210_v28, 0.0  ;;  %v3715_v53 = vpack.c.bf16 %v4211_v11, %v4211_v11  ;;  %v3168_v45 = vsel %vm3110_vm8, %v4211_v11, 0.0  ;;  %v3211_v12 = vmul.f32 %v4211_v11, %v4211_v11 }
 0x219   : > { %v3270_v38 = vadd.f32 %v3269_v3, %v3268_v58  ;;  %3109 = vst.msk [vmem:[%s5294_s8 + $0x7c] sm:$0xf] %vm3077_vm7, %v3717_v24  ;;  %v3169_v8 = vadd.f32 %v3168_v45, %v3167_v40  ;;  %v3170_v22 = vsel %vm3110_vm8, %v4208_v46, 0.0  ;;  %v3213_v59 = vmul.f32 %v4210_v23, %v4210_v23 }
 0x21a   : > { %3107 = vst.msk [vmem:[%s5294_s8 + $0x74] sm:$0xf] %vm3077_vm7, %v3715_v53  ;;  %v3271_v15 = vsel %vm3110_vm8, %v3211_v12, 0.0  ;;  %v3273_v33 = vsel %vm3110_vm8, %v3212_v50, 0.0  ;;  %v3172_v27 = vsel %vm3110_vm8, %v4210_v23, 0.0 }
 0x21b   : > { %v3171_v29 = vadd.f32 %v3170_v22, %v3169_v8  ;;  %v3272_v17 = vadd.f32 %v3271_v15, %v3270_v38  ;;  %v3275_v48 = vsel %vm3110_vm8, %v3213_v59, 0.0 }
 0x21d   : > { %v3173_v32 = vadd.f32 %v3172_v27, %v3171_v29  ;;  %v3274_v55 = vadd.f32 %v3273_v33, %v3272_v17 }
 0x21f   : > { %v3174_v60 = vrot.slane %v3173_v32, 4  ;;  %v3276_v63 = vadd.f32 %v3275_v48, %v3274_v55 }
 0x221   : > { %v3175_v7 = vadd.f32 %v3174_v60, %v3173_v32  ;;  %v3277_v44 = vrot.slane %v3276_v63, 4 }
 0x223   : > { %v3176_v52 = vrot.slane %v3175_v7, 2  ;;  %v3278_v26 = vadd.f32 %v3277_v44, %v3276_v63 }
 0x225   : > { %v3177_v56 = vadd.f32 %v3176_v52, %v3175_v7  ;;  %v3279_v47 = vrot.slane %v3278_v26, 2 }
 0x227   : > { %v3178_v20 = vrot.slane %v3177_v56, 1  ;;  %v3280_v6 = vadd.f32 %v3279_v47, %v3278_v26 }
 0x229   : > { %v3179_v0 = vadd.f32 %v3178_v20, %v3177_v56  ;;  %v3281_v42 = vrot.slane %v3280_v6, 1 }
 0x22b   : > { %3181 = vst.msk [vmem:[%s411_s11] sm:$0x1] %vm3180_vm9, %v3179_v0  ;;  %v3282_v43 = vadd.f32 %v3281_v42, %v3280_v6 }
 0x22d   : > { %3283 = vst.msk [vmem:[%s411_s11 + $0x1] sm:$0x1] %vm3180_vm9, %v3282_v43 }
 0x22e PF: > { %s16_s20 = sadd.s32 1, %s4508_s20   ;;  %s5453_s18 = smov %s4504_s19 }
 0x22f   : > { %p13_p5 = scmp.ge.s32.totalorder %s16_s20, 4   ;;  %s5454_s19 = smov %s5456_s21 }
 0x231   :  { %15 = sbr.rel (!%p13_p5) target bundleno = 2 (0x2), region = 92 }

// kernel: double_conv.4
= control target key start
LH: loop header
LB: loop body
LE: loop exit
PB: predicated region body
PF: predicated region fallthrough
CT: control target
= control target key end

     0   :  { %s4745_s24 = smov 0   ;;  %s4747_s25 = smov 0   ;;  %s5753_s0 = inlined_call_operand.vmem [shape: bf16[2,16,16,8], index: 0, kind: input, shape index: {}, may-alias: {0,1,2}]   ;;  %s5754_s1 = inlined_call_operand.vmem [shape: bf16[2,16,16,8], index: 1, kind: input, shape index: {}, may-alias: {0,1,2}]   ;;  %s5755_s2 = inlined_call_operand.vmem [shape: bf16[2,16,16,8], index: 2, kind: input, shape index: {}, may-alias: {0,1,2}]   ;;  %s5756_s3 = inlined_call_operand.vmem [shape: bf16[9,8,8], index: 3, kind: input, shape index: {}]   ;;  %s5757_s4 = inlined_call_operand.vmem [shape: f32[1,8], index: 4, kind: input, shape index: {}]   ;;  %s5758_s5 = inlined_call_operand.vmem [shape: f32[1,8], index: 5, kind: input, shape index: {}]   ;;  %s5759_s6 = inlined_call_operand.vmem [shape: bf16[2,16,16,8], index: 6, kind: output, shape index: {0}]   ;;  %s5760_s7 = inlined_call_operand.vmem [shape: f32[2,1,2,8], index: 7, kind: output, shape index: {1}]  }
   0x1   :  { %s4749_s26 = smov 0  }
   0x2 LB: > { %s30_s27 = sadd.s32 1, %s4699_s25  ;;  %p3604_p0 = scmp.ge.s32.totalorder %s4703_s26, 1  ;;  %s4703_s26 = sphi %s4749_s26, %s18_s26   ;;  %s4699_s25 = sphi %s4747_s25, %s5775_s25   ;;  %s4695_s24 = sphi %s4745_s24, %s5774_s24  }
   0x3   : > { %p32_p1 = scmp.ge.s32.totalorder %s30_s27, 2  ;;  %p328_p2 = scmp.lt.s32.totalorder %s4703_s26, 3 }
   0x5   : > { %s5777_s27 = smov (%p32_p1, %s30_s27), 0  ;;  %p329_p3 = pnand %p3604_p0, %p328_p2 }
   0x7   : > { %332 = sbr.rel (%p329_p3) target bundleno = 587 (0x24b), region = 44 }
   0xe   : > { %vm1161_vm0 = vcmask 1043456   ;;  %v3683_v0 = vld [vmem:[%s5756_s3 + $0x10] sm:$0xf]  ;;  %v3616_v1 = vld [vmem:[%s5756_s3 + $0x4] sm:$0xf]  ;;  %p404_p4 = scmp.lt.s32.totalorder %s4695_s24, 1 }
   0xf   : > { %4648 = vmatprep.subr.msk.bf16.mxu0 %vm1161_vm0, %v3683_v0  ;;  %4644 = vmatprep.subr.msk.bf16.mxu1 %vm1161_vm0, %v3616_v1  ;;  %v4772_v2 = vsel %vm1161_vm0, %v3683_v0, 0  ;;  %v1163_v3 = vsel %vm1161_vm0, %v3616_v1, 0  ;;  %v916_v4 = vld [vmem:[%s5756_s3] sm:$0xf]  ;;  %v3700_v5 = vld [vmem:[%s5756_s3 + $0x14] sm:$0xf] }
  0x10   : > { %5766 = vst [vmem:[#allocation2_spill] sm:$0xff] %v4772_v2  ;;  %4217 = vmatpush3.bf16.msra.mxu0 %v4772_v2  ;;  %4081 = vmatpush3.bf16.msra.mxu1 %v1163_v3  ;;  %s5779_s24 = smov (!%p404_p4, %s4695_s24), 1  ;;  %v4798_v6 = vld [vmem:[%s5757_s4] ss:$0 sm:$0xff]  ;;  %vm877_vm1 = vcmask 1040384   ;;  %v4835_v48 = vsel %vm1161_vm0, %v916_v4, 0 }
  0x11   : > { %s4785_s13 = sshll.u32 %s5779_s24, 7  ;;  %4645 = vmatprep.subr.msk.bf16.mxu1 %vm1161_vm0, %v916_v4  ;;  %4650 = vmatprep.subr.msk.bf16.mxu0 %vm1161_vm0, %v3700_v5  ;;  %v4810_v15 = vld [vmem:[%s5758_s5] ss:$0 sm:$0xff]  ;;  %vm878_vm2 = vsmask.f32 256  ;;  %v4838_v49 = vsel %vm1161_vm0, %v3700_v5, 0 }
  0x12   : > { %s4793_s16 = scalar_lea.vmem %s5753_s0, %s4785_s13  ;;  %s426_s21 = scalar_lea.vmem %s5754_s1, %s4785_s13  ;;  %v4831_v36 = vld [vmem:[%s5756_s3 + $0x18] sm:$0xf]  ;;  %vm917_vm3 = vsmask.f32 7424  ;;  %vm4851_vm4 = vmand %vm877_vm1, %vm878_vm2  ;;  %vm1112_vm5 = vcmask 64512   ;;  %vm1554_vm6 = vcmask 1046528  }
  0x13   : > { %v3840_v7 = vld [vmem:[%s4793_s16] sm:$0xff]   ;;  %v3912_v8 = vld [vmem:[%s4793_s16 + $0x8] sm:$0xff]   ;;  %v3913_v9 = vld [vmem:[%s4793_s16 + $0x10] sm:$0xff]   ;;  %v4845_v54 = vsel %vm1161_vm0, %v4831_v36, 0  ;;  %s5582_s9 = scalar_lea.vmem %s5759_s6, %s4785_s13  ;;  %vm3215_vm7 = vcmask 60416   ;;  %vm3317_vm8 = vcmask 57344  }
  0x14   : > { %v3841_v10 = vunpack.c.l.bf16 %v3840_v7  ;;  %v3842_v11 = vunpack.c.h.bf16 %v3840_v7  ;;  %v3845_v12 = vunpack.c.l.bf16 %v3912_v8  ;;  %v3846_v13 = vunpack.c.h.bf16 %v3912_v8  ;;  %v3904_v14 = vld [vmem:[%s426_s21] sm:$0xff]   ;;  %v3914_v41 = vld [vmem:[%s4793_s16 + $0x18] sm:$0xff]  }
  0x15   : > { %v3905_v16 = vunpack.c.l.bf16 %v3904_v14  ;;  %v3906_v17 = vunpack.c.h.bf16 %v3904_v14  ;;  %v3849_v18 = vunpack.c.l.bf16 %v3913_v9  ;;  %v3850_v19 = vunpack.c.h.bf16 %v3913_v9  ;;  %v4841_v50 = vld [vmem:[%s4793_s16 + $0x20] sm:$0xff]  }
  0x16   : > { %v543_v20 = vmul.f32 %v3841_v10, %v4798_v6  ;;  %v544_v21 = vmul.f32 %v3842_v11, %v4798_v6  ;;  %v545_v22 = vmul.f32 %v3845_v12, %v4798_v6  ;;  %v546_v23 = vmul.f32 %v3846_v13, %v4798_v6 }
  0x17   : > { %v663_v24 = vmul.f32 %v3905_v16, %v4798_v6  ;;  %v664_v25 = vmul.f32 %v3906_v17, %v4798_v6  ;;  %v547_v26 = vmul.f32 %v3849_v18, %v4798_v6  ;;  %v548_v27 = vmul.f32 %v3850_v19, %v4798_v6 }
  0x18   : > { %v581_v28 = vadd.f32 %v4810_v15, %v543_v20  ;;  %v582_v29 = vadd.f32 %v4810_v15, %v544_v21  ;;  %v583_v30 = vadd.f32 %v4810_v15, %v545_v22  ;;  %v584_v31 = vadd.f32 %v4810_v15, %v546_v23 }
  0x19   : > { %v665_v32 = vadd.f32 %v4810_v15, %v663_v24  ;;  %v666_v33 = vadd.f32 %v4810_v15, %v664_v25  ;;  %v585_v34 = vadd.f32 %v4810_v15, %v547_v26  ;;  %v586_v35 = vadd.f32 %v4810_v15, %v548_v27 }
  0x1a   : > { %v613_v37 = vmax.f32 %v581_v28, 0.0  ;;  %v614_v38 = vmax.f32 %v582_v29, 0.0  ;;  %v615_v39 = vmax.f32 %v583_v30, 0.0  ;;  %v616_v40 = vmax.f32 %v584_v31, 0.0 }
  0x1b   : > { %v667_v42 = vmax.f32 %v665_v32, 0.0  ;;  %v668_v43 = vmax.f32 %v666_v33, 0.0  ;;  %v617_v44 = vmax.f32 %v585_v34, 0.0  ;;  %v618_v45 = vmax.f32 %v586_v35, 0.0 }
  0x1c   : > { %v645_v46 = vpack.c.bf16 %v614_v38, %v613_v37  ;;  %v646_v47 = vpack.c.bf16 %v616_v40, %v615_v39  ;;  %v3853_v53 = vunpack.c.l.bf16 %v3914_v41  ;;  %v3854_v61 = vunpack.c.h.bf16 %v3914_v41 }
  0x1d   : > { %v669_v51 = vpack.c.bf16 %v668_v43, %v667_v42  ;;  %v647_v52 = vpack.c.bf16 %v618_v45, %v617_v44  ;;  %v3857_v62 = vunpack.c.l.bf16 %v4841_v50  ;;  %v3858_v3 = vunpack.c.h.bf16 %v4841_v50  ;;  %v3916_v50 = vld [vmem:[%s4793_s16 + $0x28] sm:$0xff]  }
  0x1e   : > { %v723_v55 = vshrl.u32 %v645_v46, 16  ;;  %v726_v56 = vshll.u32 %v645_v46, 16  ;;  %v730_v57 = vshrl.u32 %v646_v47, 16  ;;  %v733_v58 = vshll.u32 %v646_v47, 16 }
  0x1f   : > { %v696_v59 = vmul.bf16 0.0, %v669_v51  ;;  %v737_v60 = vshrl.u32 %v647_v52, 16  ;;  %v740_v1 = vshll.u32 %v647_v52, 16  ;;  %v549_v9 = vmul.f32 %v3853_v53, %v4798_v6 }
  0x20   : > { %v725_v63 = vrot.slane %v723_v55, 7  ;;  %v732_v0 = vrot.slane %v730_v57, 7  ;;  %v550_v17 = vmul.f32 %v3854_v61, %v4798_v6  ;;  %v551_v18 = vmul.f32 %v3857_v62, %v4798_v6 }
  0x21   : > { %v716_v5 = vshrl.u32 %v696_v59, 16  ;;  %v719_v7 = vshll.u32 %v696_v59, 16  ;;  %v739_v8 = vrot.slane %v737_v60, 7  ;;  %v587_v26 = vadd.f32 %v4810_v15, %v549_v9 }
  0x22   : > { %v728_v10 = vor.u32 %v726_v56, %v725_v63  ;;  %v4858_v11 = vsel %vm4851_vm4, %v725_v63, 0  ;;  %v735_v12 = vor.u32 %v733_v58, %v732_v0  ;;  %v4862_v13 = vsel %vm4851_vm4, %v732_v0, 0  ;;  %v3917_v56 = vld [vmem:[%s4793_s16 + $0x30] sm:$0xff]  }
  0x23   : > { %v938_v14 = vshll.u32 %v4858_v11, 16  ;;  %v950_v16 = vshll.u32 %v4862_v13, 16  ;;  %v718_v21 = vrot.slane %v716_v5, 7  ;;  %v742_v22 = vor.u32 %v740_v1, %v739_v8 }
  0x24   : > { %v4870_v19 = vsel %vm4851_vm4, 0, %v728_v10  ;;  %v4874_v20 = vsel %vm4851_vm4, 0, %v735_v12  ;;  %v4896_v38 = vsel %vm4851_vm4, %v739_v8, 0  ;;  %v588_v47 = vadd.f32 %v4810_v15, %v550_v17 }
  0x25   : > { %v931_v23 = vshrl.u32 %v4870_v19, 16  ;;  %v933_v24 = vshll.u32 %v4870_v19, 16  ;;  %v940_v25 = vrot.slane %v938_v14, 1  ;;  %v943_v27 = vshrl.u32 %v4874_v20, 16  ;;  %v3918_v14 = vld [vmem:[%s4793_s16 + $0x38] sm:$0xff]  }
  0x26   : > { %v945_v28 = vshll.u32 %v4874_v20, 16  ;;  %v721_v29 = vor.u32 %v719_v7, %v718_v21  ;;  %v4883_v30 = vsel %vm4851_vm4, %v718_v21, 0  ;;  %v952_v32 = vrot.slane %v950_v16, 1  ;;  %v4930_v21 = vld [vmem:[%s5756_s3 + $0x8] sm:$0xf] }
  0x27   : > { %v935_v31 = vrot.slane %v933_v24, 1  ;;  %v926_v33 = vshll.u32 %v4883_v30, 16  ;;  %v4888_v34 = vsel %vm4851_vm4, 0, %v742_v22  ;;  %v962_v46 = vshll.u32 %v4896_v38, 16 }
  0x28   : > { %v947_v35 = vrot.slane %v945_v28, 1  ;;  %v4892_v37 = vsel %vm4851_vm4, 0, %v721_v29  ;;  %v955_v39 = vshrl.u32 %v4888_v34, 16  ;;  %v957_v45 = vshll.u32 %v4888_v34, 16 }
  0x29   : > { %v936_v40 = vor.u32 %v935_v31, %v931_v23  ;;  %v919_v41 = vshrl.u32 %v4892_v37, 16  ;;  %v921_v42 = vshll.u32 %v4892_v37, 16  ;;  %v928_v43 = vrot.slane %v926_v33, 1 }
  0x2a   : > { %v948_v44 = vor.u32 %v947_v35, %v943_v27  ;;  %v619_v53 = vmax.f32 %v587_v26, 0.0  ;;  %v552_v55 = vmul.f32 %v3858_v3, %v4798_v6  ;;  %v959_v58 = vrot.slane %v957_v45, 1 }
  0x2b   : > { %v941_v51 = vsel %vm917_vm3, %v936_v40, %v940_v25  ;;  %v923_v52 = vrot.slane %v921_v42, 1  ;;  %v964_v59 = vrot.slane %v962_v46, 1  ;;  %v620_v60 = vmax.f32 %v588_v47, 0.0 }
  0x2c   : > { %4218 = vmatprep.mubr.msk.bf16.mxu0 %vm1112_vm5, %v941_v51  ;;  %v4910_v57 = vsel %vm917_vm3, %v948_v44, %v952_v32  ;;  %v589_v62 = vadd.f32 %v4810_v15, %v551_v18  ;;  %v590_v63 = vadd.f32 %v4810_v15, %v552_v55  ;;  %v3861_v0 = vunpack.c.l.bf16 %v3916_v50 }
  0x2d   : > { %4219 = vmatmul.mubr.msk.bf16.vlgmr.msra.gmra.mrb[0].mxu0 %vm1112_vm5, %v4910_v57  ;;  %v924_v61 = vor.u32 %v923_v52, %v919_v41  ;;  %v960_v1 = vor.u32 %v959_v58, %v955_v39  ;;  %v648_v3 = vpack.c.bf16 %v620_v60, %v619_v53  ;;  %v3862_v5 = vunpack.c.h.bf16 %v3916_v50 }
  0x2e   : > { %4251 = vmatpush3.bf16.msra.mxu0 %v4838_v49  ;;  %v3865_v7 = vunpack.c.l.bf16 %v3917_v56  ;;  %v621_v9 = vmax.f32 %v589_v62, 0.0  ;;  %v622_v10 = vmax.f32 %v590_v63, 0.0  ;;  %v553_v12 = vmul.f32 %v3861_v0, %v4798_v6 }
  0x2f   : > { %v929_v8 = vsel %vm917_vm3, %v924_v61, %v928_v43  ;;  %4651 = vmatprep.subr.msk.bf16.mxu0 %vm1161_vm0, %v4831_v36  ;;  %v4924_v16 = vsel %vm917_vm3, %v960_v1, %v964_v59  ;;  %v744_v49 = vshrl.u32 %v648_v3, 16  ;;  %v747_v17 = vshll.u32 %v648_v3, 16 }
  0x30   : > { %4082 = vmatprep.mubr.msk.bf16.mxu1 %vm1112_vm5, %v929_v8  ;;  %v554_v18 = vmul.f32 %v3862_v5, %v4798_v6  ;;  %4222 = vmatprep.mubr.msk.bf16.mxu0 %vm1112_vm5, %v4924_v16  ;;  %v649_v36 = vpack.c.bf16 %v622_v10, %v621_v9  ;;  %v591_v22 = vadd.f32 %v4810_v15, %v553_v12  ;;  %v3866_v23 = vunpack.c.h.bf16 %v3917_v56 }
  0x31   : > { %4083 = vmatmul.mubr.msk.bf16.vlgmr.msra.gmra.mrb[0].mxu1 %vm1112_vm5, %v941_v51  ;;  %v555_v24 = vmul.f32 %v3865_v7, %v4798_v6  ;;  %v746_v25 = vrot.slane %v744_v49, 7  ;;  %v3869_v27 = vunpack.c.l.bf16 %v3918_v14  ;;  %v3870_v28 = vunpack.c.h.bf16 %v3918_v14 }
  0x32   : > { %4115 = vmatpush3.bf16.msra.mxu1 %v4835_v48  ;;  %4086 = vmatprep.mubr.msk.bf16.mxu1 %vm1112_vm5, %v4910_v57  ;;  %v592_v26 = vadd.f32 %v4810_v15, %v554_v18  ;;  %v751_v29 = vshrl.u32 %v649_v36, 16  ;;  %v754_v31 = vshll.u32 %v649_v36, 16  ;;  %v623_v32 = vmax.f32 %v591_v22, 0.0 }
  0x33   : > { %v556_v33 = vmul.f32 %v3866_v23, %v4798_v6  ;;  %4646 = vmatprep.subr.msk.bf16.mxu1 %vm1161_vm0, %v4930_v21  ;;  %v749_v35 = vor.u32 %v747_v17, %v746_v25  ;;  %v4946_v48 = vsel %vm4851_vm4, %v746_v25, 0  ;;  %v593_v40 = vadd.f32 %v4810_v15, %v555_v24 }
  0x34   : > { %v624_v39 = vmax.f32 %v592_v26, 0.0  ;;  %v974_v41 = vshll.u32 %v4946_v48, 16  ;;  %v753_v42 = vrot.slane %v751_v29, 7  ;;  %v557_v44 = vmul.f32 %v3869_v27, %v4798_v6 }
  0x35   : > { %v594_v43 = vadd.f32 %v4810_v15, %v556_v33  ;;  %v4954_v45 = vsel %vm4851_vm4, 0, %v749_v35  ;;  %v625_v47 = vmax.f32 %v593_v40, 0.0  ;;  %v558_v50 = vmul.f32 %v3870_v28, %v4798_v6 }
  0x36   : > { %v650_v46 = vpack.c.bf16 %v624_v39, %v623_v32  ;;  %v967_v51 = vshrl.u32 %v4954_v45, 16  ;;  %v969_v52 = vshll.u32 %v4954_v45, 16  ;;  %v976_v53 = vrot.slane %v974_v41, 1 }
  0x37   : > { %v756_v55 = vor.u32 %v754_v31, %v753_v42  ;;  %v4961_v56 = vsel %vm4851_vm4, %v753_v42, 0  ;;  %v626_v60 = vmax.f32 %v594_v43, 0.0  ;;  %v595_v0 = vadd.f32 %v4810_v15, %v557_v44 }
  0x38   : > { %v758_v58 = vshrl.u32 %v650_v46, 16  ;;  %v761_v59 = vshll.u32 %v650_v46, 16  ;;  %v971_v61 = vrot.slane %v969_v52, 1  ;;  %v986_v63 = vshll.u32 %v4961_v56, 16 }
  0x39   : > { %4087 = vmatmul.mubr.msk.bf16.gmra.mrb[4].mxu1 %vm1112_vm5, %v4924_v16  ;;  %v4967_v62 = vsel %vm4851_vm4, 0, %v756_v55  ;;  %v651_v7 = vpack.c.bf16 %v626_v60, %v625_v47  ;;  %v596_v10 = vadd.f32 %v4810_v15, %v558_v50  ;;  %v627_v12 = vmax.f32 %v595_v0, 0.0 }
  0x3a   : > { %v979_v1 = vshrl.u32 %v4967_v62, 16  ;;  %v981_v3 = vshll.u32 %v4967_v62, 16  ;;  %v760_v5 = vrot.slane %v758_v58, 7  ;;  %v972_v8 = vor.u32 %v971_v61, %v967_v51 }
  0x3b   : > { %v988_v9 = vrot.slane %v986_v63, 1  ;;  %v765_v18 = vshrl.u32 %v651_v7, 16  ;;  %v768_v23 = vshll.u32 %v651_v7, 16  ;;  %v628_v24 = vmax.f32 %v596_v10, 0.0 }
  0x3c   : > { %v983_v14 = vrot.slane %v981_v3, 1  ;;  %v763_v49 = vor.u32 %v761_v59, %v760_v5  ;;  %v4976_v17 = vsel %vm4851_vm4, %v760_v5, 0  ;;  %v4979_v36 = vsel %vm917_vm3, %v972_v8, %v976_v53 }
  0x3d   : > { %v998_v22 = vshll.u32 %v4976_v17, 16  ;;  %v1559_v25 = vrot.slane %v4858_v11, 1  ;;  %4223 = vmatmul.mubr.msk.bf16.gmra.mrb[4].mxu0 %vm1112_vm5, %v4979_v36  ;;  %4090 = vmatprep.mubr.msk.bf16.mxu1 %vm1112_vm5, %v4979_v36  ;;  %v767_v28 = vrot.slane %v765_v18, 7  ;;  %v1562_v29 = vrot.slane %v4862_v13, 1  ;;  %v3919_v11 = vld [vmem:[%s4793_s16 + $0x40] sm:$0xff]   ;;  %v3920_v18 = vld [vmem:[%s4793_s16 + $0x48] sm:$0xff]  }
  0x3e   : > { %v984_v26 = vor.u32 %v983_v14, %v979_v1  ;;  %v4987_v27 = vsel %vm4851_vm4, 0, %v763_v49  ;;  %v652_v33 = vpack.c.bf16 %v628_v24, %v627_v12  ;;  %v1558_v41 = vrot.slane %v4870_v19, 1 }
  0x3f   : > { %v991_v31 = vshrl.u32 %v4987_v27, 16  ;;  %v993_v32 = vshll.u32 %v4987_v27, 16  ;;  %v770_v39 = vor.u32 %v768_v23, %v767_v28  ;;  %v5000_v40 = vsel %vm4851_vm4, %v767_v28, 0  ;;  %v3921_v28 = vld [vmem:[%s4793_s16 + $0x50] sm:$0xff]  }
  0x40   : > { %v4996_v35 = vsel %vm917_vm3, %v984_v26, %v988_v9  ;;  %v1000_v42 = vrot.slane %v998_v22, 1  ;;  %v1010_v43 = vshll.u32 %v5000_v40, 16  ;;  %v772_v44 = vshrl.u32 %v652_v33, 16 }
  0x41   : > { %4226 = vmatprep.mubr.msk.bf16.mxu0 %vm1112_vm5, %v4996_v35  ;;  %v995_v13 = vrot.slane %v993_v32, 1  ;;  %4091 = vmatmul.mubr.msk.bf16.gmra.mrb[8].mxu1 %vm1112_vm5, %v4996_v35  ;;  %v5010_v46 = vsel %vm4851_vm4, 0, %v770_v39  ;;  %v775_v47 = vshll.u32 %v652_v33, 16  ;;  %v3873_v50 = vunpack.c.l.bf16 %v3919_v11 }
  0x42   : > { %v3874_v51 = vunpack.c.h.bf16 %v3919_v11  ;;  %v1003_v53 = vshrl.u32 %v5010_v46, 16  ;;  %v1005_v55 = vshll.u32 %v5010_v46, 16  ;;  %v1561_v58 = vrot.slane %v4874_v20, 1 }
  0x43   : > { %v996_v52 = vor.u32 %v995_v13, %v991_v31  ;;  %v1012_v59 = vrot.slane %v1010_v43, 1  ;;  %v774_v60 = vrot.slane %v772_v44, 7  ;;  %v559_v61 = vmul.f32 %v3873_v50, %v4798_v6 }
  0x44   : > { %v560_v63 = vmul.f32 %v3874_v51, %v4798_v6  ;;  %v1007_v1 = vrot.slane %v1005_v55, 1  ;;  %v1564_v3 = vrot.slane %v4888_v34, 1  ;;  %v1565_v5 = vrot.slane %v4896_v38, 1 }
  0x45   : > { %v5018_v0 = vsel %vm917_vm3, %v996_v52, %v1000_v42  ;;  %v777_v7 = vor.u32 %v775_v47, %v774_v60  ;;  %v5026_v8 = vsel %vm4851_vm4, %v774_v60, 0  ;;  %v597_v9 = vadd.f32 %v4810_v15, %v559_v61 }
  0x46   : > { %4227 = vmatmul.mubr.msk.bf16.gmra.mrb[8].mxu0 %vm1112_vm5, %v5018_v0  ;;  %4094 = vmatprep.mubr.msk.bf16.mxu1 %vm1112_vm5, %v5018_v0  ;;  %v598_v10 = vadd.f32 %v4810_v15, %v560_v63  ;;  %v1008_v12 = vor.u32 %v1007_v1, %v1003_v53  ;;  %v1022_v14 = vshll.u32 %v5026_v8, 16  ;;  %v5034_v38 = vsel %vm1554_vm6, %v1558_v41, %v1559_v25 }
  0x47   : > { %v5037_v49 = vsel %vm1554_vm6, %v1561_v58, %v1562_v29  ;;  %v5042_v22 = vsel %vm4851_vm4, 0, %v777_v7  ;;  %v629_v23 = vmax.f32 %v597_v9, 0.0  ;;  %v1567_v26 = vrot.slane %v4954_v45, 1  ;;  %v3922_v9 = vld [vmem:[%s4793_s16 + $0x58] sm:$0xff]  }
  0x48   : > { %v630_v24 = vmax.f32 %v598_v10, 0.0  ;;  %v5047_v31 = vsel %vm917_vm3, %v1008_v12, %v1012_v59  ;;  %v1015_v32 = vshrl.u32 %v5042_v22, 16  ;;  %v1017_v25 = vshll.u32 %v5042_v22, 16 }
  0x49   : > { %v1568_v29 = vrot.slane %v4946_v48, 1  ;;  %4230 = vmatprep.mubr.msk.bf16.mxu0 %vm1112_vm5, %v5047_v31  ;;  %4095 = vmatmul.mubr.msk.bf16.gmra.mrb[12].mxu1 %vm1112_vm5, %v5047_v31  ;;  %v5057_v11 = vsel %vm1554_vm6, %v1564_v3, %v1565_v5  ;;  %v3877_v39 = vunpack.c.l.bf16 %v3920_v18  ;;  %v3878_v41 = vunpack.c.h.bf16 %v3920_v18 }
  0x4a   : > { %v653_v33 = vpack.c.bf16 %v630_v24, %v629_v23  ;;  %v1019_v13 = vrot.slane %v1017_v25, 1  ;;  %v1024_v42 = vrot.slane %v1022_v14, 1  ;;  %v3881_v43 = vunpack.c.l.bf16 %v3921_v28 }
  0x4b   : > { %v3882_v44 = vunpack.c.h.bf16 %v3921_v28  ;;  %v561_v48 = vmul.f32 %v3877_v39, %v4798_v6  ;;  %v562_v51 = vmul.f32 %v3878_v41, %v4798_v6  ;;  %v5062_v53 = vsel %vm1554_vm6, %v1567_v26, %v1568_v29 }
  0x4c   : > { %v779_v47 = vshrl.u32 %v653_v33, 16  ;;  %v782_v50 = vshll.u32 %v653_v33, 16  ;;  %v1020_v52 = vor.u32 %v1019_v13, %v1015_v32  ;;  %v563_v55 = vmul.f32 %v3881_v43, %v4798_v6 }
  0x4d   : > { %v564_v58 = vmul.f32 %v3882_v44, %v4798_v6  ;;  %v599_v60 = vadd.f32 %v4810_v15, %v561_v48  ;;  %v600_v61 = vadd.f32 %v4810_v15, %v562_v51  ;;  %v1570_v63 = vrot.slane %v4967_v62, 1 }
  0x4e   : > { %v781_v59 = vrot.slane %v779_v47, 7  ;;  %v5070_v1 = vsel %vm917_vm3, %v1020_v52, %v1024_v42  ;;  %v601_v3 = vadd.f32 %v4810_v15, %v563_v55  ;;  %v1571_v7 = vrot.slane %v4961_v56, 1  ;;  %v3923_v42 = vld [vmem:[%s4793_s16 + $0x60] sm:$0xff]  }
  0x4f   : > { %v602_v5 = vadd.f32 %v4810_v15, %v564_v58  ;;  %4231 = vmatmul.mubr.msk.bf16.gmra.mrb[12].mxu0 %vm1112_vm5, %v5070_v1  ;;  %4098 = vmatprep.mubr.msk.bf16.mxu1 %vm1112_vm5, %v5070_v1  ;;  %v631_v14 = vmax.f32 %v599_v60, 0.0  ;;  %v632_v18 = vmax.f32 %v600_v61, 0.0  ;;  %v1573_v26 = vrot.slane %v4987_v27, 1 }
  0x50   : > { %v784_v10 = vor.u32 %v782_v50, %v781_v59  ;;  %v5082_v12 = vsel %vm4851_vm4, %v781_v59, 0  ;;  %4252 = vmatprep.mubr.msk.bf16.mxu0 %vm1112_vm5, %v5034_v38  ;;  %v633_v23 = vmax.f32 %v601_v3, 0.0  ;;  %v3885_v25 = vunpack.c.l.bf16 %v3922_v9 }
  0x51   : > { %v1034_v56 = vshll.u32 %v5082_v12, 16  ;;  %v634_v24 = vmax.f32 %v602_v5, 0.0  ;;  %v654_v32 = vpack.c.bf16 %v632_v18, %v631_v14  ;;  %v3886_v29 = vunpack.c.h.bf16 %v3922_v9  ;;  %v5106_v9 = vld [vmem:[%s5756_s3 + $0x1c] sm:$0xf] }
  0x52   : > { %v5090_v28 = vsel %vm4851_vm4, 0, %v784_v10  ;;  %v5095_v13 = vsel %vm1554_vm6, %v1570_v63, %v1571_v7  ;;  %v565_v50 = vmul.f32 %v3885_v25, %v4798_v6  ;;  %v3889_v60 = vunpack.c.l.bf16 %v3923_v42 }
  0x53   : > { %v1027_v33 = vshrl.u32 %v5090_v28, 16  ;;  %v1029_v39 = vshll.u32 %v5090_v28, 16  ;;  %v655_v41 = vpack.c.bf16 %v634_v24, %v633_v23  ;;  %v1036_v43 = vrot.slane %v1034_v56, 1 }
  0x54   : > { %v786_v44 = vshrl.u32 %v654_v32, 16  ;;  %v789_v47 = vshll.u32 %v654_v32, 16  ;;  %v566_v55 = vmul.f32 %v3886_v29, %v4798_v6  ;;  %v603_v59 = vadd.f32 %v4810_v15, %v565_v50 }
  0x55   : > { %v1031_v48 = vrot.slane %v1029_v39, 1  ;;  %v793_v51 = vshrl.u32 %v655_v41, 16  ;;  %v796_v52 = vshll.u32 %v655_v41, 16  ;;  %v3890_v61 = vunpack.c.h.bf16 %v3923_v42 }
  0x56   : > { %v788_v58 = vrot.slane %v786_v44, 7  ;;  %v1574_v63 = vrot.slane %v4976_v17, 1  ;;  %v604_v7 = vadd.f32 %v4810_v15, %v566_v55  ;;  %v635_v18 = vmax.f32 %v603_v59, 0.0  ;;  %v3924_v59 = vld [vmem:[%s4793_s16 + $0x68] sm:$0xff]  }
  0x57   : > { %v1032_v3 = vor.u32 %v1031_v48, %v1027_v33  ;;  %v795_v5 = vrot.slane %v793_v51, 7  ;;  %4253 = vmatmul.mubr.msk.bf16.vlgmr.msra.gmra.mrb[0].mxu0 %vm1112_vm5, %v5037_v49  ;;  %v567_v56 = vmul.f32 %v3889_v60, %v4798_v6  ;;  %v568_v33 = vmul.f32 %v3890_v61, %v4798_v6 }
  0x58   : > { %v791_v10 = vor.u32 %v789_v47, %v788_v58  ;;  %v5112_v14 = vsel %vm4851_vm4, %v788_v58, 0  ;;  %4285 = vmatpush3.bf16.msra.mxu0 %v4845_v54  ;;  %4256 = vmatprep.mubr.msk.bf16.mxu0 %vm1112_vm5, %v5057_v11  ;;  %v636_v54 = vmax.f32 %v604_v7, 0.0  ;;  %v3925_v7 = vld [vmem:[%s4793_s16 + $0x70] sm:$0xff]  }
  0x59   : > { %v5116_v17 = vsel %vm917_vm3, %v1032_v3, %v1036_v43  ;;  %v1046_v23 = vshll.u32 %v5112_v14, 16  ;;  %v798_v24 = vor.u32 %v796_v52, %v795_v5  ;;  %v5124_v32 = vsel %vm4851_vm4, %v795_v5, 0  ;;  %4652 = vmatprep.subr.msk.bf16.mxu0 %vm1161_vm0, %v5106_v9 }
  0x5a   : > { %4099 = vmatmul.mubr.msk.bf16.gmra.mrb[16].mxu1 %vm1112_vm5, %v5116_v17  ;;  %v5130_v25 = vsel %vm4851_vm4, 0, %v791_v10  ;;  %v1058_v29 = vshll.u32 %v5124_v32, 16  ;;  %v1576_v43 = vrot.slane %v5010_v46, 1  ;;  %v656_v48 = vpack.c.bf16 %v636_v54, %v635_v18 }
  0x5b   : > { %v1039_v39 = vshrl.u32 %v5130_v25, 16  ;;  %v1041_v41 = vshll.u32 %v5130_v25, 16  ;;  %v5140_v42 = vsel %vm4851_vm4, 0, %v798_v24  ;;  %v1048_v44 = vrot.slane %v1046_v23, 1 }
  0x5c   : > { %v1051_v47 = vshrl.u32 %v5140_v42, 16  ;;  %v1053_v50 = vshll.u32 %v5140_v42, 16  ;;  %v1060_v52 = vrot.slane %v1058_v29, 1  ;;  %v605_v55 = vadd.f32 %v4810_v15, %v567_v56 }
  0x5d   : > { %v1043_v51 = vrot.slane %v1041_v41, 1  ;;  %v606_v58 = vadd.f32 %v4810_v15, %v568_v33  ;;  %v800_v61 = vshrl.u32 %v656_v48, 16  ;;  %v803_v3 = vshll.u32 %v656_v48, 16 }
  0x5e   : > { %v1055_v60 = vrot.slane %v1053_v50, 1  ;;  %v1577_v5 = vrot.slane %v5000_v40, 1  ;;  %v5153_v23 = vsel %vm1554_vm6, %v1573_v26, %v1574_v63  ;;  %v637_v18 = vmax.f32 %v605_v55, 0.0 }
  0x5f   : > { %v1044_v10 = vor.u32 %v1043_v51, %v1039_v39  ;;  %v638_v24 = vmax.f32 %v606_v58, 0.0  ;;  %4257 = vmatmul.mubr.msk.bf16.gmra.mrb[4].mxu0 %vm1112_vm5, %v5062_v53  ;;  %v802_v29 = vrot.slane %v800_v61, 7  ;;  %v1579_v54 = vrot.slane %v5042_v22, 1 }
  0x60   : > { %v1056_v56 = vor.u32 %v1055_v60, %v1051_v47  ;;  %v3893_v33 = vunpack.c.l.bf16 %v3924_v59  ;;  %4260 = vmatprep.mubr.msk.bf16.mxu0 %vm1112_vm5, %v5095_v13  ;;  %v3894_v39 = vunpack.c.h.bf16 %v3924_v59  ;;  %v3897_v26 = vunpack.c.l.bf16 %v3925_v7 }
  0x61   : > { %v5159_v41 = vsel %vm917_vm3, %v1044_v10, %v1048_v44  ;;  %v657_v40 = vpack.c.bf16 %v638_v24, %v637_v18  ;;  %v805_v47 = vor.u32 %v803_v3, %v802_v29  ;;  %v5170_v50 = vsel %vm4851_vm4, %v802_v29, 0 }
  0x62   : > { %4102 = vmatprep.mubr.msk.bf16.mxu1 %vm1112_vm5, %v5159_v41  ;;  %v5166_v63 = vsel %vm917_vm3, %v1056_v56, %v1060_v52  ;;  %v5173_v44 = vsel %vm1554_vm6, %v1576_v43, %v1577_v5  ;;  %v1070_v48 = vshll.u32 %v5170_v50, 16  ;;  %v569_v58 = vmul.f32 %v3893_v33, %v4798_v6 }
  0x63   : > { %5769 = vst [vmem:[#allocation3_spill] sm:$0xff] %v5166_v63  ;;  %4103 = vmatmul.mubr.msk.bf16.gmra.mrb[20].mxu1 %vm1112_vm5, %v5166_v63  ;;  %v807_v51 = vshrl.u32 %v657_v40, 16  ;;  %v810_v55 = vshll.u32 %v657_v40, 16  ;;  %v5181_v52 = vsel %vm4851_vm4, 0, %v805_v47  ;;  %v570_v59 = vmul.f32 %v3894_v39, %v4798_v6 }
  0x64   : > { %v3898_v60 = vunpack.c.h.bf16 %v3925_v7  ;;  %v571_v61 = vmul.f32 %v3897_v26, %v4798_v6  ;;  %v1063_v43 = vshrl.u32 %v5181_v52, 16  ;;  %v1065_v3 = vshll.u32 %v5181_v52, 16 }
  0x65   : > { %v809_v5 = vrot.slane %v807_v51, 7  ;;  %v1580_v10 = vrot.slane %v5026_v8, 1  ;;  %v607_v18 = vadd.f32 %v4810_v15, %v569_v58  ;;  %v608_v24 = vadd.f32 %v4810_v15, %v570_v59 }
  0x66   : > { %v572_v56 = vmul.f32 %v3898_v60, %v4798_v6  ;;  %v609_v29 = vadd.f32 %v4810_v15, %v571_v61  ;;  %v1067_v33 = vrot.slane %v1065_v3, 1  ;;  %v1072_v40 = vrot.slane %v1070_v48, 1 }
  0x67   : > { %v812_v7 = vor.u32 %v810_v55, %v809_v5  ;;  %v5194_v39 = vsel %vm4851_vm4, %v809_v5, 0  ;;  %4261 = vmatmul.mubr.msk.bf16.gmra.mrb[8].mxu0 %vm1112_vm5, %v5153_v23  ;;  %v639_v26 = vmax.f32 %v607_v18, 0.0  ;;  %v640_v47 = vmax.f32 %v608_v24, 0.0 }
  0x68   : > { %v1082_v8 = vshll.u32 %v5194_v39, 16  ;;  %v610_v51 = vadd.f32 %v4810_v15, %v572_v56  ;;  %v1068_v58 = vor.u32 %v1067_v33, %v1063_v43  ;;  %4264 = vmatprep.mubr.msk.bf16.mxu0 %vm1112_vm5, %v5173_v44  ;;  %v641_v48 = vmax.f32 %v609_v29, 0.0 }
  0x69   : > { %v5202_v59 = vsel %vm4851_vm4, 0, %v812_v7  ;;  %v1582_v55 = vrot.slane %v5090_v28, 1  ;;  %v658_v3 = vpack.c.bf16 %v640_v47, %v639_v26  ;;  %v1583_v5 = vrot.slane %v5082_v12, 1 }
  0x6a   : > { %v1075_v60 = vshrl.u32 %v5202_v59, 16  ;;  %v1077_v61 = vshll.u32 %v5202_v59, 16  ;;  %v5211_v43 = vsel %vm917_vm3, %v1068_v58, %v1072_v40  ;;  %v642_v18 = vmax.f32 %v610_v51, 0.0  ;;  %v3926_v58 = vld [vmem:[%s4793_s16 + $0x78] sm:$0xff]   ;;  %s3805_s16 = sadd.s32 120, %s4785_s13  ;;  %s3613_s13 = sshll.u32 %s5779_s24, 1 }
  0x6b   : > { %5770 = vst [vmem:[#allocation4_spill] sm:$0xff] %v5211_v43  ;;  %4106 = vmatprep.mubr.msk.bf16.mxu1 %vm1112_vm5, %v5211_v43  ;;  %v1084_v56 = vrot.slane %v1082_v8, 1  ;;  %v814_v29 = vshrl.u32 %v658_v3, 16  ;;  %v817_v33 = vshll.u32 %v658_v3, 16  ;;  %v5216_v7 = vsel %vm1554_vm6, %v1579_v54, %v1580_v10  ;;  %s443_s19 = scalar_lea.vmem %s5755_s2, %s3805_s16  ;;  %s465_s12 = scalar_lea.vmem %s5760_s7, %s3613_s13 }
  0x6c   : > { %v1079_v24 = vrot.slane %v1077_v61, 1  ;;  %v659_v2 = vpack.c.bf16 %v642_v18, %v641_v48  ;;  %v5219_v12 = vsel %vm1554_vm6, %v1582_v55, %v1583_v5  ;;  %v1585_v51 = vrot.slane %v5130_v25, 1 }
  0x6d   : > { %v816_v26 = vrot.slane %v814_v29, 7  ;;  %v1586_v10 = vrot.slane %v5112_v14, 1  ;;  %v1588_v55 = vrot.slane %v5140_v42, 1  ;;  %v3901_v61 = vunpack.c.l.bf16 %v3926_v58 }
  0x6e   : > { %v1080_v63 = vor.u32 %v1079_v24, %v1075_v60  ;;  %v821_v47 = vshrl.u32 %v659_v2, 16  ;;  %v824_v40 = vshll.u32 %v659_v2, 16  ;;  %v1589_v60 = vrot.slane %v5124_v32, 1 }
  0x6f   : > { %4265 = vmatmul.mubr.msk.bf16.gmra.mrb[12].mxu0 %vm1112_vm5, %v5216_v7  ;;  %v819_v8 = vor.u32 %v817_v33, %v816_v26  ;;  %v912_v54 = vsel %vm4851_vm4, %v816_v26, 0  ;;  %v3902_v18 = vunpack.c.h.bf16 %v3926_v58  ;;  %v573_v29 = vmul.f32 %v3901_v61, %v4798_v6 }
  0x70   : > { %v5224_v43 = vsel %vm917_vm3, %v1080_v63, %v1084_v56  ;;  %v1094_v48 = vshll.u32 %v912_v54, 16  ;;  %v823_v2 = vrot.slane %v821_v47, 7  ;;  %4268 = vmatprep.mubr.msk.bf16.mxu0 %vm1112_vm5, %v5219_v12  ;;  %v5246_v56 = vsel %vm1554_vm6, %v1585_v51, %v1586_v10 }
  0x71   : > { %4107 = vmatmul.mubr.msk.bf16.gmra.mrb[24].mxu1 %vm1112_vm5, %v5224_v43  ;;  %v5237_v63 = vsel %vm4851_vm4, 0, %v819_v8  ;;  %v5256_v58 = vsel %vm1554_vm6, %v1588_v55, %v1589_v60  ;;  %v574_v51 = vmul.f32 %v3902_v18, %v4798_v6  ;;  %v611_v10 = vadd.f32 %v4810_v15, %v573_v29 }
  0x72   : > { %v1087_v3 = vshrl.u32 %v5237_v63, 16  ;;  %v1089_v14 = vshll.u32 %v5237_v63, 16  ;;  %v826_v5 = vor.u32 %v824_v40, %v823_v2  ;;  %v913_v24 = vsel %vm4851_vm4, %v823_v2, 0 }
  0x73   : > { %v1096_v26 = vrot.slane %v1094_v48, 1  ;;  %v1106_v47 = vshll.u32 %v913_v24, 16  ;;  %v1591_v48 = vrot.slane %v5181_v52, 1  ;;  %v1592_v55 = vrot.slane %v5170_v50, 1 }
  0x74   : > { %v1091_v33 = vrot.slane %v1089_v14, 1  ;;  %v5251_v32 = vsel %vm4851_vm4, 0, %v826_v5  ;;  %v612_v60 = vadd.f32 %v4810_v15, %v574_v51  ;;  %v643_v6 = vmax.f32 %v611_v10, 0.0 }
  0x75   : > { %v1099_v8 = vshrl.u32 %v5251_v32, 16  ;;  %v1101_v40 = vshll.u32 %v5251_v32, 16  ;;  %v1108_v14 = vrot.slane %v1106_v47, 1  ;;  %v1594_v18 = vrot.slane %v5202_v59, 1 }
  0x76   : > { %v1092_v2 = vor.u32 %v1091_v33, %v1087_v3  ;;  %v1595_v29 = vrot.slane %v5194_v39, 1  ;;  %v644_v33 = vmax.f32 %v612_v60, 0.0  ;;  %v5280_v50 = vsel %vm1554_vm6, %v1591_v48, %v1592_v55  ;;  %v5298_v55 = vld [vmem:[%s5756_s3 + $0xc] sm:$0xf] }
  0x77   : > { %v1103_v61 = vrot.slane %v1101_v40, 1  ;;  %4269 = vmatmul.mubr.msk.bf16.gmra.mrb[16].mxu0 %vm1112_vm5, %v5246_v56  ;;  %v1597_v39 = vrot.slane %v5237_v63, 1  ;;  %v1600_v10 = vrot.slane %v5251_v32, 1 }
  0x78   : > { %v5264_v5 = vsel %vm917_vm3, %v1092_v2, %v1096_v26  ;;  %4272 = vmatprep.mubr.msk.bf16.mxu0 %vm1112_vm5, %v5256_v58  ;;  %v660_v15 = vpack.c.bf16 %v644_v33, %v643_v6  ;;  %v5285_v47 = vsel %vm1554_vm6, %v1594_v18, %v1595_v29  ;;  %v1598_v2 = vrot.slane %v912_v54, 1  ;;  %v3751_v33 = vld [vmem:[%s5756_s3 + $0x20] sm:$0xf] }
  0x79   : > { %4110 = vmatprep.mubr.msk.bf16.mxu1 %vm1112_vm5, %v5264_v5  ;;  %v1104_v3 = vor.u32 %v1103_v61, %v1099_v8  ;;  %v1601_v61 = vrot.slane %v913_v24, 1  ;;  %v2686_v29 = vsel %vm1161_vm0, %v5106_v9, 0  ;;  %v3908_v9 = vld [vmem:[%s443_s19] sm:$0xff]  }
  0x7a   : > { %v828_v8 = vshrl.u32 %v660_v15, 16  ;;  %v831_v40 = vshll.u32 %v660_v15, 16  ;;  %v5303_v60 = vsel %vm1554_vm6, %v1597_v39, %v1598_v2  ;;  %v3909_v15 = vunpack.c.l.bf16 %v3908_v9 }
  0x7b   : > { %v5275_v26 = vsel %vm917_vm3, %v1104_v3, %v1108_v14  ;;  %v1654_v14 = vsel %vm1161_vm0, %v4930_v21, 0  ;;  %v5308_v54 = vsel %vm1554_vm6, %v1600_v10, %v1601_v61 }
  0x7c   : > { %4111 = vmatmul.mubr.msk.bf16.gmra.mrb[28].mxu1 %vm1112_vm5, %v5275_v26  ;;  %v830_v51 = vrot.slane %v828_v8, 7  ;;  %v3910_v8 = vunpack.c.h.bf16 %v3908_v9 }
  0x7d   : > { %4116 = vmatprep.mubr.msk.bf16.mxu1 %vm1112_vm5, %v4892_v37 }
  0x7e   : > { %v833_v48 = vor.u32 %v831_v40, %v830_v51  ;;  %v5316_v24 = vsel %vm4851_vm4, %v830_v51, 0  ;;  %v4678_v40 = vld [vmem:[%s5757_s4] ss:$0 sm:$0xff] }
  0x7f   : > { %4273 = vmatmul.mubr.msk.bf16.gmra.mrb[20].mxu0 %vm1112_vm5, %v5280_v50  ;;  %v2265_v3 = vrot.slane %v5316_v24, 1  ;;  %v672_v39 = vmul.f32 %v4678_v40, %v3909_v15  ;;  %v673_v2 = vmul.f32 %v4678_v40, %v3910_v8  ;;  %v4679_v51 = vld [vmem:[%s5758_s5] ss:$0 sm:$0xff] }
  0x80   : > { %4276 = vmatprep.mubr.msk.bf16.mxu0 %vm1112_vm5, %v5285_v47  ;;  %v5312_v21 = vsel %vm4851_vm4, 0, %v833_v48 }
  0x81   : > { %v2264_v6 = vrot.slane %v5312_v21, 1  ;;  %v674_v10 = vadd.f32 %v4679_v51, %v672_v39  ;;  %v675_v61 = vadd.f32 %v4679_v51, %v673_v2  ;;  %v4680_v39 = vld [vmem:[%s5756_s3 + $0x10] sm:$0xf]  ;;  %v2892_v2 = vsel %vm1161_vm0, %v3751_v33, 0 }
  0x83   : > { %v5329_v18 = vsel %vm1554_vm6, %v2264_v6, %v2265_v3  ;;  %v677_v48 = vmax.f32 %v675_v61, 0.0  ;;  %v1556_v6 = vrot.slane %v4883_v30, 1  ;;  %v1555_v3 = vrot.slane %v4892_v37, 1 }
  0x84   : > { %4117 = vmatmul.mubr.msk.bf16.vlgmr.msra.gmra.mrb[0].mxu1 %vm1112_vm5, %v4870_v19  ;;  %v1855_v37 = vsel %vm1161_vm0, %v5298_v55, 0 }
  0x85   : > { %4149 = vmatpush3.bf16.msra.mxu1 %v1654_v14  ;;  %4120 = vmatprep.mubr.msk.bf16.mxu1 %vm1112_vm5, %v4874_v20  ;;  %v676_v14 = vmax.f32 %v674_v10, 0.0  ;;  %v1557_v9 = vsel %vm1554_vm6, %v1555_v3, %v1556_v6 }
  0x86   : > { %4647 = vmatprep.subr.msk.bf16.mxu1 %vm1161_vm0, %v5298_v55 }
  0x87   : > { %4277 = vmatmul.mubr.msk.bf16.gmra.mrb[24].mxu0 %vm1112_vm5, %v5303_v60 }
  0x88   : > { %4280 = vmatprep.mubr.msk.bf16.mxu0 %vm1112_vm5, %v5308_v54 }
  0x8c   : > { %4121 = vmatmul.mubr.msk.bf16.gmra.mrb[4].mxu1 %vm1112_vm5, %v4888_v34 }
  0x8d   : > { %4124 = vmatprep.mubr.msk.bf16.mxu1 %vm1112_vm5, %v4954_v45 }
  0x8f   : > { %4281 = vmatmul.mubr.msk.bf16.gmra.mrb[28].mxu0 %vm1112_vm5, %v5329_v18 }
  0x90   : > { %4286 = vmatprep.mubr.msk.bf16.mxu0 %vm1112_vm5, %v4874_v20 }
  0x94   : > { %4125 = vmatmul.mubr.msk.bf16.gmra.mrb[8].mxu1 %vm1112_vm5, %v4967_v62 }
  0x95   : > { %4128 = vmatprep.mubr.msk.bf16.mxu1 %vm1112_vm5, %v4987_v27 }
  0x97   : > { %4287 = vmatmul.mubr.msk.bf16.vlgmr.msra.gmra.mrb[0].mxu0 %vm1112_vm5, %v4888_v34 }
  0x98   : > { %4319 = vmatpush3.bf16.msra.mxu0 %v2686_v29  ;;  %4290 = vmatprep.mubr.msk.bf16.mxu0 %vm1112_vm5, %v4954_v45  ;;  %v678_v29 = vpack.c.bf16 %v677_v48, %v676_v14  ;;  %v5773_v14 = vld [vmem:[#allocation2_spill] sm:$0xff] }
  0x99   : > { %4653 = vmatprep.subr.msk.bf16.mxu0 %vm1161_vm0, %v3751_v33 }
  0x9a   : > { %v714_v15 = vmul.bf16 0.0, %v678_v29 }
  0x9c   : > { %4129 = vmatmul.mubr.msk.bf16.gmra.mrb[12].mxu1 %vm1112_vm5, %v5010_v46  ;;  %v835_v30 = vshrl.u32 %v714_v15, 16  ;;  %v838_v40 = vshll.u32 %v714_v15, 16 }
  0x9d   : > { %4132 = vmatprep.mubr.msk.bf16.mxu1 %vm1112_vm5, %v5042_v22 }
  0x9e   : > { %v837_v8 = vrot.slane %v835_v30, 7 }
  0x9f   : > { %4291 = vmatmul.mubr.msk.bf16.gmra.mrb[4].mxu0 %vm1112_vm5, %v4967_v62 }
  0xa0   : > { %4294 = vmatprep.mubr.msk.bf16.mxu0 %vm1112_vm5, %v4987_v27  ;;  %v840_v55 = vor.u32 %v838_v40, %v837_v8  ;;  %v915_v10 = vsel %vm4851_vm4, %v837_v8, 0 }
  0xa4   : > { %4133 = vmatmul.mubr.msk.bf16.gmra.mrb[16].mxu1 %vm1112_vm5, %v5090_v28 }
  0xa5   : > { %4136 = vmatprep.mubr.msk.bf16.mxu1 %vm1112_vm5, %v5130_v25 }
  0xa7   : > { %4295 = vmatmul.mubr.msk.bf16.gmra.mrb[8].mxu0 %vm1112_vm5, %v5010_v46 }
  0xa8   : > { %4298 = vmatprep.mubr.msk.bf16.mxu0 %vm1112_vm5, %v5042_v22 }
  0xac   : > { %4137 = vmatmul.mubr.msk.bf16.gmra.mrb[20].mxu1 %vm1112_vm5, %v5140_v42 }
  0xad   : > { %4140 = vmatprep.mubr.msk.bf16.mxu1 %vm1112_vm5, %v5181_v52 }
  0xaf   : > { %4299 = vmatmul.mubr.msk.bf16.gmra.mrb[12].mxu0 %vm1112_vm5, %v5090_v28 }
  0xb0   : > { %4302 = vmatprep.mubr.msk.bf16.mxu0 %vm1112_vm5, %v5130_v25 }
  0xb4   : > { %4141 = vmatmul.mubr.msk.bf16.gmra.mrb[24].mxu1 %vm1112_vm5, %v5202_v59 }
  0xb5   : > { %4144 = vmatprep.mubr.msk.bf16.mxu1 %vm1112_vm5, %v5237_v63 }
  0xb7   : > { %4303 = vmatmul.mubr.msk.bf16.gmra.mrb[16].mxu0 %vm1112_vm5, %v5140_v42 }
  0xb8   : > { %4306 = vmatprep.mubr.msk.bf16.mxu0 %vm1112_vm5, %v5181_v52 }
  0xbc   : > { %4145 = vmatmul.mubr.msk.bf16.gmra.mrb[28].mxu1 %vm1112_vm5, %v5251_v32 }
  0xbd   : > { %4150 = vmatprep.mubr.msk.bf16.mxu1 %vm1112_vm5, %v1557_v9 }
  0xbf   : > { %4307 = vmatmul.mubr.msk.bf16.gmra.mrb[20].mxu0 %vm1112_vm5, %v5202_v59 }
  0xc0   : > { %4310 = vmatprep.mubr.msk.bf16.mxu0 %vm1112_vm5, %v5237_v63 }
  0xc4   : > { %4151 = vmatmul.mubr.msk.bf16.vlgmr.msra.gmra.mrb[0].mxu1 %vm1112_vm5, %v5034_v38  ;;  %v5421_v38 = vsel %vm4851_vm4, 0, %v840_v55 }
  0xc5   : > { %4183 = vmatpush3.bf16.msra.mxu1 %v1855_v37  ;;  %4154 = vmatprep.mubr.msk.bf16.mxu1 %vm1112_vm5, %v5037_v49 }
  0xc6   : > { %4649 = vmatprep.subr.msk.bf16.mxu1 %vm1161_vm0, %v4680_v39 }
  0xc7   : > { %4311 = vmatmul.mubr.msk.bf16.gmra.mrb[24].mxu0 %vm1112_vm5, %v5251_v32 }
  0xc8   : > { %4314 = vmatprep.mubr.msk.bf16.mxu0 %vm1112_vm5, %v5312_v21 }
  0xcc   : > { %4155 = vmatmul.mubr.msk.bf16.gmra.mrb[4].mxu1 %vm1112_vm5, %v5057_v11 }
  0xcd   : > { %4158 = vmatprep.mubr.msk.bf16.mxu1 %vm1112_vm5, %v5062_v53 }
  0xcf   : > { %4315 = vmatmul.mubr.msk.bf16.gmra.mrb[28].mxu0 %vm1112_vm5, %v5421_v38 }
  0xd0   : > { %4320 = vmatprep.mubr.msk.bf16.mxu0 %vm1112_vm5, %v4910_v57  ;;  %v5771_v57 = vld [vmem:[#allocation3_spill] sm:$0xff] }
  0xd4   : > { %4159 = vmatmul.mubr.msk.bf16.gmra.mrb[8].mxu1 %vm1112_vm5, %v5095_v13 }
  0xd5   : > { %4162 = vmatprep.mubr.msk.bf16.mxu1 %vm1112_vm5, %v5153_v23 }
  0xd7   : > { %4321 = vmatmul.mubr.msk.bf16.vlgmr.msra.gmra.mrb[0].mxu0 %vm1112_vm5, %v4924_v16  ;;  %v5772_v16 = vld [vmem:[#allocation4_spill] sm:$0xff] }
  0xd8   : > { %4353 = vmatpush3.bf16.msra.mxu0 %v2892_v2  ;;  %4324 = vmatprep.mubr.msk.bf16.mxu0 %vm1112_vm5, %v4979_v36  ;;  %v2052_v36 = vshll.u32 %v5312_v21, 16 }
  0xdc   : > { %4163 = vmatmul.mubr.msk.bf16.gmra.mrb[12].mxu1 %vm1112_vm5, %v5173_v44 }
  0xdd   : > { %4166 = vmatprep.mubr.msk.bf16.mxu1 %vm1112_vm5, %v5216_v7 }
  0xdf   : > { %4325 = vmatmul.mubr.msk.bf16.gmra.mrb[4].mxu0 %vm1112_vm5, %v4996_v35  ;;  %v2050_v35 = vshrl.u32 %v5312_v21, 16 }
  0xe0   : > { %4328 = vmatprep.mubr.msk.bf16.mxu0 %vm1112_vm5, %v5018_v0  ;;  %v2054_v0 = vrot.slane %v2052_v36, 1 }
  0xe2   : > { %v2055_v33 = vor.u32 %v2054_v0, %v2050_v35 }
  0xe4   : > { %4167 = vmatmul.mubr.msk.bf16.gmra.mrb[16].mxu1 %vm1112_vm5, %v5219_v12 }
  0xe5   : > { %4170 = vmatprep.mubr.msk.bf16.mxu1 %vm1112_vm5, %v5246_v56 }
  0xe7   : > { %4329 = vmatmul.mubr.msk.bf16.gmra.mrb[8].mxu0 %vm1112_vm5, %v5047_v31  ;;  %v2057_v31 = vshll.u32 %v5316_v24, 16  ;;  %v2676_v24 = vshll.u32 %v915_v10, 16 }
  0xe8   : > { %4332 = vmatprep.mubr.msk.bf16.mxu0 %vm1112_vm5, %v5070_v1  ;;  %v2671_v1 = vshll.u32 %v5421_v38, 16 }
  0xe9   : > { %v2059_v51 = vrot.slane %v2057_v31, 1  ;;  %v2678_v6 = vrot.slane %v2676_v24, 1 }
  0xea   : > { %v2673_v61 = vrot.slane %v2671_v1, 1 }
  0xeb   : > { %v2060_v48 = vsel %vm917_vm3, %v2055_v33, %v2059_v51 }
  0xec   : > { %4171 = vmatmul.mubr.msk.bf16.gmra.mrb[20].mxu1 %vm1112_vm5, %v5256_v58 }
  0xed   : > { %4174 = vmatprep.mubr.msk.bf16.mxu1 %vm1112_vm5, %v5280_v50 }
  0xef   : > { %4333 = vmatmul.mubr.msk.bf16.gmra.mrb[12].mxu0 %vm1112_vm5, %v5116_v17 }
  0xf0   : > { %4336 = vmatprep.mubr.msk.bf16.mxu0 %vm1112_vm5, %v5159_v41 }
  0xf4   : > { %4175 = vmatmul.mubr.msk.bf16.gmra.mrb[24].mxu1 %vm1112_vm5, %v5285_v47 }
  0xf5   : > { %4178 = vmatprep.mubr.msk.bf16.mxu1 %vm1112_vm5, %v5303_v60 }
  0xf7   : > { %4337 = vmatmul.mubr.msk.bf16.gmra.mrb[16].mxu0 %vm1112_vm5, %v5771_v57 }
  0xf8   : > { %4340 = vmatprep.mubr.msk.bf16.mxu0 %vm1112_vm5, %v5772_v16 }
  0xfc   : > { %4179 = vmatmul.mubr.msk.bf16.gmra.mrb[28].mxu1 %vm1112_vm5, %v5308_v54 }
  0xfd   : > { %4184 = vmatprep.mubr.msk.bf16.mxu1 %vm1112_vm5, %v4870_v19  ;;  %v2669_v19 = vshrl.u32 %v5421_v38, 16 }
  0xff   : > { %4341 = vmatmul.mubr.msk.bf16.gmra.mrb[20].mxu0 %vm1112_vm5, %v5224_v43  ;;  %v2674_v4 = vor.u32 %v2673_v61, %v2669_v19 }
 0x100   : > { %4344 = vmatprep.mubr.msk.bf16.mxu0 %vm1112_vm5, %v5264_v5 }
 0x104   : > { %4185 = vmatmul.mubr.msk.bf16.vlgmr.msra.gmra.mrb[0].mxu1 %vm1112_vm5, %v4874_v20  ;;  %v2679_v20 = vsel %vm917_vm3, %v2674_v4, %v2678_v6 }
 0x105   : > { %4387 = vmatpush3.bf16.msra.mxu1 %v5773_v14  ;;  %4188 = vmatprep.mubr.msk.bf16.mxu1 %vm1112_vm5, %v4888_v34  ;;  %v2883_v34 = vrot.slane %v5421_v38, 1 }
 0x107   : > { %4345 = vmatmul.mubr.msk.bf16.gmra.mrb[24].mxu0 %vm1112_vm5, %v5275_v26 }
 0x108   : > { %4348 = vmatprep.mubr.msk.bf16.mxu0 %vm1112_vm5, %v2060_v48 }
 0x10c   : > { %4189 = vmatmul.mubr.msk.bf16.gmra.mrb[4].mxu1 %vm1112_vm5, %v4954_v45  ;;  %v2884_v45 = vrot.slane %v915_v10, 1 }
 0x10d   : > { %4192 = vmatprep.mubr.msk.bf16.mxu1 %vm1112_vm5, %v4967_v62 }
 0x10e   : > { %v2885_v62 = vsel %vm1554_vm6, %v2883_v34, %v2884_v45 }
 0x10f   : > { %4349 = vmatmul.mubr.msk.bf16.gmra.mrb[28].mxu0 %vm1112_vm5, %v2679_v20 }
 0x110   : > { %4354 = vmatprep.mubr.msk.bf16.mxu0 %vm1112_vm5, %v5037_v49 }
 0x114   : > { %4193 = vmatmul.mubr.msk.bf16.gmra.mrb[8].mxu1 %vm1112_vm5, %v4987_v27 }
 0x115   : > { %4196 = vmatprep.mubr.msk.bf16.mxu1 %vm1112_vm5, %v5010_v46 }
 0x117   : > { %4355 = vmatmul.mubr.msk.bf16.vlgmr.msra.gmra.mrb[0].mxu0 %vm1112_vm5, %v5057_v11 }
 0x118   : > { %4358 = vmatprep.mubr.msk.bf16.mxu0 %vm1112_vm5, %v5062_v53 }
 0x11c   : > { %4197 = vmatmul.mubr.msk.bf16.gmra.mrb[12].mxu1 %vm1112_vm5, %v5042_v22 }
 0x11d   : > { %4200 = vmatprep.mubr.msk.bf16.mxu1 %vm1112_vm5, %v5090_v28 }
 0x11f   : > { %4359 = vmatmul.mubr.msk.bf16.gmra.mrb[4].mxu0 %vm1112_vm5, %v5095_v13 }
 0x120   : > { %4362 = vmatprep.mubr.msk.bf16.mxu0 %vm1112_vm5, %v5153_v23 }
 0x124   : > { %4201 = vmatmul.mubr.msk.bf16.gmra.mrb[16].mxu1 %vm1112_vm5, %v5130_v25 }
 0x125   : > { %4204 = vmatprep.mubr.msk.bf16.mxu1 %vm1112_vm5, %v5140_v42 }
 0x127   : > { %4363 = vmatmul.mubr.msk.bf16.gmra.mrb[8].mxu0 %vm1112_vm5, %v5173_v44 }
 0x128   : > { %4366 = vmatprep.mubr.msk.bf16.mxu0 %vm1112_vm5, %v5216_v7 }
 0x12c   : > { %4205 = vmatmul.mubr.msk.bf16.gmra.mrb[20].mxu1 %vm1112_vm5, %v5181_v52 }
 0x12d   : > { %4208 = vmatprep.mubr.msk.bf16.mxu1 %vm1112_vm5, %v5202_v59 }
 0x12f   : > { %4367 = vmatmul.mubr.msk.bf16.gmra.mrb[12].mxu0 %vm1112_vm5, %v5219_v12 }
 0x130   : > { %4370 = vmatprep.mubr.msk.bf16.mxu0 %vm1112_vm5, %v5246_v56 }
 0x134   : > { %4209 = vmatmul.mubr.msk.bf16.gmra.mrb[24].mxu1 %vm1112_vm5, %v5237_v63 }
 0x135   : > { %4212 = vmatprep.mubr.msk.bf16.mxu1 %vm1112_vm5, %v5251_v32 }
 0x137   : > { %4371 = vmatmul.mubr.msk.bf16.gmra.mrb[16].mxu0 %vm1112_vm5, %v5256_v58 }
 0x138   : > { %4374 = vmatprep.mubr.msk.bf16.mxu0 %vm1112_vm5, %v5280_v50 }
 0x13c   : > { %4213 = vmatmul.mubr.msk.bf16.gmra.mrb[28].mxu1 %vm1112_vm5, %v5312_v21 }
 0x13d   : > { %4234 = vmatprep.mubr.msk.bf16.mxu1 %vm1112_vm5, %v5116_v17 }
 0x13f   : > { %4375 = vmatmul.mubr.msk.bf16.gmra.mrb[20].mxu0 %vm1112_vm5, %v5285_v47 }
 0x140   : > { %4378 = vmatprep.mubr.msk.bf16.mxu0 %vm1112_vm5, %v5303_v60 }
 0x144   : > { %4235 = vmatmul.mubr.msk.bf16.vlgmr.msra.gmra.mrb[16].mxu1 %vm1112_vm5, %v5159_v41 }
 0x145   : > { %4238 = vmatprep.mubr.msk.bf16.mxu1 %vm1112_vm5, %v5771_v57 }
 0x147   : > { %4379 = vmatmul.mubr.msk.bf16.gmra.mrb[24].mxu0 %vm1112_vm5, %v5308_v54 }
 0x148   : > { %4382 = vmatprep.mubr.msk.bf16.mxu0 %vm1112_vm5, %v5329_v18 }
 0x14c   : > { %4239 = vmatmul.mubr.msk.bf16.gmra.mrb[20].mxu1 %vm1112_vm5, %v5772_v16 }
 0x14d   : > { %4242 = vmatprep.mubr.msk.bf16.mxu1 %vm1112_vm5, %v5224_v43 }
 0x14f   : > { %4383 = vmatmul.mubr.msk.bf16.gmra.mrb[28].mxu0 %vm1112_vm5, %v2885_v62 }
 0x154   : > { %4243 = vmatmul.mubr.msk.bf16.gmra.mrb[24].mxu1 %vm1112_vm5, %v5264_v5 }
 0x155   : > { %4246 = vmatprep.mubr.msk.bf16.mxu1 %vm1112_vm5, %v5275_v26 }
 0x15c   : > { %4247 = vmatmul.mubr.msk.bf16.gmra.mrb[28].mxu1 %vm1112_vm5, %v2060_v48 }
 0x1d7   : > { %v4186_v27 = vpop.f32.mrb[0].mxu1 }
 0x1d8   : > { %v1891_v46 = vpop.f32.mrb[1].mxu1 }
 0x1d9   : > { %v4187_v49 = vpop.f32.mrb[2].mxu1 }
 0x1da   : > { %v1894_v22 = vpop.f32.mrb[3].mxu1 }
 0x1df   : > { %v4190_v11 = vpop.f32.mrb[4].mxu1 }
 0x1e0   : > { %v1907_v53 = vpop.f32.mrb[5].mxu1 }
 0x1e1   : > { %v4191_v28 = vpop.f32.mrb[6].mxu1 }
 0x1e2   : > { %v1910_v13 = vpop.f32.mrb[7].mxu1 }
 0x1e7   : > { %v5570_v17 = vpop.f32.mrb[8].mxu1 }
 0x1e8   : > { %v5572_v25 = vpop.f32.mrb[9].mxu1 }
 0x1e9   : > { %v5574_v42 = vpop.f32.mrb[10].mxu1 }
 0x1ea   : > { %v5576_v23 = vpop.f32.mrb[11].mxu1  ;;  %v4356_v41 = vpop.f32.mrb[0].mxu0 }
 0x1eb   : > { %v4388_v44 = vadd.f32 %v4356_v41, %v4186_v27  ;;  %v2928_v52 = vpop.f32.mrb[1].mxu0 }
 0x1ec   : > { %v4389_v59 = vadd.f32 %v2928_v52, %v1891_v46  ;;  %v4357_v43 = vpop.f32.mrb[2].mxu0 }
 0x1ed   : > { %v3809_v7 = vpack.c.bf16 %v4388_v44, %v4388_v44  ;;  %v4390_v12 = vadd.f32 %v4357_v43, %v4187_v49  ;;  %v2931_v63 = vpop.f32.mrb[3].mxu0  ;;  %v3321_v26 = vmul.f32 %v4388_v44, %v4388_v44  ;;  %v3251_v30 = vsel %vm1112_vm5, %v4388_v44, 0.0 }
 0x1ee   : > { %v3807_v56 = vpack.c.bf16 %v4389_v59, %v4389_v59  ;;  %v3319_v32 = vmul.f32 %v4389_v59, %v4389_v59  ;;  %v4391_v58 = vadd.f32 %v2931_v63, %v1894_v22  ;;  %v3248_v60 = vsel %vm1112_vm5, %v4389_v59, 0.0 }
 0x1ef   : > { %v5584_v5 = vpop.f32.mrb[12].mxu1  ;;  %3218 = vst.msk [vmem:[%s5582_s9 + $0x8] sm:$0xf] %vm3215_vm7, %v3809_v7  ;;  %v3810_v50 = vpack.c.bf16 %v4390_v12, %v4390_v12  ;;  %v3322_v29 = vmul.f32 %v4390_v12, %v4390_v12  ;;  %v3354_v57 = vsel %vm1112_vm5, %v3321_v26, 0.0  ;;  %v3253_v35 = vsel %vm1112_vm5, %v4390_v12, 0.0 }
 0x1f0   : > { %v5588_v47 = vpop.f32.mrb[13].mxu1  ;;  %3216 = vst.msk [vmem:[%s5582_s9] sm:$0xf] %vm3215_vm7, %v3807_v56  ;;  %v3808_v54 = vpack.c.bf16 %v4391_v58, %v4391_v58  ;;  %v3249_v21 = vsel %vm1112_vm5, %v4391_v58, 0.0  ;;  %v3320_v18 = vmul.f32 %v4391_v58, %v4391_v58  ;;  %v3351_v37 = vsel %vm1112_vm5, %v3319_v32, 0.0 }
 0x1f1   : > { %v5594_v3 = vpop.f32.mrb[14].mxu1  ;;  %3219 = vst.msk [vmem:[%s5582_s9 + $0xc] sm:$0xf] %vm3215_vm7, %v3810_v50  ;;  %v3250_v9 = vadd.f32 %v3249_v21, %v3248_v60  ;;  %v3356_v0 = vsel %vm1112_vm5, %v3322_v29, 0.0 }
 0x1f2   : > { %v5598_v15 = vpop.f32.mrb[15].mxu1  ;;  %3217 = vst.msk [vmem:[%s5582_s9 + $0x4] sm:$0xf] %vm3215_vm7, %v3808_v54  ;;  %v3352_v8 = vsel %vm1112_vm5, %v3320_v18, 0.0  ;;  %v4360_v40 = vpop.f32.mrb[4].mxu0 }
 0x1f3   : > { %v3252_v39 = vadd.f32 %v3251_v30, %v3250_v9  ;;  %v3353_v55 = vadd.f32 %v3352_v8, %v3351_v37  ;;  %v4392_v38 = vadd.f32 %v4360_v40, %v4190_v11  ;;  %v2944_v2 = vpop.f32.mrb[5].mxu0 }
 0x1f4   : > { %v4393_v16 = vadd.f32 %v2944_v2, %v1907_v53  ;;  %v4361_v36 = vpop.f32.mrb[6].mxu0 }
 0x1f5   : > { %v3355_v31 = vadd.f32 %v3354_v57, %v3353_v55  ;;  %v3813_v1 = vpack.c.bf16 %v4392_v38, %v4392_v38  ;;  %v2947_v33 = vpop.f32.mrb[7].mxu0  ;;  %v3254_v10 = vadd.f32 %v3253_v35, %v3252_v39  ;;  %v4394_v14 = vadd.f32 %v4361_v36, %v4191_v28 }
 0x1f6   : > { %v3811_v51 = vpack.c.bf16 %v4393_v16, %v4393_v16  ;;  %v3255_v19 = vsel %vm1112_vm5, %v4393_v16, 0.0  ;;  %v3323_v61 = vmul.f32 %v4393_v16, %v4393_v16  ;;  %v4395_v48 = vadd.f32 %v2947_v33, %v1910_v13 }
 0x1f7   : > { %3222 = vst.msk [vmem:[%s5582_s9 + $0x18] sm:$0xf] %vm3215_vm7, %v3813_v1  ;;  %v3357_v24 = vadd.f32 %v3356_v0, %v3355_v31  ;;  %v3256_v4 = vadd.f32 %v3255_v19, %v3254_v10  ;;  %v3325_v20 = vmul.f32 %v4392_v38, %v4392_v38  ;;  %v3814_v45 = vpack.c.bf16 %v4394_v14, %v4394_v14 }
 0x1f8   : > { %3220 = vst.msk [vmem:[%s5582_s9 + $0x10] sm:$0xf] %vm3215_vm7, %v3811_v51  ;;  %v3358_v6 = vsel %vm1112_vm5, %v3323_v61, 0.0  ;;  %v3812_v62 = vpack.c.bf16 %v4395_v48, %v4395_v48  ;;  %v3257_v27 = vsel %vm1112_vm5, %v4395_v48, 0.0  ;;  %v3324_v46 = vmul.f32 %v4395_v48, %v4395_v48 }
 0x1f9   : > { %v3359_v34 = vadd.f32 %v3358_v6, %v3357_v24  ;;  %3223 = vst.msk [vmem:[%s5582_s9 + $0x1c] sm:$0xf] %vm3215_vm7, %v3814_v45  ;;  %v3258_v22 = vadd.f32 %v3257_v27, %v3256_v4  ;;  %v3259_v28 = vsel %vm1112_vm5, %v4392_v38, 0.0  ;;  %v3326_v13 = vmul.f32 %v4394_v14, %v4394_v14 }
 0x1fa   : > { %v4364_v49 = vpop.f32.mrb[8].mxu0  ;;  %3221 = vst.msk [vmem:[%s5582_s9 + $0x14] sm:$0xf] %vm3215_vm7, %v3812_v62  ;;  %v3360_v41 = vsel %vm1112_vm5, %v3324_v46, 0.0  ;;  %v3362_v59 = vsel %vm1112_vm5, %v3325_v20, 0.0 }
 0x1fb   : > { %v4396_v11 = vadd.f32 %v4364_v49, %v5570_v17  ;;  %v2960_v53 = vpop.f32.mrb[9].mxu0  ;;  %v3260_v43 = vadd.f32 %v3259_v28, %v3258_v22  ;;  %v3361_v7 = vadd.f32 %v3360_v41, %v3359_v34  ;;  %v3261_v17 = vsel %vm1112_vm5, %v4394_v14, 0.0 }
 0x1fc   : > { %v4397_v44 = vadd.f32 %v2960_v53, %v5572_v25  ;;  %v4365_v52 = vpop.f32.mrb[10].mxu0  ;;  %v3364_v54 = vsel %vm1112_vm5, %v3326_v13, 0.0 }
 0x1fd   : > { %v3817_v12 = vpack.c.bf16 %v4396_v11, %v4396_v11  ;;  %v2963_v63 = vpop.f32.mrb[11].mxu0  ;;  %v3363_v26 = vadd.f32 %v3362_v59, %v3361_v7  ;;  %v3262_v50 = vadd.f32 %v3261_v17, %v3260_v43  ;;  %v4398_v25 = vadd.f32 %v4365_v52, %v5574_v42 }
 0x1fe   : > { %v3815_v56 = vpack.c.bf16 %v4397_v44, %v4397_v44  ;;  %v3263_v32 = vsel %vm1112_vm5, %v4397_v44, 0.0  ;;  %v3327_v58 = vmul.f32 %v4397_v44, %v4397_v44  ;;  %v4399_v60 = vadd.f32 %v2963_v63, %v5576_v23 }
 0x1ff   : > { %3226 = vst.msk [vmem:[%s5582_s9 + $0x28] sm:$0xf] %vm3215_vm7, %v3817_v12  ;;  %v3329_v18 = vmul.f32 %v4396_v11, %v4396_v11  ;;  %v3264_v29 = vadd.f32 %v3263_v32, %v3262_v50  ;;  %v3365_v9 = vadd.f32 %v3364_v54, %v3363_v26  ;;  %v3818_v30 = vpack.c.bf16 %v4398_v25, %v4398_v25 }
 0x200   : > { %3224 = vst.msk [vmem:[%s5582_s9 + $0x20] sm:$0xf] %vm3215_vm7, %v3815_v56  ;;  %v3366_v21 = vsel %vm1112_vm5, %v3327_v58, 0.0  ;;  %v3816_v37 = vpack.c.bf16 %v4399_v60, %v4399_v60  ;;  %v3265_v8 = vsel %vm1112_vm5, %v4399_v60, 0.0  ;;  %v3328_v40 = vmul.f32 %v4399_v60, %v4399_v60 }
 0x201   : > { %v3367_v55 = vadd.f32 %v3366_v21, %v3365_v9  ;;  %3227 = vst.msk [vmem:[%s5582_s9 + $0x2c] sm:$0xf] %vm3215_vm7, %v3818_v30  ;;  %v3266_v42 = vadd.f32 %v3265_v8, %v3264_v29  ;;  %v3267_v2 = vsel %vm1112_vm5, %v4396_v11, 0.0  ;;  %v3330_v57 = vmul.f32 %v4398_v25, %v4398_v25 }
 0x202   : > { %v4368_v39 = vpop.f32.mrb[12].mxu0  ;;  %3225 = vst.msk [vmem:[%s5582_s9 + $0x24] sm:$0xf] %vm3215_vm7, %v3816_v37  ;;  %v3368_v16 = vsel %vm1112_vm5, %v3328_v40, 0.0  ;;  %v3370_v0 = vsel %vm1112_vm5, %v3329_v18, 0.0 }
 0x203   : > { %v4400_v23 = vadd.f32 %v4368_v39, %v5584_v5  ;;  %v2976_v38 = vpop.f32.mrb[13].mxu0  ;;  %v3268_v31 = vadd.f32 %v3267_v2, %v3266_v42  ;;  %v3369_v1 = vadd.f32 %v3368_v16, %v3367_v55  ;;  %v3269_v5 = vsel %vm1112_vm5, %v4398_v25, 0.0 }
 0x204   : > { %v4401_v36 = vadd.f32 %v2976_v38, %v5588_v47  ;;  %v4369_v35 = vpop.f32.mrb[14].mxu0  ;;  %v3372_v4 = vsel %vm1112_vm5, %v3330_v57, 0.0 }
 0x205   : > { %v3821_v33 = vpack.c.bf16 %v4400_v23, %v4400_v23  ;;  %v2979_v51 = vpop.f32.mrb[15].mxu0  ;;  %v3371_v24 = vadd.f32 %v3370_v0, %v3369_v1  ;;  %v3270_v14 = vadd.f32 %v3269_v5, %v3268_v31  ;;  %v4402_v47 = vadd.f32 %v4369_v35, %v5594_v3 }
 0x206   : > { %v3819_v10 = vpack.c.bf16 %v4401_v36, %v4401_v36  ;;  %v3271_v19 = vsel %vm1112_vm5, %v4401_v36, 0.0  ;;  %v3331_v61 = vmul.f32 %v4401_v36, %v4401_v36  ;;  %v4403_v48 = vadd.f32 %v2979_v51, %v5598_v15 }
 0x207   : > { %3230 = vst.msk [vmem:[%s5582_s9 + $0x38] sm:$0xf] %vm3215_vm7, %v3821_v33  ;;  %v3272_v20 = vadd.f32 %v3271_v19, %v3270_v14  ;;  %v3373_v34 = vadd.f32 %v3372_v4, %v3371_v24  ;;  %v3822_v45 = vpack.c.bf16 %v4402_v47, %v4402_v47  ;;  %v3333_v62 = vmul.f32 %v4400_v23, %v4400_v23 }
 0x208   : > { %3228 = vst.msk [vmem:[%s5582_s9 + $0x30] sm:$0xf] %vm3215_vm7, %v3819_v10  ;;  %v3374_v6 = vsel %vm1112_vm5, %v3331_v61, 0.0  ;;  %v3820_v27 = vpack.c.bf16 %v4403_v48, %v4403_v48  ;;  %v3273_v46 = vsel %vm1112_vm5, %v4403_v48, 0.0  ;;  %v3332_v49 = vmul.f32 %v4403_v48, %v4403_v48 }
 0x209   : > { %v3375_v11 = vadd.f32 %v3374_v6, %v3373_v34  ;;  %3231 = vst.msk [vmem:[%s5582_s9 + $0x3c] sm:$0xf] %vm3215_vm7, %v3822_v45  ;;  %v3274_v3 = vadd.f32 %v3273_v46, %v3272_v20  ;;  %v3275_v53 = vsel %vm1112_vm5, %v4400_v23, 0.0  ;;  %v3334_v28 = vmul.f32 %v4402_v47, %v4402_v47 }
 0x20a   : > { %v4372_v22 = vpop.f32.mrb[16].mxu0  ;;  %3229 = vst.msk [vmem:[%s5582_s9 + $0x34] sm:$0xf] %vm3215_vm7, %v3820_v27  ;;  %v3376_v13 = vsel %vm1112_vm5, %v3332_v49, 0.0  ;;  %v3378_v43 = vsel %vm1112_vm5, %v3333_v62, 0.0  ;;  %v3277_v7 = vsel %vm1112_vm5, %v4402_v47, 0.0 }
 0x20b   : > { %v2992_v15 = vpop.f32.mrb[17].mxu0  ;;  %v3276_v44 = vadd.f32 %v3275_v53, %v3274_v3  ;;  %v3377_v52 = vadd.f32 %v3376_v13, %v3375_v11  ;;  %v3380_v17 = vsel %vm1112_vm5, %v3334_v28, 0.0 }
 0x20c   : > { %v4373_v41 = vpop.f32.mrb[18].mxu0 }
 0x20d   : > { %v2995_v59 = vpop.f32.mrb[19].mxu0  ;;  %v3379_v12 = vadd.f32 %v3378_v43, %v3377_v52  ;;  %v3278_v63 = vadd.f32 %v3277_v7, %v3276_v44 }
 0x20f   : > { %v3381_v56 = vadd.f32 %v3380_v17, %v3379_v12 }
 0x212   : > { %v4376_v32 = vpop.f32.mrb[20].mxu0 }
 0x213   : > { %v3008_v58 = vpop.f32.mrb[21].mxu0 }
 0x214   : > { %v4377_v26 = vpop.f32.mrb[22].mxu0 }
 0x215   : > { %v3011_v50 = vpop.f32.mrb[23].mxu0 }
 0x217   : > { %v4236_v25 = vpop.f32.mrb[16].mxu1 }
 0x218   : > { %v4404_v60 = vadd.f32 %v4372_v22, %v4236_v25  ;;  %v2167_v54 = vpop.f32.mrb[17].mxu1 }
 0x219   : > { %v4405_v21 = vadd.f32 %v2992_v15, %v2167_v54  ;;  %v4237_v18 = vpop.f32.mrb[18].mxu1 }
 0x21a   : > { %v3825_v29 = vpack.c.bf16 %v4404_v60, %v4404_v60  ;;  %v4406_v9 = vadd.f32 %v4373_v41, %v4237_v18  ;;  %v2170_v30 = vpop.f32.mrb[19].mxu1  ;;  %v4380_v37 = vpop.f32.mrb[24].mxu0  ;;  %v3337_v0 = vmul.f32 %v4404_v60, %v4404_v60  ;;  %v3283_v51 = vsel %vm1112_vm5, %v4404_v60, 0.0 }
 0x21b   : > { %v3823_v8 = vpack.c.bf16 %v4405_v21, %v4405_v21  ;;  %v3279_v40 = vsel %vm1112_vm5, %v4405_v21, 0.0  ;;  %v3335_v39 = vmul.f32 %v4405_v21, %v4405_v21  ;;  %v4407_v55 = vadd.f32 %v2995_v59, %v2170_v30  ;;  %v3024_v42 = vpop.f32.mrb[25].mxu0 }
 0x21c   : > { %3234 = vst.msk [vmem:[%s5582_s9 + $0x48] sm:$0xf] %vm3215_vm7, %v3825_v29  ;;  %v3280_v23 = vadd.f32 %v3279_v40, %v3278_v63  ;;  %v3826_v38 = vpack.c.bf16 %v4406_v9, %v4406_v9  ;;  %v5667_v2 = vpop.f32.mrb[26].mxu0  ;;  %v3338_v10 = vmul.f32 %v4406_v9, %v4406_v9  ;;  %v3285_v47 = vsel %vm1112_vm5, %v4406_v9, 0.0 }
 0x21d   : > { %3232 = vst.msk [vmem:[%s5582_s9 + $0x40] sm:$0xf] %vm3215_vm7, %v3823_v8  ;;  %v3382_v57 = vsel %vm1112_vm5, %v3335_v39, 0.0  ;;  %v3824_v16 = vpack.c.bf16 %v4407_v55, %v4407_v55  ;;  %v3281_v36 = vsel %vm1112_vm5, %v4407_v55, 0.0  ;;  %v5673_v35 = vpop.f32.mrb[27].mxu0  ;;  %v3336_v33 = vmul.f32 %v4407_v55, %v4407_v55 }
 0x21e   : > { %v3383_v31 = vadd.f32 %v3382_v57, %v3381_v56  ;;  %3235 = vst.msk [vmem:[%s5582_s9 + $0x4c] sm:$0xf] %vm3215_vm7, %v3826_v38  ;;  %v3282_v1 = vadd.f32 %v3281_v36, %v3280_v23  ;;  %v3386_v20 = vsel %vm1112_vm5, %v3337_v0, 0.0  ;;  %v3388_v15 = vsel %vm1112_vm5, %v3338_v10, 0.0 }
 0x21f   : > { %3233 = vst.msk [vmem:[%s5582_s9 + $0x44] sm:$0xf] %vm3215_vm7, %v3824_v16  ;;  %v4240_v5 = vpop.f32.mrb[20].mxu1  ;;  %v3384_v61 = vsel %vm1112_vm5, %v3336_v33, 0.0 }
 0x220   : > { %v3284_v19 = vadd.f32 %v3283_v51, %v3282_v1  ;;  %v4408_v24 = vadd.f32 %v4376_v32, %v4240_v5  ;;  %v2183_v14 = vpop.f32.mrb[21].mxu1  ;;  %v3385_v48 = vadd.f32 %v3384_v61, %v3383_v31 }
 0x221   : > { %v4409_v4 = vadd.f32 %v3008_v58, %v2183_v14  ;;  %v4241_v6 = vpop.f32.mrb[22].mxu1 }
 0x222   : > { %v3829_v34 = vpack.c.bf16 %v4408_v24, %v4408_v24  ;;  %v3286_v45 = vadd.f32 %v3285_v47, %v3284_v19  ;;  %v2186_v62 = vpop.f32.mrb[23].mxu1  ;;  %v4384_v27 = vpop.f32.mrb[28].mxu0  ;;  %v3387_v46 = vadd.f32 %v3386_v20, %v3385_v48  ;;  %v4410_v28 = vadd.f32 %v4377_v26, %v4241_v6 }
 0x223   : > { %v3827_v49 = vpack.c.bf16 %v4409_v4, %v4409_v4  ;;  %v3287_v22 = vsel %vm1112_vm5, %v4409_v4, 0.0  ;;  %v3339_v11 = vmul.f32 %v4409_v4, %v4409_v4  ;;  %v3040_v3 = vpop.f32.mrb[29].mxu0  ;;  %v4411_v13 = vadd.f32 %v3011_v50, %v2186_v62 }
 0x224   : > { %3238 = vst.msk [vmem:[%s5582_s9 + $0x58] sm:$0xf] %vm3215_vm7, %v3829_v34  ;;  %v3288_v53 = vadd.f32 %v3287_v22, %v3286_v45  ;;  %v5687_v41 = vpop.f32.mrb[30].mxu0  ;;  %v3389_v44 = vadd.f32 %v3388_v15, %v3387_v46  ;;  %v3341_v43 = vmul.f32 %v4408_v24, %v4408_v24  ;;  %v3830_v7 = vpack.c.bf16 %v4410_v28, %v4410_v28 }
 0x225   : > { %3236 = vst.msk [vmem:[%s5582_s9 + $0x50] sm:$0xf] %vm3215_vm7, %v3827_v49  ;;  %v3390_v52 = vsel %vm1112_vm5, %v3339_v11, 0.0  ;;  %v5692_v59 = vpop.f32.mrb[31].mxu0  ;;  %v3828_v12 = vpack.c.bf16 %v4411_v13, %v4411_v13  ;;  %v3289_v17 = vsel %vm1112_vm5, %v4411_v13, 0.0  ;;  %v3340_v56 = vmul.f32 %v4411_v13, %v4411_v13 }
 0x226   : > { %v3391_v63 = vadd.f32 %v3390_v52, %v3389_v44  ;;  %3239 = vst.msk [vmem:[%s5582_s9 + $0x5c] sm:$0xf] %vm3215_vm7, %v3830_v7  ;;  %v3290_v58 = vadd.f32 %v3289_v17, %v3288_v53  ;;  %v3291_v25 = vsel %vm1112_vm5, %v4408_v24, 0.0  ;;  %v3342_v60 = vmul.f32 %v4410_v28, %v4410_v28 }
 0x227   : > { %v4244_v32 = vpop.f32.mrb[24].mxu1  ;;  %3237 = vst.msk [vmem:[%s5582_s9 + $0x54] sm:$0xf] %vm3215_vm7, %v3828_v12  ;;  %v3392_v54 = vsel %vm1112_vm5, %v3340_v56, 0.0  ;;  %v3394_v29 = vsel %vm1112_vm5, %v3341_v43, 0.0  ;;  %v3293_v39 = vsel %vm1112_vm5, %v4410_v28, 0.0 }
 0x228   : > { %v4412_v26 = vadd.f32 %v4380_v37, %v4244_v32  ;;  %v2199_v50 = vpop.f32.mrb[25].mxu1  ;;  %v3292_v9 = vadd.f32 %v3291_v25, %v3290_v58  ;;  %v3393_v30 = vadd.f32 %v3392_v54, %v3391_v63  ;;  %v3396_v36 = vsel %vm1112_vm5, %v3342_v60, 0.0 }
 0x229   : > { %v4413_v21 = vadd.f32 %v3024_v42, %v2199_v50  ;;  %v4245_v18 = vpop.f32.mrb[26].mxu1 }
 0x22a   : > { %v3833_v8 = vpack.c.bf16 %v4412_v26, %v4412_v26  ;;  %v2202_v40 = vpop.f32.mrb[27].mxu1  ;;  %v3395_v38 = vadd.f32 %v3394_v29, %v3393_v30  ;;  %v3294_v57 = vadd.f32 %v3293_v39, %v3292_v9  ;;  %v4414_v42 = vadd.f32 %v5667_v2, %v4245_v18 }
 0x22b   : > { %v3831_v55 = vpack.c.bf16 %v4413_v21, %v4413_v21  ;;  %v3295_v37 = vsel %vm1112_vm5, %v4413_v21, 0.0  ;;  %v3343_v23 = vmul.f32 %v4413_v21, %v4413_v21  ;;  %v4415_v16 = vadd.f32 %v5673_v35, %v2202_v40 }
 0x22c   : > { %3242 = vst.msk [vmem:[%s5582_s9 + $0x68] sm:$0xf] %vm3215_vm7, %v3833_v8  ;;  %v3345_v31 = vmul.f32 %v4412_v26, %v4412_v26  ;;  %v3296_v1 = vadd.f32 %v3295_v37, %v3294_v57  ;;  %v3397_v33 = vadd.f32 %v3396_v36, %v3395_v38  ;;  %v3834_v51 = vpack.c.bf16 %v4414_v42, %v4414_v42 }
 0x22d   : > { %3240 = vst.msk [vmem:[%s5582_s9 + $0x60] sm:$0xf] %vm3215_vm7, %v3831_v55  ;;  %v3398_v0 = vsel %vm1112_vm5, %v3343_v23, 0.0  ;;  %v3832_v5 = vpack.c.bf16 %v4415_v16, %v4415_v16  ;;  %v3297_v10 = vsel %vm1112_vm5, %v4415_v16, 0.0  ;;  %v3344_v19 = vmul.f32 %v4415_v16, %v4415_v16 }
 0x22e   : > { %v3399_v24 = vadd.f32 %v3398_v0, %v3397_v33  ;;  %3243 = vst.msk [vmem:[%s5582_s9 + $0x6c] sm:$0xf] %vm3215_vm7, %v3834_v51  ;;  %v3298_v2 = vadd.f32 %v3297_v10, %v3296_v1  ;;  %v3299_v47 = vsel %vm1112_vm5, %v4412_v26, 0.0  ;;  %v3346_v48 = vmul.f32 %v4414_v42, %v4414_v42 }
 0x22f   : > { %v4248_v61 = vpop.f32.mrb[28].mxu1  ;;  %3241 = vst.msk [vmem:[%s5582_s9 + $0x64] sm:$0xf] %vm3215_vm7, %v3832_v5  ;;  %v3400_v4 = vsel %vm1112_vm5, %v3344_v19, 0.0  ;;  %v3402_v34 = vsel %vm1112_vm5, %v3345_v31, 0.0 }
 0x230   : > { %v4416_v35 = vadd.f32 %v4384_v27, %v4248_v61  ;;  %v2215_v14 = vpop.f32.mrb[29].mxu1  ;;  %v3300_v45 = vadd.f32 %v3299_v47, %v3298_v2  ;;  %v3401_v62 = vadd.f32 %v3400_v4, %v3399_v24  ;;  %v3301_v27 = vsel %vm1112_vm5, %v4414_v42, 0.0 }
 0x231   : > { %v4417_v6 = vadd.f32 %v3040_v3, %v2215_v14  ;;  %v4249_v20 = vpop.f32.mrb[30].mxu1  ;;  %v3404_v44 = vsel %vm1112_vm5, %v3346_v48, 0.0 }
 0x232   : > { %v3837_v46 = vpack.c.bf16 %v4416_v35, %v4416_v35  ;;  %v2218_v49 = vpop.f32.mrb[31].mxu1  ;;  %v3403_v53 = vadd.f32 %v3402_v34, %v3401_v62  ;;  %v3302_v28 = vadd.f32 %v3301_v27, %v3300_v45  ;;  %v4418_v3 = vadd.f32 %v5687_v41, %v4249_v20 }
 0x233   : > { %v3835_v22 = vpack.c.bf16 %v4417_v6, %v4417_v6  ;;  %v3303_v11 = vsel %vm1112_vm5, %v4417_v6, 0.0  ;;  %v3347_v15 = vmul.f32 %v4417_v6, %v4417_v6  ;;  %v4419_v13 = vadd.f32 %v5692_v59, %v2218_v49 }
 0x234   : > { %3246 = vst.msk [vmem:[%s5582_s9 + $0x78] sm:$0xf] %vm3215_vm7, %v3837_v46  ;;  %v3304_v43 = vadd.f32 %v3303_v11, %v3302_v28  ;;  %v3405_v7 = vadd.f32 %v3404_v44, %v3403_v53  ;;  %v3838_v12 = vpack.c.bf16 %v4418_v3, %v4418_v3  ;;  %v3349_v63 = vmul.f32 %v4416_v35, %v4416_v35 }
 0x235   : > { %3244 = vst.msk [vmem:[%s5582_s9 + $0x70] sm:$0xf] %vm3215_vm7, %v3835_v22  ;;  %v3406_v52 = vsel %vm1112_vm5, %v3347_v15, 0.0  ;;  %v3836_v17 = vpack.c.bf16 %v4419_v13, %v4419_v13  ;;  %v3305_v56 = vsel %vm1112_vm5, %v4419_v13, 0.0  ;;  %v3348_v32 = vmul.f32 %v4419_v13, %v4419_v13 }
 0x236   : > { %v3407_v58 = vadd.f32 %v3406_v52, %v3405_v7  ;;  %3247 = vst.msk [vmem:[%s5582_s9 + $0x7c] sm:$0xf] %vm3215_vm7, %v3838_v12  ;;  %v3306_v41 = vadd.f32 %v3305_v56, %v3304_v43  ;;  %v3307_v59 = vsel %vm1112_vm5, %v4416_v35, 0.0  ;;  %v3350_v26 = vmul.f32 %v4418_v3, %v4418_v3 }
 0x237   : > { %3245 = vst.msk [vmem:[%s5582_s9 + $0x74] sm:$0xf] %vm3215_vm7, %v3836_v17  ;;  %v3408_v50 = vsel %vm1112_vm5, %v3348_v32, 0.0  ;;  %v3410_v54 = vsel %vm1112_vm5, %v3349_v63, 0.0  ;;  %v3309_v21 = vsel %vm1112_vm5, %v4418_v3, 0.0 }
 0x238   : > { %v3308_v25 = vadd.f32 %v3307_v59, %v3306_v41  ;;  %v3409_v60 = vadd.f32 %v3408_v50, %v3407_v58  ;;  %v3412_v9 = vsel %vm1112_vm5, %v3350_v26, 0.0 }
 0x23a   : > { %v3310_v18 = vadd.f32 %v3309_v21, %v3308_v25  ;;  %v3411_v29 = vadd.f32 %v3410_v54, %v3409_v60 }
 0x23c   : > { %v3311_v30 = vrot.slane %v3310_v18, 4  ;;  %v3413_v8 = vadd.f32 %v3412_v9, %v3411_v29 }
 0x23e   : > { %v3312_v40 = vadd.f32 %v3311_v30, %v3310_v18  ;;  %v3414_v39 = vrot.slane %v3413_v8, 4 }
 0x240   : > { %v3313_v55 = vrot.slane %v3312_v40, 2  ;;  %v3415_v37 = vadd.f32 %v3414_v39, %v3413_v8 }
 0x242   : > { %v3314_v23 = vadd.f32 %v3313_v55, %v3312_v40  ;;  %v3416_v38 = vrot.slane %v3415_v37, 2 }
 0x244   : > { %v3315_v57 = vrot.slane %v3314_v23, 1  ;;  %v3417_v42 = vadd.f32 %v3416_v38, %v3415_v37 }
 0x246   : > { %v3316_v16 = vadd.f32 %v3315_v57, %v3314_v23  ;;  %v3418_v36 = vrot.slane %v3417_v42, 1 }
 0x248   : > { %3318 = vst.msk [vmem:[%s465_s12] sm:$0x1] %vm3317_vm8, %v3316_v16  ;;  %v3419_v0 = vadd.f32 %v3418_v36, %v3417_v42 }
 0x24a   : > { %3420 = vst.msk [vmem:[%s465_s12 + $0x1] sm:$0x1] %vm3317_vm8, %v3419_v0 }
 0x24b PF: > { %s18_s26 = sadd.s32 1, %s4703_s26   ;;  %s5774_s24 = smov %s4699_s25 }
 0x24c   : > { %p15_p5 = scmp.ge.s32.totalorder %s18_s26, 4   ;;  %s5775_s25 = smov %s5777_s27 }
 0x24e   :  { %17 = sbr.rel (!%p15_p5) target bundleno = 2 (0x2), region = 100 }

</bundles_post_ra>
